<compile_context>
chip_gen: v7x
topology: tpu7x:2x2x1
jax: 0.10.0
libtpu: 0.0.40
codegen_flags: <defaults>
</compile_context>

<pallas_src>
import functools

import jax
import jax.numpy as jnp
from jax.experimental import pallas as pl
from jax.experimental.pallas import tpu as pltpu


def _round_up(x, m):
    return ((x + m - 1) // m) * m


def _cdiv(a, b):
    return (a + b - 1) // b


def _encoder_kernel(x_ref, w1_ref, w2_ref, w34_ref, bh_ref, lv_ref, out_ref,
                    *, hidden, latent):
    """One batch tile of the full VectorEncoder forward (weights VMEM-resident)."""
    bf16 = jnp.bfloat16
    x = x_ref[...]                       # (tb, obs_dim); cast below is a no-op if bf16

    # Packed bias / LN / mask vectors (f32, static slices of small VMEM buffers).
    b1 = bh_ref[0:1, :]
    b2 = bh_ref[1:2, :]
    b3 = lv_ref[0:1, :]
    bfc = lv_ref[1:2, :]
    ln_w = lv_ref[2:3, :]
    ln_b = lv_ref[3:4, :]
    mask = lv_ref[4:5, :]                # 1.0 on the first `latent` lanes, 0.0 on padding

    def leaky(v):                        # PyTorch default negative_slope = 0.01
        return jnp.where(v > 0, v, 0.01 * v)

    # h_layers[0] / h_layers[1] with LeakyReLU (MLP hidden stack).
    h = jnp.dot(x.astype(bf16), w1_ref[...], preferred_element_type=jnp.float32) + b1
    h = leaky(h)
    h = jnp.dot(h.astype(bf16), w2_ref[...], preferred_element_type=jnp.float32) + b2
    h = leaky(h)

    # h_layers[2] (no activation inside Conv1dMLP.forward), then the
    # VectorEncoder-level LeakyReLU.  w3 is the top block of the stacked buffer.
    z = jnp.dot(h.astype(bf16), w34_ref[:hidden, :],
                preferred_element_type=jnp.float32) + b3
    z = leaky(z)

    # fc: Linear(latent, latent) on lane-padded tensors.  Padded columns/rows
    # of wfc and padded bias lanes are exactly zero, so y[:, latent:] == 0.
    y = jnp.dot(z.astype(bf16), w34_ref[hidden:, :],
                preferred_element_type=jnp.float32) + bfc

    # LayerNorm over the true latent width (biased variance, eps=1e-5), f32.
    # Padded lanes of y are exactly 0, so the 128-lane sum equals the 32-lane sum.
    inv_l = 1.0 / latent
    mu = jnp.sum(y, axis=-1, keepdims=True) * inv_l
    d = (y - mu) * mask                                  # mask padded lanes (no iota)
    var = jnp.sum(d * d, axis=-1, keepdims=True) * inv_l
    yn = d * jax.lax.rsqrt(var + 1e-5) * ln_w + ln_b     # padded ln_w/ln_b are 0
    out_ref[...] = jnp.tanh(yn)


def _default_num_tiles(batch):
    """1 tile on single-TC chips (v5e/v6e); 2 on v7x so both TensorCores work."""
    try:
        kind = jax.devices()[0].device_kind.lower()
    except Exception:
        kind = ""
    if "v7" in kind and batch >= 16:
        return 2
    return 1


def vector_encoder(obs, packed, *, num_batch_tiles=None, max_tile=1024):
    """Batched forward.

    obs: (B, obs_dim) or (B, C, L) (Conv1d-with-full-kernel case), f32 or bf16.
    Returns the padded (Bp, P) f32 buffer; valid data is out[:B, :latent_dim].
    (Slicing is intentionally left to the consumer so the hot path is one call.)
    """
    if obs.ndim == 3:
        # Conv1d(C, H, kernel_size=L) on a length-L input == Linear over C*L features.
        obs = obs.reshape(obs.shape[0], -1)
    B, obs_dim = obs.shape

    w1, w2, w34 = packed["w1"], packed["w2"], packed["w34"]
    bh, lv = packed["bias_h"], packed["lat_vec"]
    H = w1.shape[1]
    P = lv.shape[1]
    L = packed["latent_dim"]
    assert w1.shape[0] == obs_dim and w34.shape == (H + P, P)

    # Tiling: pad batch only to a multiple of 8 (sublane quantum), then split it
    # across n tiles (1 on single-TC chips, >=2 on v7x, more only if a tile
    # would exceed max_tile rows).  Padding waste is < 8 rows per tile.
    if num_batch_tiles is None:
        num_batch_tiles = _default_num_tiles(B)
    Bp8 = _round_up(max(B, 8), 8)
    n_tiles = max(int(num_batch_tiles), _cdiv(Bp8, max_tile))
    tb = _round_up(_cdiv(Bp8, n_tiles), 8)
    Bp = tb * n_tiles
    if Bp != B:
        obs = jnp.pad(obs, ((0, Bp - B), (0, 0)))
    grid = (n_tiles,)

    flops = 2 * Bp * (obs_dim * H + H * H + H * P + P * P)
    bytes_accessed = int(Bp * obs_dim * obs.dtype.itemsize + Bp * P * 4
                         + (w1.size + w2.size + w34.size) * 2
                         + (bh.size + lv.size) * 4)

    out = pl.pallas_call(
        functools.partial(_encoder_kernel, hidden=H, latent=L),
        out_shape=jax.ShapeDtypeStruct((Bp, P), jnp.float32),
        grid=grid,
        in_specs=[
            pl.BlockSpec((tb, obs_dim), lambda i: (i, 0)),
            # Weights / packed vectors: constant index_map -> fetched once,
            # VMEM-resident across all batch tiles.
            pl.BlockSpec(w1.shape, lambda i: (0, 0)),
            pl.BlockSpec(w2.shape, lambda i: (0, 0)),
            pl.BlockSpec(w34.shape, lambda i: (0, 0)),
            pl.BlockSpec(bh.shape, lambda i: (0, 0)),
            pl.BlockSpec(lv.shape, lambda i: (0, 0)),
        ],
        out_specs=pl.BlockSpec((tb, P), lambda i: (i, 0)),
        compiler_params=pltpu.CompilerParams(
            dimension_semantics=("parallel",)),        # megacore sharding on v7x
        cost_estimate=pl.CostEstimate(
            flops=flops, transcendentals=Bp * (P + 1),
            bytes_accessed=bytes_accessed),
    )(obs, w1, w2, w34, bh, lv)

    return out   # (Bp, P); valid region is [:B, :L]


def init_params(key, obs_dim, latent_dim, hidden_dim=256):
    """PyTorch-equivalent f32 parameters, stored (in_features, out_features)."""
    ks = jax.random.split(key, 8)
    s = 0.1
    n = jax.random.normal
    return {
        "w1": s * n(ks[0], (obs_dim, hidden_dim), jnp.float32),
        "b1": s * n(ks[1], (1, hidden_dim), jnp.float32),
        "w2": s * n(ks[2], (hidden_dim, hidden_dim), jnp.float32),
        "b2": s * n(ks[3], (1, hidden_dim), jnp.float32),
        "w3": s * n(ks[4], (hidden_dim, latent_dim), jnp.float32),
        "b3": s * n(ks[5], (1, latent_dim), jnp.float32),
        "wfc": s * n(ks[6], (latent_dim, latent_dim), jnp.float32),
        "bfc": s * n(ks[7], (1, latent_dim), jnp.float32),
        "ln_w": jnp.ones((1, latent_dim), jnp.float32),
        "ln_b": jnp.zeros((1, latent_dim), jnp.float32),
    }


def pack_params(p, lane=128):
    """Pack params for the kernel: bf16 weights, latent lane-padded, 6 buffers.

    Call this after EVERY weight update: the zero padding of w3/wfc and of the
    latent-width vectors is required for exact LayerNorm statistics, and it is
    re-created here from the raw f32 params each time.
    """
    H = p["w1"].shape[1]
    L = p["w3"].shape[1]
    P = _round_up(L, lane)

    def pad_cols(x):                                    # (r, L) -> (r, P), zero pad
        return jnp.pad(x, ((0, 0), (0, P - L)))

    w3p = pad_cols(p["w3"])                             # (H, P)
    wfcp = jnp.pad(p["wfc"], ((0, P - L), (0, P - L)))  # (P, P)
    mask = (jnp.arange(P) < L).astype(jnp.float32)[None, :]   # (1, P) lane mask
    lat_vec = jnp.concatenate(
        [pad_cols(p["b3"]), pad_cols(p["bfc"]),
         pad_cols(p["ln_w"]), pad_cols(p["ln_b"]),
         mask, jnp.zeros((3, P), jnp.float32)], axis=0)        # (8, P) f32
    return {
        "w1": p["w1"].astype(jnp.bfloat16),
        "w2": p["w2"].astype(jnp.bfloat16),
        "w34": jnp.concatenate([w3p, wfcp], axis=0).astype(jnp.bfloat16),  # (H+P, P)
        "bias_h": jnp.concatenate([p["b1"], p["b2"]], axis=0),             # (2, H) f32
        "lat_vec": lat_vec,
        "latent_dim": L,
    }


def reference_forward(obs, p):
    """Pure-JAX reference (bf16 matmul inputs, f32 accumulation, like the kernel)."""
    bf16 = jnp.bfloat16
    x = obs.reshape(obs.shape[0], -1) if obs.ndim == 3 else obs

    def dot_bf(a, w):
        return jnp.dot(a.astype(bf16), w.astype(bf16),
                       preferred_element_type=jnp.float32)

    def leaky(v):
        return jnp.where(v > 0, v, 0.01 * v)

    h = leaky(dot_bf(x, p["w1"]) + p["b1"])
    h = leaky(dot_bf(h, p["w2"]) + p["b2"])
    z = leaky(dot_bf(h, p["w3"]) + p["b3"])       # encoder out + VectorEncoder LeakyReLU
    y = dot_bf(z, p["wfc"]) + p["bfc"]
    mu = jnp.mean(y, axis=-1, keepdims=True)
    var = jnp.mean((y - mu) ** 2, axis=-1, keepdims=True)
    yn = (y - mu) * jax.lax.rsqrt(var + 1e-5) * p["ln_w"] + p["ln_b"]
    return jnp.tanh(yn)


if __name__ == "__main__":
    # Batched forward: rows are independent, so this is many small forward
    # passes in one pallas_call.  TODO(synk): `detach=True` branch is a no-op
    # for a pure forward pass (autograd concept, nothing to translate).
    B, obs_dim, latent_dim, hidden_dim = 512, 24, 32, 256

    key = jax.random.PRNGKey(0)
    k_obs, k_p = jax.random.split(key)
    obs = jax.random.normal(k_obs, (B, obs_dim), jnp.float32)
    params = init_params(k_p, obs_dim, latent_dim, hidden_dim)
    packed = pack_params(params)

    out_padded = vector_encoder(obs, packed)
    out_padded = jax.block_until_ready(out_padded)

    # Narrowing to (B, latent) is done here only for verification; in the hot
    # path the consumer reads the lane-dense padded buffer directly.
    out = out_padded[:B, :latent_dim]
    ref = reference_forward(obs, params)
    assert out.shape == (B, latent_dim)
    assert bool(jnp.allclose(out, ref, atol=1e-4, rtol=1e-4)), "mismatch vs reference"

    print("KERNEL_OK")
</pallas_src>

<mosaic_0001>
module attributes {stable_mosaic.version = 11 : i64} {
  func.func @_encoder_kernel(%arg0: i32, %arg1: memref<512x24xf32, #tpu.memory_space<vmem>>, %arg2: memref<24x256xbf16, #tpu.memory_space<vmem>>, %arg3: memref<256x256xbf16, #tpu.memory_space<vmem>>, %arg4: memref<384x128xbf16, #tpu.memory_space<vmem>>, %arg5: memref<2x256xf32, #tpu.memory_space<vmem>>, %arg6: memref<8x128xf32, #tpu.memory_space<vmem>>, %arg7: memref<512x128xf32, #tpu.memory_space<vmem>>) attributes {dimension_semantics = [#tpu.dimension_semantics<parallel>], iteration_bounds = array<i64: 1>, scalar_prefetch = 0 : i64, scratch_operands = 0 : i64, tpu.core_type = #tpu.core_type<tc>, window_params = [{transform_indices = @transform_0, window_bounds = array<i64: 512, 24>}, {pipeline_mode = #tpu.pipeline_mode<synchronous>, transform_indices = @transform_1, window_bounds = array<i64: 24, 256>}, {pipeline_mode = #tpu.pipeline_mode<synchronous>, transform_indices = @transform_2, window_bounds = array<i64: 256, 256>}, {pipeline_mode = #tpu.pipeline_mode<synchronous>, transform_indices = @transform_3, window_bounds = array<i64: 384, 128>}, {pipeline_mode = #tpu.pipeline_mode<synchronous>, transform_indices = @transform_4, window_bounds = array<i64: 2, 256>}, {pipeline_mode = #tpu.pipeline_mode<synchronous>, transform_indices = @transform_5, window_bounds = array<i64: 8, 128>}, {transform_indices = @transform_6, window_bounds = array<i64: 512, 128>}]} {
    %c0 = arith.constant 0 : index
    %c0_0 = arith.constant 0 : index
    %0 = vector.load %arg1[%c0, %c0_0] : memref<512x24xf32, #tpu.memory_space<vmem>>, vector<512x24xf32>
    %c0_1 = arith.constant 0 : index
    %c0_2 = arith.constant 0 : index
    %1 = vector.load %arg5[%c0_1, %c0_2] : memref<2x256xf32, #tpu.memory_space<vmem>>, vector<1x256xf32>
    %c1 = arith.constant 1 : index
    %c0_3 = arith.constant 0 : index
    %2 = vector.load %arg5[%c1, %c0_3] : memref<2x256xf32, #tpu.memory_space<vmem>>, vector<1x256xf32>
    %c0_4 = arith.constant 0 : index
    %c0_5 = arith.constant 0 : index
    %3 = vector.load %arg6[%c0_4, %c0_5] : memref<8x128xf32, #tpu.memory_space<vmem>>, vector<1x128xf32>
    %c1_6 = arith.constant 1 : index
    %c0_7 = arith.constant 0 : index
    %4 = vector.load %arg6[%c1_6, %c0_7] : memref<8x128xf32, #tpu.memory_space<vmem>>, vector<1x128xf32>
    %c2 = arith.constant 2 : index
    %c0_8 = arith.constant 0 : index
    %5 = vector.load %arg6[%c2, %c0_8] : memref<8x128xf32, #tpu.memory_space<vmem>>, vector<1x128xf32>
    %c3 = arith.constant 3 : index
    %c0_9 = arith.constant 0 : index
    %6 = vector.load %arg6[%c3, %c0_9] : memref<8x128xf32, #tpu.memory_space<vmem>>, vector<1x128xf32>
    %c4 = arith.constant 4 : index
    %c0_10 = arith.constant 0 : index
    %7 = vector.load %arg6[%c4, %c0_10] : memref<8x128xf32, #tpu.memory_space<vmem>>, vector<1x128xf32>
    %8 = arith.truncf %0 : vector<512x24xf32> to vector<512x24xbf16>
    %c0_11 = arith.constant 0 : index
    %c0_12 = arith.constant 0 : index
    %9 = vector.load %arg2[%c0_11, %c0_12] : memref<24x256xbf16, #tpu.memory_space<vmem>>, vector<24x256xbf16>
    %cst = arith.constant dense<0.000000e+00> : vector<512x256xf32>
    %10 = tpu.matmul %8, %9, %cst {dimension_numbers = #tpu.dot_dimension_numbers<[1], [0], [0], [1], [0, 0, 1, 1], [], []>} : vector<512x24xbf16>, vector<24x256xbf16>, vector<512x256xf32> -> vector<512x256xf32>
    %11 = vector.broadcast %1 : vector<1x256xf32> to vector<512x256xf32>
    %12 = arith.addf %10, %11 : vector<512x256xf32>
    %cst_13 = arith.constant 0.000000e+00 : f32
    %13 = vector.broadcast %cst_13 : f32 to vector<512x256xf32>
    %14 = arith.cmpf ogt, %12, %13 : vector<512x256xf32>
    %cst_14 = arith.constant 0.00999999977 : f32
    %15 = vector.broadcast %cst_14 : f32 to vector<512x256xf32>
    %16 = arith.mulf %15, %12 : vector<512x256xf32>
    %17 = arith.select %14, %12, %16 : vector<512x256xi1>, vector<512x256xf32>
    %18 = arith.truncf %17 : vector<512x256xf32> to vector<512x256xbf16>
    %c0_15 = arith.constant 0 : index
    %c0_16 = arith.constant 0 : index
    %19 = vector.load %arg3[%c0_15, %c0_16] : memref<256x256xbf16, #tpu.memory_space<vmem>>, vector<256x256xbf16>
    %cst_17 = arith.constant dense<0.000000e+00> : vector<512x256xf32>
    %20 = tpu.matmul %18, %19, %cst_17 {dimension_numbers = #tpu.dot_dimension_numbers<[1], [0], [0], [1], [0, 0, 1, 1], [], []>} : vector<512x256xbf16>, vector<256x256xbf16>, vector<512x256xf32> -> vector<512x256xf32>
    %21 = vector.broadcast %2 : vector<1x256xf32> to vector<512x256xf32>
    %22 = arith.addf %20, %21 : vector<512x256xf32>
    %cst_18 = arith.constant 0.000000e+00 : f32
    %23 = vector.broadcast %cst_18 : f32 to vector<512x256xf32>
    %24 = arith.cmpf ogt, %22, %23 : vector<512x256xf32>
    %cst_19 = arith.constant 0.00999999977 : f32
    %25 = vector.broadcast %cst_19 : f32 to vector<512x256xf32>
    %26 = arith.mulf %25, %22 : vector<512x256xf32>
    %27 = arith.select %24, %22, %26 : vector<512x256xi1>, vector<512x256xf32>
    %28 = arith.truncf %27 : vector<512x256xf32> to vector<512x256xbf16>
    %c0_20 = arith.constant 0 : index
    %c0_21 = arith.constant 0 : index
    %29 = vector.load %arg4[%c0_20, %c0_21] : memref<384x128xbf16, #tpu.memory_space<vmem>>, vector<256x128xbf16>
    %cst_22 = arith.constant dense<0.000000e+00> : vector<512x128xf32>
    %30 = tpu.matmul %28, %29, %cst_22 {dimension_numbers = #tpu.dot_dimension_numbers<[1], [0], [0], [1], [0, 0, 1, 1], [], []>} : vector<512x256xbf16>, vector<256x128xbf16>, vector<512x128xf32> -> vector<512x128xf32>
    %31 = vector.broadcast %3 : vector<1x128xf32> to vector<512x128xf32>
    %32 = arith.addf %30, %31 : vector<512x128xf32>
    %cst_23 = arith.constant 0.000000e+00 : f32
    %33 = vector.broadcast %cst_23 : f32 to vector<512x128xf32>
    %34 = arith.cmpf ogt, %32, %33 : vector<512x128xf32>
    %cst_24 = arith.constant 0.00999999977 : f32
    %35 = vector.broadcast %cst_24 : f32 to vector<512x128xf32>
    %36 = arith.mulf %35, %32 : vector<512x128xf32>
    %37 = arith.select %34, %32, %36 : vector<512x128xi1>, vector<512x128xf32>
    %38 = arith.truncf %37 : vector<512x128xf32> to vector<512x128xbf16>
    %c256 = arith.constant 256 : index
    %c0_25 = arith.constant 0 : index
    %39 = vector.load %arg4[%c256, %c0_25] : memref<384x128xbf16, #tpu.memory_space<vmem>>, vector<128x128xbf16>
    %cst_26 = arith.constant dense<0.000000e+00> : vector<512x128xf32>
    %40 = tpu.matmul %38, %39, %cst_26 {dimension_numbers = #tpu.dot_dimension_numbers<[1], [0], [0], [1], [0, 0, 1, 1], [], []>} : vector<512x128xbf16>, vector<128x128xbf16>, vector<512x128xf32> -> vector<512x128xf32>
    %41 = vector.broadcast %4 : vector<1x128xf32> to vector<512x128xf32>
    %42 = arith.addf %40, %41 : vector<512x128xf32>
    %cst_27 = arith.constant dense<0.000000e+00> : vector<512xf32>
    %43 = vector.multi_reduction <add>, %42, %cst_27 [1] : vector<512x128xf32> to vector<512xf32>
    %44 = vector.shape_cast %43 : vector<512xf32> to vector<512x1xf32>
    %cst_28 = arith.constant 3.125000e-02 : f32
    %45 = vector.broadcast %cst_28 : f32 to vector<512x1xf32>
    %46 = arith.mulf %44, %45 : vector<512x1xf32>
    %47 = vector.broadcast %46 : vector<512x1xf32> to vector<512x128xf32>
    %48 = arith.subf %42, %47 : vector<512x128xf32>
    %49 = vector.broadcast %7 : vector<1x128xf32> to vector<512x128xf32>
    %50 = arith.mulf %48, %49 : vector<512x128xf32>
    %51 = arith.mulf %50, %50 : vector<512x128xf32>
    %cst_29 = arith.constant dense<0.000000e+00> : vector<512xf32>
    %52 = vector.multi_reduction <add>, %51, %cst_29 [1] : vector<512x128xf32> to vector<512xf32>
    %53 = vector.shape_cast %52 : vector<512xf32> to vector<512x1xf32>
    %cst_30 = arith.constant 3.125000e-02 : f32
    %54 = vector.broadcast %cst_30 : f32 to vector<512x1xf32>
    %55 = arith.mulf %53, %54 : vector<512x1xf32>
    %cst_31 = arith.constant 9.99999974E-6 : f32
    %56 = vector.broadcast %cst_31 : f32 to vector<512x1xf32>
    %57 = arith.addf %55, %56 : vector<512x1xf32>
    %58 = math.rsqrt %57 : vector<512x1xf32>
    %59 = vector.broadcast %58 : vector<512x1xf32> to vector<512x128xf32>
    %60 = arith.mulf %50, %59 : vector<512x128xf32>
    %61 = vector.broadcast %5 : vector<1x128xf32> to vector<512x128xf32>
    %62 = arith.mulf %60, %61 : vector<512x128xf32>
    %63 = vector.broadcast %6 : vector<1x128xf32> to vector<512x128xf32>
    %64 = arith.addf %62, %63 : vector<512x128xf32>
    %65 = math.tanh %64 : vector<512x128xf32>
    %c0_32 = arith.constant 0 : index
    %c0_33 = arith.constant 0 : index
    %66 = vector.load %arg7[%c0_32, %c0_33] : memref<512x128xf32, #tpu.memory_space<vmem>>, vector<512x128xf32>
    tpu.vector_store %arg7[%c0_32, %c0_33], %65 {strides = array<i32>} : memref<512x128xf32, #tpu.memory_space<vmem>>, vector<512x128xf32>,
    return
  }
  func.func @transform_0(%arg0: i32) -> (i32, i32) {
    %c0_i32 = arith.constant 0 : i32
    %c0_i32_0 = arith.constant 0 : i32
    return %arg0, %c0_i32 : i32, i32
  }
  func.func @transform_1(%arg0: i32) -> (i32, i32) {
    %c0_i32 = arith.constant 0 : i32
    %c0_i32_0 = arith.constant 0 : i32
    %c0_i32_1 = arith.constant 0 : i32
    return %c0_i32, %c0_i32_0 : i32, i32
  }
  func.func @transform_2(%arg0: i32) -> (i32, i32) {
    %c0_i32 = arith.constant 0 : i32
    %c0_i32_0 = arith.constant 0 : i32
    %c0_i32_1 = arith.constant 0 : i32
    return %c0_i32, %c0_i32_0 : i32, i32
  }
  func.func @transform_3(%arg0: i32) -> (i32, i32) {
    %c0_i32 = arith.constant 0 : i32
    %c0_i32_0 = arith.constant 0 : i32
    %c0_i32_1 = arith.constant 0 : i32
    return %c0_i32, %c0_i32_0 : i32, i32
  }
  func.func @transform_4(%arg0: i32) -> (i32, i32) {
    %c0_i32 = arith.constant 0 : i32
    %c0_i32_0 = arith.constant 0 : i32
    %c0_i32_1 = arith.constant 0 : i32
    return %c0_i32, %c0_i32_0 : i32, i32
  }
  func.func @transform_5(%arg0: i32) -> (i32, i32) {
    %c0_i32 = arith.constant 0 : i32
    %c0_i32_0 = arith.constant 0 : i32
    %c0_i32_1 = arith.constant 0 : i32
    return %c0_i32, %c0_i32_0 : i32, i32
  }
  func.func @transform_6(%arg0: i32) -> (i32, i32) {
    %c0_i32 = arith.constant 0 : i32
    %c0_i32_0 = arith.constant 0 : i32
    return %arg0, %c0_i32 : i32, i32
  }
}

</mosaic_0001>

<bundles_post_ra>
// kernel: tpu_custom_call.1
= control target key start
LH: loop header
LB: loop body
LE: loop exit
PB: predicated region body
PF: predicated region fallthrough
CT: control target
= control target key end

     0   :  { %vm255_vm0 = vcmask 1043456   ;;  %v4709_v3 = vmov 0   ;;  %vm158_vm1 = vcmask 195584   ;;  %s6890_s0 = inlined_call_operand.vmem [shape: f32[512,24], index: 0, kind: input, shape index: {}]   ;;  %s6891_s1 = inlined_call_operand.vmem [shape: bf16[24,256], index: 1, kind: input, shape index: {}]   ;;  %s6892_s2 = inlined_call_operand.vmem [shape: bf16[256,256], index: 2, kind: input, shape index: {}]   ;;  %s6893_s3 = inlined_call_operand.vmem [shape: bf16[384,128], index: 3, kind: input, shape index: {}]   ;;  %s6894_s4 = inlined_call_operand.vmem [shape: f32[2,256], index: 4, kind: input, shape index: {}]   ;;  %s6895_s5 = inlined_call_operand.vmem [shape: f32[8,128], index: 5, kind: input, shape index: {}]   ;;  %s6896_s6 = inlined_call_operand.hbm [shape: f32[512,128], index: 6, kind: output, shape index: {}]  }
   0x1   :  { %v4348_v0 = vld [vmem:[%s6891_s1 + $0x4] ss:$8 sps:$4 sm:$0xff]   ;;  %v4350_v1 = vld [vmem:[%s6891_s1] ss:$8 sps:$4 sm:$0xff]   ;;  %v131_v2 = vld [vmem:[%s6891_s1 + $0x10] sm:$0xff]  ;;  %294 = vmatprep.mubr.bf16.mxu0 %v4709_v3  ;;  %534 = vmatprep.mubr.bf16.mxu1 %v4709_v3 }
   0x2   :  { %262 = vmatprep.subr.bf16.mxu0 %v4348_v0  ;;  %v4125_v4 = vcombine.high %v131_v2, %v131_v2  ;;  %v4124_v5 = vcombine.low %v131_v2, %v131_v2  ;;  %4340 = vmatprep.subr.bf16.mxu1 %v4348_v0  ;;  %v25_v6 = vld [vmem:[%s6890_s0] sm:$0xff]  ;;  %v26_v7 = vld [vmem:[%s6890_s0 + $0x8] sm:$0xff]  ;;  %v27_v10 = vld [vmem:[%s6890_s0 + $0x10] sm:$0xff] }
   0x3   :  { %263 = vmatpush1.bf16.msra.mxu0 %v4350_v1  ;;  %4342 = vmatpush1.bf16.msra.mxu1 %v4350_v1  ;;  %v97_v9 = vpack.c.bf16 %v26_v7, %v25_v6  ;;  %v28_v11 = vld [vmem:[%s6890_s0 + $0x18] sm:$0xff]  ;;  %v29_v13 = vld [vmem:[%s6890_s0 + $0x20] sm:$0xff]  ;;  %v30_v14 = vld [vmem:[%s6890_s0 + $0x28] sm:$0xff] }
   0x4   :  { %4126 = vmatprep.subr.msk.bf16.mxu0 %vm255_vm0, %v4125_v4  ;;  %v257_v8 = vsel %vm255_vm0, %v4124_v5, 0  ;;  %4341 = vmatprep.subr.msk.bf16.mxu1 %vm255_vm0, %v4125_v4  ;;  %v98_v12 = vpack.c.bf16 %v28_v11, %v27_v10  ;;  %v99_v15 = vpack.c.bf16 %v30_v14, %v29_v13  ;;  %v31_v16 = vld [vmem:[%s6890_s0 + $0x30] sm:$0xff]  ;;  %v32_v17 = vld [vmem:[%s6890_s0 + $0x38] sm:$0xff]  ;;  %v73_v19 = vld [vmem:[%s6890_s0 + $0x180] sm:$0xff] }
   0x5   :  { %v100_v18 = vpack.c.bf16 %v32_v17, %v31_v16  ;;  %v74_v20 = vld [vmem:[%s6890_s0 + $0x188] sm:$0xff]  ;;  %v33_v24 = vld [vmem:[%s6890_s0 + $0x40] sm:$0xff]  ;;  %v75_v27 = vld [vmem:[%s6890_s0 + $0x190] sm:$0xff] }
   0x6   :  { %v121_v21 = vpack.c.bf16 %v74_v20, %v73_v19  ;;  %v4353_v22 = vld [vmem:[%s6892_s2] ss:$8 sps:$4 sm:$0xff]   ;;  %v4355_v23 = vld [vmem:[%s6892_s2 + $0x4] ss:$8 sps:$4 sm:$0xff]   ;;  %v76_v28 = vld [vmem:[%s6890_s0 + $0x198] sm:$0xff] }
   0x7   :  { %265 = vmatpush1.bf16.msra.mxu0 %v257_v8  ;;  %4343 = vmatpush1.bf16.msra.mxu1 %v257_v8  ;;  %v34_v25 = vld [vmem:[%s6890_s0 + $0x48] sm:$0xff]  ;;  %v35_v29 = vld [vmem:[%s6890_s0 + $0x50] sm:$0xff]  ;;  %v122_v30 = vpack.c.bf16 %v76_v28, %v75_v27  ;;  %v36_v33 = vld [vmem:[%s6890_s0 + $0x58] sm:$0xff] }
   0x8   :  { %2199 = vmatprep.subr.bf16.mxu0 %v4709_v3  ;;  %1266 = vmatprep.subr.bf16.mxu1 %v4355_v23  ;;  %v101_v26 = vpack.c.bf16 %v34_v25, %v33_v24  ;;  %v4356_v31 = vld [vmem:[%s6892_s2 + $0x10] ss:$8 sps:$4 sm:$0xff]   ;;  %v4358_v32 = vld [vmem:[%s6892_s2 + $0x14] ss:$8 sps:$4 sm:$0xff]   ;;  %v4359_v34 = vld [vmem:[%s6892_s2 + $0x20] ss:$8 sps:$4 sm:$0xff]   ;;  %v102_v36 = vpack.c.bf16 %v36_v33, %v35_v29 }
   0x9   :  { %v4361_v35 = vld [vmem:[%s6892_s2 + $0x24] ss:$8 sps:$4 sm:$0xff]  }
   0xa   :  { %4127 = vmatmul.mubr.msk.bf16.vlgmr.msra.gmra.mrb[0].mxu0 %vm158_vm1, %v97_v9  ;;  %4151 = vmatmul.mubr.msk.bf16.vlgmr.msra.gmra.mrb[0].mxu1 %vm158_vm1, %v121_v21 }
   0xb   :  { %304 = vmatprep.mubr.bf16.mxu0 %v4709_v3  ;;  %1267 = vmatpush1.bf16.msra.mxu1 %v4353_v22 }
   0xc   :  { %544 = vmatprep.mubr.bf16.mxu1 %v4709_v3  ;;  %1268 = vmatprep.subr.bf16.mxu1 %v4358_v32 }
   0xf   :  { %1269 = vmatpush1.bf16.msra.mxu1 %v4356_v31 }
  0x10   :  { %1270 = vmatprep.subr.bf16.mxu1 %v4361_v35 }
  0x12   :  { %4128 = vmatmul.mubr.msk.bf16.gmra.mrb[4].mxu0 %vm158_vm1, %v98_v12  ;;  %4152 = vmatmul.mubr.msk.bf16.gmra.mrb[4].mxu1 %vm158_vm1, %v122_v30 }
  0x13   :  { %314 = vmatprep.mubr.bf16.mxu0 %v4709_v3  ;;  %554 = vmatprep.mubr.bf16.mxu1 %v4709_v3 }
  0x1a   :  { %4129 = vmatmul.mubr.msk.bf16.gmra.mrb[8].mxu0 %vm158_vm1, %v99_v15 }
  0x1b   :  { %324 = vmatprep.mubr.bf16.mxu0 %v4709_v3 }
  0x22   :  { %4130 = vmatmul.mubr.msk.bf16.gmra.mrb[12].mxu0 %vm158_vm1, %v100_v18 }
  0x23   :  { %334 = vmatprep.mubr.bf16.mxu0 %v4709_v3 }
  0x2a   :  { %4131 = vmatmul.mubr.msk.bf16.gmra.mrb[16].mxu0 %vm158_vm1, %v101_v26 }
  0x2b   :  { %344 = vmatprep.mubr.bf16.mxu0 %v4709_v3 }
  0x2c   :  { %11 = vsyncpa [#allocation3], 0  ;;  %1271 = vmatpush1.bf16.msra.mxu1 %v4359_v34  ;;  %v77_v37 = vld [vmem:[%s6890_s0 + $0x1a0] sm:$0xff]  ;;  %v78_v38 = vld [vmem:[%s6890_s0 + $0x1a8] sm:$0xff] }
  0x2d   :  { %v123_v39 = vpack.c.bf16 %v78_v38, %v77_v37  ;;  %v4362_v40 = vld [vmem:[%s6892_s2 + $0x30] ss:$8 sps:$4 sm:$0xff]   ;;  %v4364_v41 = vld [vmem:[%s6892_s2 + $0x34] ss:$8 sps:$4 sm:$0xff]   ;;  %v37_v42 = vld [vmem:[%s6890_s0 + $0x60] sm:$0xff] }
  0x2e   :  { %v38_v43 = vld [vmem:[%s6890_s0 + $0x68] sm:$0xff]  ;;  %1272 = vmatprep.subr.bf16.mxu1 %v4364_v41  ;;  %v79_v47 = vld [vmem:[%s6890_s0 + $0x1b0] sm:$0xff]  ;;  %v80_v48 = vld [vmem:[%s6890_s0 + $0x1b8] sm:$0xff] }
  0x2f   :  { %v4367_v44 = vld [vmem:[%s6892_s2 + $0x44] ss:$8 sps:$4 sm:$0xff]   ;;  %4153 = vmatmul.mubr.msk.bf16.gmra.mrb[8].mxu1 %vm158_vm1, %v123_v39  ;;  %v4365_v45 = vld [vmem:[%s6892_s2 + $0x40] ss:$8 sps:$4 sm:$0xff]   ;;  %v103_v46 = vpack.c.bf16 %v38_v43, %v37_v42  ;;  %v124_v49 = vpack.c.bf16 %v80_v48, %v79_v47  ;;  %v4368_v50 = vld [vmem:[%s6892_s2 + $0x50] ss:$8 sps:$4 sm:$0xff]  }
  0x30   :  { %1273 = vmatpush1.bf16.msra.mxu1 %v4362_v40  ;;  %564 = vmatprep.mubr.bf16.mxu1 %v4709_v3  ;;  %v4370_v51 = vld [vmem:[%s6892_s2 + $0x54] ss:$8 sps:$4 sm:$0xff]   ;;  %v4373_v54 = vld [vmem:[%s6892_s2 + $0x64] ss:$8 sps:$4 sm:$0xff]   ;;  %v4371_v55 = vld [vmem:[%s6892_s2 + $0x60] ss:$8 sps:$4 sm:$0xff]  }
  0x31   :  { %1274 = vmatprep.subr.bf16.mxu1 %v4367_v44  ;;  %v39_v52 = vld [vmem:[%s6890_s0 + $0x70] sm:$0xff]  ;;  %v40_v53 = vld [vmem:[%s6890_s0 + $0x78] sm:$0xff]  ;;  %v81_v57 = vld [vmem:[%s6890_s0 + $0x1c0] sm:$0xff] }
  0x32   :  { %4132 = vmatmul.mubr.msk.bf16.gmra.mrb[20].mxu0 %vm158_vm1, %v102_v36  ;;  %v104_v56 = vpack.c.bf16 %v40_v53, %v39_v52  ;;  %v82_v58 = vld [vmem:[%s6890_s0 + $0x1c8] sm:$0xff]  ;;  %v4374_v60 = vld [vmem:[%s6892_s2 + $0x70] ss:$8 sps:$4 sm:$0xff]   ;;  %v4376_v61 = vld [vmem:[%s6892_s2 + $0x74] ss:$8 sps:$4 sm:$0xff]  }
  0x33   :  { %354 = vmatprep.mubr.bf16.mxu0 %v4709_v3  ;;  %v125_v59 = vpack.c.bf16 %v82_v58, %v81_v57  ;;  %v41_v62 = vld [vmem:[%s6890_s0 + $0x80] sm:$0xff]  ;;  %v42_v63 = vld [vmem:[%s6890_s0 + $0x88] sm:$0xff]  ;;  %v83_v2 = vld [vmem:[%s6890_s0 + $0x1d0] sm:$0xff] }
  0x34   :  { %1275 = vmatpush1.bf16.msra.mxu1 %v4365_v45  ;;  %v4379_v0 = vld [vmem:[%s6892_s2 + $0x84] ss:$8 sps:$4 sm:$0xff]   ;;  %v4377_v1 = vld [vmem:[%s6892_s2 + $0x80] ss:$8 sps:$4 sm:$0xff]   ;;  %v84_v4 = vld [vmem:[%s6890_s0 + $0x1d8] sm:$0xff]  ;;  %v105_v5 = vpack.c.bf16 %v42_v63, %v41_v62 }
  0x35   :  { %1276 = vmatprep.subr.bf16.mxu1 %v4370_v51  ;;  %v4382_v6 = vld [vmem:[%s6892_s2 + $0x94] ss:$8 sps:$4 sm:$0xff]   ;;  %v126_v7 = vpack.c.bf16 %v84_v4, %v83_v2  ;;  %v4380_v8 = vld [vmem:[%s6892_s2 + $0x90] ss:$8 sps:$4 sm:$0xff]   ;;  %v4385_v9 = vld [vmem:[%s6892_s2 + $0xa4] ss:$8 sps:$4 sm:$0xff]  }
  0x36   :  { %v43_v10 = vld [vmem:[%s6890_s0 + $0x90] sm:$0xff]  ;;  %v44_v11 = vld [vmem:[%s6890_s0 + $0x98] sm:$0xff]  ;;  %v4383_v12 = vld [vmem:[%s6892_s2 + $0xa0] ss:$8 sps:$4 sm:$0xff]  }
  0x37   :  { %4154 = vmatmul.mubr.msk.bf16.gmra.mrb[12].mxu1 %vm158_vm1, %v124_v49  ;;  %v85_v13 = vld [vmem:[%s6890_s0 + $0x1e0] sm:$0xff]  ;;  %v86_v14 = vld [vmem:[%s6890_s0 + $0x1e8] sm:$0xff]  ;;  %v106_v15 = vpack.c.bf16 %v44_v11, %v43_v10  ;;  %v4388_v16 = vld [vmem:[%s6892_s2 + $0xb4] ss:$8 sps:$4 sm:$0xff]  }
  0x38   :  { %1277 = vmatpush1.bf16.msra.mxu1 %v4368_v50  ;;  %574 = vmatprep.mubr.bf16.mxu1 %v4709_v3  ;;  %v127_v17 = vpack.c.bf16 %v86_v14, %v85_v13  ;;  %v4386_v18 = vld [vmem:[%s6892_s2 + $0xb0] ss:$8 sps:$4 sm:$0xff]   ;;  %v4391_v19 = vld [vmem:[%s6892_s2 + $0xc4] ss:$8 sps:$4 sm:$0xff]   ;;  %v4389_v22 = vld [vmem:[%s6892_s2 + $0xc0] ss:$8 sps:$4 sm:$0xff]  }
  0x39   :  { %1278 = vmatprep.subr.bf16.mxu1 %v4373_v54  ;;  %v45_v20 = vld [vmem:[%s6890_s0 + $0xa0] sm:$0xff]  ;;  %v46_v21 = vld [vmem:[%s6890_s0 + $0xa8] sm:$0xff]  ;;  %v87_v23 = vld [vmem:[%s6890_s0 + $0x1f0] sm:$0xff] }
  0x3a   :  { %4133 = vmatmul.mubr.msk.bf16.gmra.mrb[24].mxu0 %vm158_vm1, %v103_v46  ;;  %v88_v24 = vld [vmem:[%s6890_s0 + $0x1f8] sm:$0xff]  ;;  %v107_v25 = vpack.c.bf16 %v46_v21, %v45_v20  ;;  %v47_v29 = vld [vmem:[%s6890_s0 + $0xb0] sm:$0xff]  ;;  %v4397_v32 = vld [vmem:[%s6892_s2 + $0xe4] ss:$8 sps:$4 sm:$0xff]  }
  0x3b   :  { %364 = vmatprep.mubr.bf16.mxu0 %v4709_v3  ;;  %v4394_v26 = vld [vmem:[%s6892_s2 + $0xd4] ss:$8 sps:$4 sm:$0xff]   ;;  %v128_v27 = vpack.c.bf16 %v88_v24, %v87_v23  ;;  %v4392_v28 = vld [vmem:[%s6892_s2 + $0xd0] ss:$8 sps:$4 sm:$0xff]   ;;  %v4395_v33 = vld [vmem:[%s6892_s2 + $0xe0] ss:$8 sps:$4 sm:$0xff]  }
  0x3c   :  { %1279 = vmatpush1.bf16.msra.mxu1 %v4371_v55  ;;  %v48_v30 = vld [vmem:[%s6890_s0 + $0xb8] sm:$0xff]  ;;  %v49_v34 = vld [vmem:[%s6890_s0 + $0xc0] sm:$0xff]  ;;  %v50_v35 = vld [vmem:[%s6890_s0 + $0xc8] sm:$0xff] }
  0x3d   :  { %1280 = vmatprep.subr.bf16.mxu1 %v4376_v61  ;;  %v108_v31 = vpack.c.bf16 %v48_v30, %v47_v29  ;;  %v4400_v36 = vld [vmem:[%s6892_s2 + $0xf4] ss:$8 sps:$4 sm:$0xff]   ;;  %v4398_v37 = vld [vmem:[%s6892_s2 + $0xf0] ss:$8 sps:$4 sm:$0xff]   ;;  %v109_v38 = vpack.c.bf16 %v50_v35, %v49_v34  ;;  %v53_v42 = vld [vmem:[%s6890_s0 + $0xe0] sm:$0xff] }
  0x3e   :  { %v51_v39 = vld [vmem:[%s6890_s0 + $0xd0] sm:$0xff]  ;;  %v52_v40 = vld [vmem:[%s6890_s0 + $0xd8] sm:$0xff]  ;;  %v54_v43 = vld [vmem:[%s6890_s0 + $0xe8] sm:$0xff] }
  0x3f   :  { %4155 = vmatmul.mubr.msk.bf16.gmra.mrb[16].mxu1 %vm158_vm1, %v125_v59  ;;  %v110_v41 = vpack.c.bf16 %v52_v40, %v51_v39  ;;  %v111_v44 = vpack.c.bf16 %v54_v43, %v53_v42  ;;  %v55_v45 = vld [vmem:[%s6890_s0 + $0xf0] sm:$0xff]  ;;  %v56_v46 = vld [vmem:[%s6890_s0 + $0xf8] sm:$0xff]  ;;  %v57_v48 = vld [vmem:[%s6890_s0 + $0x100] sm:$0xff] }
  0x40   :  { %1281 = vmatpush1.bf16.msra.mxu1 %v4374_v60  ;;  %584 = vmatprep.mubr.bf16.mxu1 %v4709_v3  ;;  %v112_v47 = vpack.c.bf16 %v56_v46, %v55_v45  ;;  %v58_v49 = vld [vmem:[%s6890_s0 + $0x108] sm:$0xff]  ;;  %v59_v51 = vld [vmem:[%s6890_s0 + $0x110] sm:$0xff]  ;;  %v60_v52 = vld [vmem:[%s6890_s0 + $0x118] sm:$0xff] }
  0x41   :  { %1282 = vmatprep.subr.bf16.mxu1 %v4379_v0  ;;  %v113_v50 = vpack.c.bf16 %v58_v49, %v57_v48  ;;  %v4401_v53 = vld [vmem:[%s6893_s3] sm:$0xff]   ;;  %v114_v54 = vpack.c.bf16 %v60_v52, %v59_v51  ;;  %v4402_v57 = vld [vmem:[%s6893_s3 + $0x8] sm:$0xff]   ;;  %v63_v59 = vld [vmem:[%s6890_s0 + $0x130] sm:$0xff] }
  0x42   :  { %4134 = vmatmul.mubr.msk.bf16.gmra.mrb[28].mxu0 %vm158_vm1, %v104_v56  ;;  %v61_v55 = vld [vmem:[%s6890_s0 + $0x120] sm:$0xff]  ;;  %v62_v56 = vld [vmem:[%s6890_s0 + $0x128] sm:$0xff]  ;;  %v64_v60 = vld [vmem:[%s6890_s0 + $0x138] sm:$0xff] }
  0x43   :  { %374 = vmatprep.mubr.bf16.mxu0 %v4709_v3  ;;  %2200 = vmatpush1.bf16.msra.mxu0 %v4401_v53  ;;  %v115_v58 = vpack.c.bf16 %v62_v56, %v61_v55  ;;  %v116_v61 = vpack.c.bf16 %v64_v60, %v63_v59  ;;  %v65_v62 = vld [vmem:[%s6890_s0 + $0x140] sm:$0xff]  ;;  %v66_v63 = vld [vmem:[%s6890_s0 + $0x148] sm:$0xff]  ;;  %v4403_v0 = vld [vmem:[%s6893_s3 + $0x10] sm:$0xff]  }
  0x44   :  { %1283 = vmatpush1.bf16.msra.mxu1 %v4377_v1  ;;  %2201 = vmatprep.subr.bf16.mxu0 %v4709_v3  ;;  %v117_v1 = vpack.c.bf16 %v66_v63, %v65_v62  ;;  %v67_v2 = vld [vmem:[%s6890_s0 + $0x150] sm:$0xff]  ;;  %v68_v4 = vld [vmem:[%s6890_s0 + $0x158] sm:$0xff]  ;;  %v4406_v14 = vld [vmem:[%s6893_s3 + $0x28] sm:$0xff]  }
  0x45   :  { %1284 = vmatprep.subr.bf16.mxu1 %v4382_v6  ;;  %v118_v6 = vpack.c.bf16 %v68_v4, %v67_v2  ;;  %v71_v10 = vld [vmem:[%s6890_s0 + $0x170] sm:$0xff]  ;;  %v72_v11 = vld [vmem:[%s6890_s0 + $0x178] sm:$0xff] }
  0x46   :  { %v120_v13 = vpack.c.bf16 %v72_v11, %v71_v10  ;;  %v4408_v23 = vld [vmem:[%s6893_s3 + $0x38] sm:$0xff]   ;;  %v4410_v10 = vld [vmem:[%s6893_s3 + $0x48] sm:$0xff]  }
  0x47   :  { %4156 = vmatmul.mubr.msk.bf16.gmra.mrb[20].mxu1 %vm158_vm1, %v126_v7  ;;  %2202 = vmatpush1.bf16.msra.mxu0 %v4402_v57  ;;  %v69_v7 = vld [vmem:[%s6890_s0 + $0x160] sm:$0xff] }
  0x48   :  { %1285 = vmatpush1.bf16.msra.mxu1 %v4380_v8  ;;  %594 = vmatprep.mubr.bf16.mxu1 %v4709_v3  ;;  %v70_v8 = vld [vmem:[%s6890_s0 + $0x168] sm:$0xff] }
  0x49   :  { %1286 = vmatprep.subr.bf16.mxu1 %v4385_v9  ;;  %2203 = vmatprep.subr.bf16.mxu0 %v4709_v3  ;;  %v119_v9 = vpack.c.bf16 %v70_v8, %v69_v7 }
  0x4a   :  { %4135 = vmatmul.mubr.msk.bf16.gmra.mrb[32].mxu0 %vm158_vm1, %v105_v5  ;;  %v4404_v5 = vld [vmem:[%s6893_s3 + $0x18] sm:$0xff]  }
  0x4b   :  { %384 = vmatprep.mubr.bf16.mxu0 %v4709_v3  ;;  %2204 = vmatpush1.bf16.msra.mxu0 %v4403_v0 }
  0x4c   :  { %1287 = vmatpush1.bf16.msra.mxu1 %v4383_v12  ;;  %2205 = vmatprep.subr.bf16.mxu0 %v4709_v3  ;;  %v4405_v12 = vld [vmem:[%s6893_s3 + $0x20] sm:$0xff]  }
  0x4d   :  { %1288 = vmatprep.subr.bf16.mxu1 %v4388_v16 }
  0x4f   :  { %4157 = vmatmul.mubr.msk.bf16.gmra.mrb[24].mxu1 %vm158_vm1, %v127_v17  ;;  %2206 = vmatpush1.bf16.msra.mxu0 %v4404_v5  ;;  %v4407_v17 = vld [vmem:[%s6893_s3 + $0x30] sm:$0xff]  }
  0x50   :  { %1289 = vmatpush1.bf16.msra.mxu1 %v4386_v18  ;;  %604 = vmatprep.mubr.bf16.mxu1 %v4709_v3 }
  0x51   :  { %1290 = vmatprep.subr.bf16.mxu1 %v4391_v19  ;;  %2207 = vmatprep.subr.bf16.mxu0 %v4709_v3  ;;  %v89_v19 = vld [vmem:[%s6894_s4] ss:$2 sm:$0x3] }
  0x52   :  { %4136 = vmatmul.mubr.msk.bf16.gmra.mrb[36].mxu0 %vm158_vm1, %v106_v15  ;;  %v133_v15 = vlaneseq }
  0x53   :  { %394 = vmatprep.mubr.bf16.mxu0 %v4709_v3  ;;  %2208 = vmatpush1.bf16.msra.mxu0 %v4405_v12 }
  0x54   :  { %1291 = vmatpush1.bf16.msra.mxu1 %v4389_v22  ;;  %2209 = vmatprep.subr.bf16.mxu0 %v4709_v3  ;;  %v5134_v16 = vshrl.u32 %v133_v15, 7 }
  0x55   :  { %1292 = vmatprep.subr.bf16.mxu1 %v4394_v26 }
  0x56   :  { %6925 = vst [vmem:[#allocation5_spill] sm:$0xff] %v5134_v16  ;;  %v6898_v18 = vsub.s32 0, %v5134_v16  ;;  %v6897_v20 = vsub.s32 1, %v5134_v16 }
  0x57   :  { %4158 = vmatmul.mubr.msk.bf16.gmra.mrb[28].mxu1 %vm158_vm1, %v128_v27  ;;  %2210 = vmatpush1.bf16.msra.mxu0 %v4406_v14 }
  0x58   :  { %1293 = vmatpush1.bf16.msra.mxu1 %v4392_v28  ;;  %2211 = vmatprep.subr.bf16.mxu0 %v4709_v3  ;;  %v5147_v21 = vrot.slane %v89_v19, %v6898_v18  ;;  %v5151_v22 = vrot.slane %v89_v19, %v6897_v20 }
  0x59   :  { %1294 = vmatprep.subr.bf16.mxu1 %v4397_v32 }
  0x5a   :  { %4137 = vmatmul.mubr.msk.bf16.gmra.mrb[40].mxu0 %vm158_vm1, %v107_v25 }
  0x5b   :  { %404 = vmatprep.mubr.bf16.mxu0 %v4709_v3  ;;  %2212 = vmatpush1.bf16.msra.mxu0 %v4407_v17 }
  0x5c   :  { %1295 = vmatpush1.bf16.msra.mxu1 %v4395_v33  ;;  %2213 = vmatprep.subr.bf16.mxu0 %v4709_v3 }
  0x5d   :  { %1296 = vmatprep.subr.bf16.mxu1 %v4400_v36 }
  0x5f   :  { %2214 = vmatpush1.bf16.msra.mxu0 %v4408_v23 }
  0x60   :  { %1297 = vmatpush1.bf16.msra.mxu1 %v4398_v37  ;;  %2215 = vmatprep.subr.bf16.mxu0 %v4709_v3 }
  0x62   :  { %4138 = vmatmul.mubr.msk.bf16.gmra.mrb[44].mxu0 %vm158_vm1, %v108_v31 }
  0x63   :  { %414 = vmatprep.mubr.bf16.mxu0 %v4709_v3 }
  0x6a   :  { %4139 = vmatmul.mubr.msk.bf16.gmra.mrb[48].mxu0 %vm158_vm1, %v109_v38 }
  0x6b   :  { %424 = vmatprep.mubr.bf16.mxu0 %v4709_v3 }
  0x72   :  { %4140 = vmatmul.mubr.msk.bf16.gmra.mrb[52].mxu0 %vm158_vm1, %v110_v41 }
  0x73   :  { %434 = vmatprep.mubr.bf16.mxu0 %v4709_v3 }
  0x7a   :  { %4141 = vmatmul.mubr.msk.bf16.gmra.mrb[56].mxu0 %vm158_vm1, %v111_v44 }
  0x7b   :  { %444 = vmatprep.mubr.bf16.mxu0 %v4709_v3 }
  0x82   :  { %4142 = vmatmul.mubr.msk.bf16.gmra.mrb[60].mxu0 %vm158_vm1, %v112_v47 }
  0x83   :  { %454 = vmatprep.mubr.bf16.mxu0 %v4709_v3 }
  0x8a   :  { %4143 = vmatmul.mubr.msk.bf16.gmra.mrb[64].mxu0 %vm158_vm1, %v113_v50 }
  0x8b   :  { %464 = vmatprep.mubr.bf16.mxu0 %v4709_v3 }
  0x92   :  { %4144 = vmatmul.mubr.msk.bf16.gmra.mrb[68].mxu0 %vm158_vm1, %v114_v54  ;;  %v4409_v54 = vld [vmem:[%s6893_s3 + $0x40] sm:$0xff]  }
  0x93   :  { %474 = vmatprep.mubr.bf16.mxu0 %v4709_v3  ;;  %2216 = vmatpush1.bf16.msra.mxu0 %v4409_v54 }
  0x94   :  { %2217 = vmatprep.subr.bf16.mxu0 %v4709_v3 }
  0x97   :  { %2218 = vmatpush1.bf16.msra.mxu0 %v4410_v10 }
  0x98   :  { %2219 = vmatprep.subr.bf16.mxu0 %v4709_v3 }
  0x9a   :  { %4145 = vmatmul.mubr.msk.bf16.gmra.mrb[72].mxu0 %vm158_vm1, %v115_v58 }
  0x9b   :  { %484 = vmatprep.mubr.bf16.mxu0 %v4709_v3 }
  0xa2   :  { %4146 = vmatmul.mubr.msk.bf16.gmra.mrb[76].mxu0 %vm158_vm1, %v116_v61 }
  0xa3   :  { %494 = vmatprep.mubr.bf16.mxu0 %v4709_v3 }
  0xaa   :  { %4147 = vmatmul.mubr.msk.bf16.gmra.mrb[80].mxu0 %vm158_vm1, %v117_v1 }
  0xab   :  { %504 = vmatprep.mubr.bf16.mxu0 %v4709_v3 }
  0xb2   :  { %4148 = vmatmul.mubr.msk.bf16.gmra.mrb[84].mxu0 %vm158_vm1, %v118_v6 }
  0xb3   :  { %514 = vmatprep.mubr.bf16.mxu0 %v4709_v3 }
  0xba   :  { %4149 = vmatmul.mubr.msk.bf16.gmra.mrb[88].mxu0 %vm158_vm1, %v119_v9 }
  0xbb   :  { %524 = vmatprep.mubr.bf16.mxu0 %v4709_v3 }
  0xc2   :  { %4150 = vmatmul.mubr.msk.bf16.gmra.mrb[92].mxu0 %vm158_vm1, %v120_v13 }
  0xdd   :  { %v296_v24 = vpop.f32.mrb[0].mxu0 }
  0xde   :  { %v297_v25 = vadd.f32 %v296_v24, %v5147_v21  ;;  %v298_v26 = vpop.f32.mrb[1].mxu0 }
  0xdf   :  { %v299_v27 = vadd.f32 %v298_v26, %v5151_v22  ;;  %v300_v28 = vpop.f32.mrb[2].mxu0 }
  0xe0   :  { %v743_v29 = vmul.f32 0.01, %v297_v25  ;;  %v301_v30 = vadd.f32 %v300_v28, %v5147_v21  ;;  %v302_v31 = vpop.f32.mrb[3].mxu0  ;;  %vm615_vm2 = vcmp.gt.f32.partialorder %v297_v25, 0.0 }
  0xe1   :  { %v744_v32 = vmul.f32 0.01, %v299_v27  ;;  %v303_v33 = vadd.f32 %v302_v31, %v5151_v22  ;;  %vm616_vm3 = vcmp.gt.f32.partialorder %v299_v27, 0.0 }
  0xe2   :  { %vm617_vm4 = vcmp.gt.f32.partialorder %v301_v30, 0.0  ;;  %v745_v34 = vmul.f32 0.01, %v301_v30  ;;  %v871_v36 = vsel %vm615_vm2, %v297_v25, %v743_v29 }
  0xe3   :  { %vm618_vm5 = vcmp.gt.f32.partialorder %v303_v33, 0.0  ;;  %v746_v35 = vmul.f32 0.01, %v303_v33  ;;  %v872_v40 = vsel %vm616_vm3, %v299_v27, %v744_v32  ;;  %v536_v27 = vpop.f32.mrb[0].mxu1 }
  0xe4   :  { %v873_v37 = vsel %vm617_vm4, %v301_v30, %v745_v34  ;;  %v538_v31 = vpop.f32.mrb[1].mxu1 }
  0xe5   :  { %v999_v38 = vpack.c.bf16 %v873_v37, %v871_v36  ;;  %v306_v39 = vpop.f32.mrb[4].mxu0  ;;  %v874_v41 = vsel %vm618_vm5, %v303_v33, %v746_v35  ;;  %v540_v34 = vpop.f32.mrb[2].mxu1 }
  0xe6   :  { %v307_v42 = vadd.f32 %v306_v39, %v5147_v21  ;;  %v308_v43 = vpop.f32.mrb[5].mxu0  ;;  %v1000_v44 = vpack.c.bf16 %v874_v41, %v872_v40  ;;  %v542_v36 = vpop.f32.mrb[3].mxu1 }
  0xe7   :  { %v309_v45 = vadd.f32 %v308_v43, %v5151_v22  ;;  %v310_v46 = vpop.f32.mrb[6].mxu0 }
  0xe8   :  { %v747_v47 = vmul.f32 0.01, %v307_v42  ;;  %v311_v48 = vadd.f32 %v310_v46, %v5147_v21  ;;  %v312_v49 = vpop.f32.mrb[7].mxu0  ;;  %1298 = vmatprep.mubr.bf16.mxu1 %v1000_v44  ;;  %vm619_vm6 = vcmp.gt.f32.partialorder %v307_v42, 0.0 }
  0xe9   :  { %v748_v50 = vmul.f32 0.01, %v309_v45  ;;  %v313_v51 = vadd.f32 %v312_v49, %v5151_v22  ;;  %1299 = vmatmul.mubr.bf16.vlgmr.msra.gmra.mrb[32].mxu1 %v999_v38  ;;  %vm620_vm7 = vcmp.gt.f32.partialorder %v309_v45, 0.0  ;;  %v5183_v49 = vpop.f32.mrb[4].mxu1 }
  0xea   :  { %vm621_vm8 = vcmp.gt.f32.partialorder %v311_v48, 0.0  ;;  %v749_v52 = vmul.f32 0.01, %v311_v48  ;;  %v875_v55 = vsel %vm619_vm6, %v307_v42, %v747_v47 }
  0xeb   :  { %vm622_vm9 = vcmp.gt.f32.partialorder %v313_v51, 0.0  ;;  %v750_v53 = vmul.f32 0.01, %v313_v51  ;;  %v876_v58 = vsel %vm620_vm7, %v309_v45, %v748_v50 }
  0xec   :  { %v877_v56 = vsel %vm621_vm8, %v311_v48, %v749_v52 }
  0xed   :  { %v316_v57 = vpop.f32.mrb[8].mxu0  ;;  %v878_v59 = vsel %vm622_vm9, %v313_v51, %v750_v53  ;;  %v1001_v60 = vpack.c.bf16 %v877_v56, %v875_v55  ;;  %v5186_v53 = vpop.f32.mrb[5].mxu1  ;;  %v537_v56 = vadd.f32 %v536_v27, %v5147_v21 }
  0xee   :  { %v317_v61 = vadd.f32 %v316_v57, %v5147_v21  ;;  %v318_v62 = vpop.f32.mrb[9].mxu0  ;;  %v1002_v63 = vpack.c.bf16 %v878_v59, %v876_v58  ;;  %v5190_v57 = vpop.f32.mrb[6].mxu1  ;;  %v539_v59 = vadd.f32 %v538_v31, %v5151_v22 }
  0xef   :  { %v319_v0 = vadd.f32 %v318_v62, %v5151_v22  ;;  %v320_v1 = vpop.f32.mrb[10].mxu0  ;;  %v541_v62 = vadd.f32 %v540_v34, %v5147_v21  ;;  %vm711_vm6 = vcmp.gt.f32.partialorder %v537_v56, 0.0 }
  0xf0   :  { %v751_v2 = vmul.f32 0.01, %v317_v61  ;;  %v321_v4 = vadd.f32 %v320_v1, %v5147_v21  ;;  %v322_v5 = vpop.f32.mrb[11].mxu0  ;;  %1308 = vmatprep.mubr.bf16.mxu1 %v1002_v63  ;;  %vm623_vm10 = vcmp.gt.f32.partialorder %v317_v61, 0.0  ;;  %v4411_v63 = vld [vmem:[%s6893_s3 + $0x50] sm:$0xff]   ;;  %vm712_vm7 = vcmp.gt.f32.partialorder %v539_v59, 0.0 }
  0xf1   :  { %v752_v6 = vmul.f32 0.01, %v319_v0  ;;  %v323_v7 = vadd.f32 %v322_v5, %v5151_v22  ;;  %1309 = vmatmul.mubr.bf16.gmra.mrb[36].mxu1 %v1001_v60  ;;  %vm624_vm11 = vcmp.gt.f32.partialorder %v319_v0, 0.0  ;;  %v5193_v60 = vpop.f32.mrb[7].mxu1  ;;  %2220 = vmatpush1.bf16.msra.mxu0 %v4411_v63  ;;  %vm713_vm8 = vcmp.gt.f32.partialorder %v541_v62, 0.0 }
  0xf2   :  { %vm625_vm12 = vcmp.gt.f32.partialorder %v321_v4, 0.0  ;;  %v753_v8 = vmul.f32 0.01, %v321_v4  ;;  %v879_v11 = vsel %vm623_vm10, %v317_v61, %v751_v2  ;;  %v543_v2 = vadd.f32 %v542_v36, %v5151_v22  ;;  %2221 = vmatprep.subr.bf16.mxu0 %v4709_v3 }
  0xf3   :  { %vm626_vm13 = vcmp.gt.f32.partialorder %v323_v7, 0.0  ;;  %v754_v9 = vmul.f32 0.01, %v323_v7  ;;  %v880_v14 = vsel %vm624_vm11, %v319_v0, %v752_v6 }
  0xf4   :  { %v881_v12 = vsel %vm625_vm12, %v321_v4, %v753_v8  ;;  %vm714_vm10 = vcmp.gt.f32.partialorder %v543_v2, 0.0 }
  0xf5   :  { %v326_v13 = vpop.f32.mrb[12].mxu0  ;;  %v882_v15 = vsel %vm626_vm13, %v323_v7, %v754_v9  ;;  %v1003_v17 = vpack.c.bf16 %v881_v12, %v879_v11  ;;  %v839_v11 = vmul.f32 0.01, %v537_v56 }
  0xf6   :  { %v327_v19 = vadd.f32 %v326_v13, %v5147_v21  ;;  %v328_v23 = vpop.f32.mrb[13].mxu0  ;;  %v1004_v24 = vpack.c.bf16 %v882_v15, %v880_v14  ;;  %v840_v14 = vmul.f32 0.01, %v539_v59  ;;  %v841_v15 = vmul.f32 0.01, %v541_v62 }
  0xf7   :  { %v329_v25 = vadd.f32 %v328_v23, %v5151_v22  ;;  %v330_v26 = vpop.f32.mrb[14].mxu0 }
  0xf8   :  { %v755_v28 = vmul.f32 0.01, %v327_v19  ;;  %v331_v29 = vadd.f32 %v330_v26, %v5147_v21  ;;  %v332_v30 = vpop.f32.mrb[15].mxu0  ;;  %1318 = vmatprep.mubr.bf16.mxu1 %v1004_v24  ;;  %vm627_vm14 = vcmp.gt.f32.partialorder %v327_v19, 0.0  ;;  %v5217_v34 = vsel %vm712_vm7, %v539_v59, %v840_v14 }
  0xf9   :  { %v756_v32 = vmul.f32 0.01, %v329_v25  ;;  %v333_v33 = vadd.f32 %v332_v30, %v5151_v22  ;;  %1319 = vmatmul.mubr.bf16.gmra.mrb[40].mxu1 %v1003_v17  ;;  %vm628_vm15 = vcmp.gt.f32.partialorder %v329_v25, 0.0 }
  0xfa   :  { %vm629_vm0 = vcmp.gt.f32.partialorder %v331_v29, 0.0  ;;  %v757_v35 = vmul.f32 0.01, %v331_v29  ;;  %v883_v38 = vsel %vm627_vm14, %v327_v19, %v755_v28 }
  0xfb   :  { %vm630_vm1 = vcmp.gt.f32.partialorder %v333_v33, 0.0  ;;  %v758_v37 = vmul.f32 0.01, %v333_v33  ;;  %v884_v41 = vsel %vm628_vm15, %v329_v25, %v756_v32  ;;  %v842_v25 = vmul.f32 0.01, %v543_v2 }
  0xfc   :  { %v885_v39 = vsel %vm629_vm0, %v331_v29, %v757_v35  ;;  %v5220_v35 = vsel %vm711_vm6, %v537_v56, %v839_v11 }
  0xfd   :  { %v336_v40 = vpop.f32.mrb[16].mxu0  ;;  %v886_v42 = vsel %vm630_vm1, %v333_v33, %v758_v37  ;;  %v1005_v43 = vpack.c.bf16 %v885_v39, %v883_v38  ;;  %v4412_v33 = vld [vmem:[%s6893_s3 + $0x58] sm:$0xff]   ;;  %6926 = vst [vmem:[#allocation6_spill] sm:$0xff] %v5220_v35  ;;  %v5223_v38 = vsel %vm714_vm10, %v543_v2, %v842_v25  ;;  %v5226_v39 = vsel %vm713_vm8, %v541_v62, %v841_v15 }
  0xfe   :  { %v337_v44 = vadd.f32 %v336_v40, %v5147_v21  ;;  %v338_v45 = vpop.f32.mrb[17].mxu0  ;;  %v1006_v46 = vpack.c.bf16 %v886_v42, %v884_v41  ;;  %2222 = vmatpush1.bf16.msra.mxu0 %v4412_v33  ;;  %v5243_v62 = vadd.f32 %v5183_v49, %v5147_v21  ;;  %v553_v49 = vadd.f32 %v5193_v60, %v5151_v22 }
  0xff   :  { %v339_v47 = vadd.f32 %v338_v45, %v5151_v22  ;;  %v340_v48 = vpop.f32.mrb[18].mxu0  ;;  %2223 = vmatprep.subr.bf16.mxu0 %v4709_v3 }
 0x100   :  { %v759_v50 = vmul.f32 0.01, %v337_v44  ;;  %v341_v51 = vadd.f32 %v340_v48, %v5147_v21  ;;  %v342_v52 = vpop.f32.mrb[19].mxu0  ;;  %1328 = vmatprep.mubr.bf16.mxu1 %v1006_v46  ;;  %vm631_vm2 = vcmp.gt.f32.partialorder %v337_v44, 0.0  ;;  %vm715_vm8 = vcmp.gt.f32.partialorder %v5243_v62, 0.0 }
 0x101   :  { %v760_v54 = vmul.f32 0.01, %v339_v47  ;;  %v343_v55 = vadd.f32 %v342_v52, %v5151_v22  ;;  %1329 = vmatmul.mubr.bf16.gmra.mrb[44].mxu1 %v1005_v43  ;;  %vm632_vm3 = vcmp.gt.f32.partialorder %v339_v47, 0.0 }
 0x102   :  { %vm633_vm4 = vcmp.gt.f32.partialorder %v341_v51, 0.0  ;;  %v761_v58 = vmul.f32 0.01, %v341_v51  ;;  %v887_v0 = vsel %vm631_vm2, %v337_v44, %v759_v50  ;;  %v5203_v17 = vpop.f32.mrb[8].mxu1 }
 0x103   :  { %vm634_vm5 = vcmp.gt.f32.partialorder %v343_v55, 0.0  ;;  %v762_v61 = vmul.f32 0.01, %v343_v55  ;;  %v888_v5 = vsel %vm632_vm3, %v339_v47, %v760_v54  ;;  %v5207_v28 = vpop.f32.mrb[9].mxu1  ;;  %vm718_vm3 = vcmp.gt.f32.partialorder %v553_v49, 0.0 }
 0x104   :  { %v889_v1 = vsel %vm633_vm4, %v341_v51, %v761_v58  ;;  %v5209_v30 = vpop.f32.mrb[10].mxu1 }
 0x105   :  { %v346_v4 = vpop.f32.mrb[20].mxu0  ;;  %v890_v6 = vsel %vm634_vm5, %v343_v55, %v762_v61  ;;  %v1007_v7 = vpack.c.bf16 %v889_v1, %v887_v0  ;;  %v5211_v32 = vpop.f32.mrb[11].mxu1  ;;  %v549_v1 = vadd.f32 %v5186_v53, %v5151_v22  ;;  %v5259_v53 = vadd.f32 %v5203_v17, %v5147_v21 }
 0x106   :  { %v347_v8 = vadd.f32 %v346_v4, %v5147_v21  ;;  %v348_v9 = vpop.f32.mrb[21].mxu0  ;;  %v1008_v10 = vpack.c.bf16 %v890_v6, %v888_v5  ;;  %v5253_v5 = vadd.f32 %v5190_v57, %v5147_v21  ;;  %v5263_v57 = vmul.f32 0.01, %v5243_v62 }
 0x107   :  { %v349_v12 = vadd.f32 %v348_v9, %v5151_v22  ;;  %v350_v13 = vpop.f32.mrb[22].mxu0  ;;  %v844_v15 = vmul.f32 0.01, %v549_v1  ;;  %vm716_vm2 = vcmp.gt.f32.partialorder %v549_v1, 0.0 }
 0x108   :  { %v763_v19 = vmul.f32 0.01, %v347_v8  ;;  %v351_v23 = vadd.f32 %v350_v13, %v5147_v21  ;;  %v352_v24 = vpop.f32.mrb[23].mxu0  ;;  %1338 = vmatprep.mubr.bf16.mxu1 %v1008_v10  ;;  %vm635_vm9 = vcmp.gt.f32.partialorder %v347_v8, 0.0 }
 0x109   :  { %v764_v26 = vmul.f32 0.01, %v349_v12  ;;  %v353_v27 = vadd.f32 %v352_v24, %v5151_v22  ;;  %1339 = vmatmul.mubr.bf16.gmra.mrb[48].mxu1 %v1007_v7  ;;  %vm636_vm11 = vcmp.gt.f32.partialorder %v349_v12, 0.0 }
 0x10a   :  { %vm637_vm12 = vcmp.gt.f32.partialorder %v351_v23, 0.0  ;;  %v765_v29 = vmul.f32 0.01, %v351_v23  ;;  %v891_v36 = vsel %vm635_vm9, %v347_v8, %v763_v19  ;;  %v5231_v50 = vpop.f32.mrb[12].mxu1  ;;  %vm717_vm9 = vcmp.gt.f32.partialorder %v5253_v5, 0.0 }
 0x10b   :  { %vm638_vm13 = vcmp.gt.f32.partialorder %v353_v27, 0.0  ;;  %v766_v31 = vmul.f32 0.01, %v353_v27  ;;  %v892_v41 = vsel %vm636_vm11, %v349_v12, %v764_v26  ;;  %v5238_v58 = vpop.f32.mrb[13].mxu1 }
 0x10c   :  { %v893_v37 = vsel %vm637_vm12, %v351_v23, %v765_v29  ;;  %v5245_v63 = vpop.f32.mrb[14].mxu1  ;;  %v5267_v23 = vmul.f32 0.01, %v5253_v5  ;;  %v5274_v29 = vadd.f32 %v5207_v28, %v5151_v22 }
 0x10d   :  { %v356_v40 = vpop.f32.mrb[24].mxu0  ;;  %v894_v42 = vsel %vm638_vm13, %v353_v27, %v766_v31  ;;  %v1009_v43 = vpack.c.bf16 %v893_v37, %v891_v36  ;;  %v5249_v2 = vpop.f32.mrb[15].mxu1  ;;  %v846_v27 = vmul.f32 0.01, %v553_v49  ;;  %v5278_v36 = vmul.f32 0.01, %v5259_v53 }
 0x10e   :  { %v357_v44 = vadd.f32 %v356_v40, %v5147_v21  ;;  %v358_v45 = vpop.f32.mrb[25].mxu0  ;;  %v1010_v46 = vpack.c.bf16 %v894_v42, %v892_v41  ;;  %v5282_v41 = vadd.f32 %v5209_v30, %v5147_v21  ;;  %v5294_v30 = vsel %vm716_vm2, %v549_v1, %v844_v15 }
 0x10f   :  { %v359_v47 = vadd.f32 %v358_v45, %v5151_v22  ;;  %v360_v48 = vpop.f32.mrb[26].mxu0  ;;  %6927 = vst [vmem:[#allocation7_spill] sm:$0xff] %v5294_v30  ;;  %v5306_v1 = vmul.f32 0.01, %v5274_v29  ;;  %v5330_v15 = vadd.f32 %v5249_v2, %v5151_v22 }
 0x110   :  { %v767_v54 = vmul.f32 0.01, %v357_v44  ;;  %v361_v55 = vadd.f32 %v360_v48, %v5147_v21  ;;  %v362_v56 = vpop.f32.mrb[27].mxu0  ;;  %1348 = vmatprep.mubr.bf16.mxu1 %v1010_v46  ;;  %vm639_vm14 = vcmp.gt.f32.partialorder %v357_v44, 0.0  ;;  %v5297_v48 = vsel %vm718_vm3, %v553_v49, %v846_v27 }
 0x111   :  { %v768_v59 = vmul.f32 0.01, %v359_v47  ;;  %v363_v61 = vadd.f32 %v362_v56, %v5151_v22  ;;  %1349 = vmatmul.mubr.bf16.gmra.mrb[52].mxu1 %v1009_v43  ;;  %vm640_vm15 = vcmp.gt.f32.partialorder %v359_v47, 0.0  ;;  %v5286_v43 = vadd.f32 %v5211_v32, %v5151_v22  ;;  %6928 = vst [vmem:[#allocation8_spill] sm:$0xff] %v5297_v48 }
 0x112   :  { %vm641_vm0 = vcmp.gt.f32.partialorder %v361_v55, 0.0  ;;  %v769_v0 = vmul.f32 0.01, %v361_v55  ;;  %v895_v6 = vsel %vm639_vm14, %v357_v44, %v767_v54  ;;  %v5269_v24 = vpop.f32.mrb[16].mxu1  ;;  %v4413_v44 = vld [vmem:[%s6893_s3 + $0x60] sm:$0xff]  }
 0x113   :  { %vm642_vm1 = vcmp.gt.f32.partialorder %v363_v61, 0.0  ;;  %v770_v4 = vmul.f32 0.01, %v363_v61  ;;  %v896_v9 = vsel %vm640_vm15, %v359_v47, %v768_v59  ;;  %v578_v37 = vpop.f32.mrb[17].mxu1  ;;  %v5302_v59 = vadd.f32 %v5231_v50, %v5147_v21  ;;  %2224 = vmatpush1.bf16.msra.mxu0 %v4413_v44 }
 0x114   :  { %v897_v7 = vsel %vm641_vm0, %v361_v55, %v769_v0  ;;  %v580_v42 = vpop.f32.mrb[18].mxu1  ;;  %v5309_v49 = vmul.f32 0.01, %v5282_v41  ;;  %2225 = vmatprep.subr.bf16.mxu0 %v4709_v3  ;;  %v5318_v50 = vadd.f32 %v5238_v58, %v5151_v22  ;;  %vm720_vm0 = vcmp.gt.f32.partialorder %v5274_v29, 0.0 }
 0x115   :  { %v366_v8 = vpop.f32.mrb[28].mxu0  ;;  %v898_v10 = vsel %vm642_vm1, %v363_v61, %v770_v4  ;;  %v1011_v11 = vpack.c.bf16 %v897_v7, %v895_v6  ;;  %v582_v45 = vpop.f32.mrb[19].mxu1  ;;  %vm722_vm3 = vcmp.gt.f32.partialorder %v5286_v43, 0.0 }
 0x116   :  { %v367_v12 = vadd.f32 %v366_v8, %v5147_v21  ;;  %v368_v13 = vpop.f32.mrb[29].mxu0  ;;  %v1012_v14 = vpack.c.bf16 %v898_v10, %v896_v9  ;;  %v5314_v8 = vmul.f32 0.01, %v5286_v43 }
 0x117   :  { %v369_v60 = vadd.f32 %v368_v13, %v5151_v22  ;;  %v370_v19 = vpop.f32.mrb[30].mxu0 }
 0x118   :  { %v771_v17 = vmul.f32 0.01, %v367_v12  ;;  %v371_v25 = vadd.f32 %v370_v19, %v5147_v21  ;;  %v372_v26 = vpop.f32.mrb[31].mxu0  ;;  %1358 = vmatprep.mubr.bf16.mxu1 %v1012_v14  ;;  %vm643_vm4 = vcmp.gt.f32.partialorder %v367_v12, 0.0  ;;  %v5326_v14 = vadd.f32 %v5245_v63, %v5147_v21 }
 0x119   :  { %v772_v31 = vmul.f32 0.01, %v369_v60  ;;  %v373_v33 = vadd.f32 %v372_v26, %v5151_v22  ;;  %1359 = vmatmul.mubr.bf16.gmra.mrb[56].mxu1 %v1011_v11  ;;  %vm644_vm5 = vcmp.gt.f32.partialorder %v369_v60, 0.0  ;;  %v5338_v63 = vadd.f32 %v5269_v24, %v5147_v21 }
 0x11a   :  { %vm645_vm6 = vcmp.gt.f32.partialorder %v371_v25, 0.0  ;;  %v773_v40 = vmul.f32 0.01, %v371_v25  ;;  %v899_v46 = vsel %vm643_vm4, %v367_v12, %v771_v17  ;;  %v586_v9 = vpop.f32.mrb[20].mxu1  ;;  %v5334_v17 = vmul.f32 0.01, %v5302_v59 }
 0x11b   :  { %vm646_vm7 = vcmp.gt.f32.partialorder %v373_v33, 0.0  ;;  %v774_v28 = vmul.f32 0.01, %v373_v33  ;;  %v900_v32 = vsel %vm644_vm5, %v369_v60, %v772_v31  ;;  %v588_v58 = vpop.f32.mrb[21].mxu1  ;;  %v5341_v31 = vadd.f32 %v578_v37, %v5151_v22 }
 0x11c   :  { %v901_v47 = vsel %vm645_vm6, %v371_v25, %v773_v40  ;;  %v590_v25 = vpop.f32.mrb[22].mxu1  ;;  %v4414_v40 = vld [vmem:[%s6893_s3 + $0x68] sm:$0xff]   ;;  %v5354_v24 = vadd.f32 %v582_v45, %v5151_v22  ;;  %vm719_vm4 = vcmp.gt.f32.partialorder %v5259_v53, 0.0  ;;  %vm721_vm5 = vcmp.gt.f32.partialorder %v5282_v41, 0.0 }
 0x11d   :  { %v376_v54 = vpop.f32.mrb[32].mxu0  ;;  %v902_v55 = vsel %vm646_vm7, %v373_v33, %v774_v28  ;;  %v1013_v56 = vpack.c.bf16 %v901_v47, %v899_v46  ;;  %v592_v27 = vpop.f32.mrb[23].mxu1  ;;  %v5344_v33 = vadd.f32 %v580_v42, %v5147_v21  ;;  %v5351_v46 = vmul.f32 0.01, %v5318_v50  ;;  %2226 = vmatpush1.bf16.msra.mxu0 %v4414_v40 }
 0x11e   :  { %v377_v61 = vadd.f32 %v376_v54, %v5147_v21  ;;  %v378_v0 = vpop.f32.mrb[33].mxu0  ;;  %v1014_v4 = vpack.c.bf16 %v902_v55, %v900_v32  ;;  %v5357_v42 = vmul.f32 0.01, %v5326_v14  ;;  %2227 = vmatprep.subr.bf16.mxu0 %v4709_v3  ;;  %v5385_v40 = vadd.f32 %v586_v9, %v5147_v21  ;;  %v4415_v9 = vld [vmem:[%s6893_s3 + $0x80] sm:$0xff]  }
 0x11f   :  { %v379_v6 = vadd.f32 %v378_v0, %v5151_v22  ;;  %v380_v7 = vpop.f32.mrb[34].mxu0  ;;  %4260 = vmatprep.subr.bf16.mxu1 %v4415_v9  ;;  %vm724_vm7 = vcmp.gt.f32.partialorder %v5318_v50, 0.0 }
 0x120   :  { %v775_v11 = vmul.f32 0.01, %v377_v61  ;;  %v381_v12 = vadd.f32 %v380_v7, %v5147_v21  ;;  %v382_v13 = vpop.f32.mrb[35].mxu0  ;;  %1368 = vmatprep.mubr.bf16.mxu1 %v1014_v4  ;;  %vm647_vm10 = vcmp.gt.f32.partialorder %v377_v61, 0.0  ;;  %v5364_v4 = vmul.f32 0.01, %v5338_v63  ;;  %4261 = vmatpush3.bf16.msra.mxu1 %v4415_v9 }
 0x121   :  { %v776_v60 = vmul.f32 0.01, %v379_v6  ;;  %v383_v19 = vadd.f32 %v382_v13, %v5151_v22  ;;  %1369 = vmatmul.mubr.bf16.gmra.mrb[60].mxu1 %v1013_v56  ;;  %vm648_vm11 = vcmp.gt.f32.partialorder %v379_v6, 0.0  ;;  %v5369_v7 = vmul.f32 0.01, %v5341_v31 }
 0x122   :  { %vm649_vm12 = vcmp.gt.f32.partialorder %v381_v12, 0.0  ;;  %v777_v26 = vmul.f32 0.01, %v381_v12  ;;  %v903_v28 = vsel %vm647_vm10, %v377_v61, %v775_v11  ;;  %v5361_v61 = vmul.f32 0.01, %v5330_v15 }
 0x123   :  { %vm650_vm13 = vcmp.gt.f32.partialorder %v383_v19, 0.0  ;;  %v778_v2 = vmul.f32 0.01, %v383_v19  ;;  %v904_v54 = vsel %vm648_vm11, %v379_v6, %v776_v60  ;;  %v5372_v11 = vmul.f32 0.01, %v5344_v33 }
 0x124   :  { %v905_v44 = vsel %vm649_vm12, %v381_v12, %v777_v26  ;;  %v596_v12 = vpop.f32.mrb[24].mxu1  ;;  %v5378_v13 = vsel %vm715_vm8, %v5243_v62, %v5263_v57  ;;  %v5413_v20 = vmul.f32 0.01, %v5385_v40  ;;  %vm726_vm8 = vcmp.gt.f32.partialorder %v5330_v15, 0.0 }
 0x125   :  { %v386_v47 = vpop.f32.mrb[36].mxu0  ;;  %v906_v37 = vsel %vm650_vm13, %v383_v19, %v778_v2  ;;  %v1015_v32 = vpack.c.bf16 %v905_v44, %v903_v28  ;;  %6929 = vst [vmem:[#allocation9_spill] sm:$0xff] %v5378_v13  ;;  %v5382_v2 = vmul.f32 0.01, %v5354_v24  ;;  %v598_v62 = vpop.f32.mrb[25].mxu1  ;;  %v5416_v18 = vadd.f32 %v596_v12, %v5147_v21 }
 0x126   :  { %v387_v55 = vadd.f32 %v386_v47, %v5147_v21  ;;  %v388_v56 = vpop.f32.mrb[37].mxu0  ;;  %v1016_v0 = vpack.c.bf16 %v906_v37, %v904_v54  ;;  %v5390_v47 = vadd.f32 %v588_v58, %v5151_v22  ;;  %v5393_v54 = vadd.f32 %v590_v25, %v5147_v21  ;;  %v600_v37 = vpop.f32.mrb[26].mxu1 }
 0x127   :  { %v389_v45 = vadd.f32 %v388_v56, %v5151_v22  ;;  %v390_v6 = vpop.f32.mrb[38].mxu0  ;;  %v602_v58 = vpop.f32.mrb[27].mxu1  ;;  %v5409_v25 = vsel %vm717_vm9, %v5253_v5, %v5267_v23  ;;  %v5421_v5 = vadd.f32 %v598_v62, %v5151_v22  ;;  %vm723_vm12 = vcmp.gt.f32.partialorder %v5302_v59, 0.0 }
 0x128   :  { %v779_v60 = vmul.f32 0.01, %v387_v55  ;;  %v391_v19 = vadd.f32 %v390_v6, %v5147_v21  ;;  %v392_v26 = vpop.f32.mrb[39].mxu0  ;;  %1378 = vmatprep.mubr.bf16.mxu1 %v1016_v0  ;;  %vm651_vm14 = vcmp.gt.f32.partialorder %v387_v55, 0.0  ;;  %v5403_v0 = vadd.f32 %v592_v27, %v5151_v22  ;;  %6930 = vst [vmem:[#allocation10_spill] sm:$0xff] %v5409_v25 }
 0x129   :  { %vm652_vm15 = vcmp.gt.f32.partialorder %v389_v45, 0.0  ;;  %v780_v28 = vmul.f32 0.01, %v389_v45  ;;  %v393_v44 = vadd.f32 %v392_v26, %v5151_v22  ;;  %1379 = vmatmul.mubr.bf16.gmra.mrb[64].mxu1 %v1015_v32  ;;  %v4416_v32 = vld [vmem:[%s6893_s3 + $0x70] sm:$0xff]   ;;  %v5425_v12 = vmul.f32 0.01, %v5390_v47 }
 0x12a   :  { %vm653_vm1 = vcmp.gt.f32.partialorder %v391_v19, 0.0  ;;  %v781_v57 = vmul.f32 0.01, %v391_v19  ;;  %v907_v6 = vsel %vm651_vm14, %v387_v55, %v779_v60  ;;  %2228 = vmatpush1.bf16.msra.mxu0 %v4416_v32  ;;  %v5436_v62 = vmul.f32 0.01, %v5403_v0 }
 0x12b   :  { %vm654_vm2 = vcmp.gt.f32.partialorder %v393_v44, 0.0  ;;  %v782_v56 = vmul.f32 0.01, %v393_v44  ;;  %v908_v10 = vsel %vm652_vm15, %v389_v45, %v780_v28  ;;  %2229 = vmatprep.subr.bf16.mxu0 %v4709_v3  ;;  %v5440_v32 = vmul.f32 0.01, %v5416_v18 }
 0x12c   :  { %v909_v26 = vsel %vm653_vm1, %v391_v19, %v781_v57  ;;  %v5443_v3 = vadd.f32 %v600_v37, %v5147_v21  ;;  %vm725_vm13 = vcmp.gt.f32.partialorder %v5326_v14, 0.0  ;;  %vm728_vm14 = vcmp.gt.f32.partialorder %v5341_v31, 0.0 }
 0x12d   :  { %v396_v27 = vpop.f32.mrb[40].mxu0  ;;  %v910_v52 = vsel %vm654_vm2, %v393_v44, %v782_v56  ;;  %v1017_v51 = vpack.c.bf16 %v909_v26, %v907_v6  ;;  %v5433_v44 = vmul.f32 0.01, %v5393_v54  ;;  %v5449_v26 = vmul.f32 0.01, %v5421_v5 }
 0x12e   :  { %v397_v23 = vadd.f32 %v396_v27, %v5147_v21  ;;  %v398_v55 = vpop.f32.mrb[41].mxu0  ;;  %v1018_v60 = vpack.c.bf16 %v910_v52, %v908_v10  ;;  %v606_v52 = vpop.f32.mrb[28].mxu1  ;;  %vm730_vm15 = vcmp.gt.f32.partialorder %v5354_v24, 0.0  ;;  %vm727_vm1 = vcmp.gt.f32.partialorder %v5338_v63, 0.0 }
 0x12f   :  { %v399_v45 = vadd.f32 %v398_v55, %v5151_v22  ;;  %v400_v28 = vpop.f32.mrb[42].mxu0  ;;  %v608_v27 = vpop.f32.mrb[29].mxu1 }
 0x130   :  { %v783_v10 = vmul.f32 0.01, %v397_v23  ;;  %v401_v57 = vadd.f32 %v400_v28, %v5147_v21  ;;  %v402_v9 = vpop.f32.mrb[43].mxu0  ;;  %1388 = vmatprep.mubr.bf16.mxu1 %v1018_v60  ;;  %vm655_vm6 = vcmp.gt.f32.partialorder %v397_v23, 0.0  ;;  %v5452_v60 = vadd.f32 %v602_v58, %v5151_v22  ;;  %v610_v37 = vpop.f32.mrb[30].mxu1 }
 0x131   :  { %v784_v56 = vmul.f32 0.01, %v399_v45  ;;  %v403_v6 = vadd.f32 %v402_v9, %v5151_v22  ;;  %1389 = vmatmul.mubr.bf16.gmra.mrb[68].mxu1 %v1017_v51  ;;  %vm656_vm9 = vcmp.gt.f32.partialorder %v399_v45, 0.0  ;;  %v5457_v51 = vadd.f32 %v606_v52, %v5147_v21  ;;  %v612_v19 = vpop.f32.mrb[31].mxu1 }
 0x132   :  { %vm657_vm10 = vcmp.gt.f32.partialorder %v401_v57, 0.0  ;;  %v785_v55 = vmul.f32 0.01, %v401_v57  ;;  %v5460_v9 = vadd.f32 %v608_v27, %v5151_v22  ;;  %v911_v16 = vsel %vm655_vm6, %v397_v23, %v783_v10 }
 0x133   :  { %vm658_vm11 = vcmp.gt.f32.partialorder %v403_v6, 0.0  ;;  %v786_v28 = vmul.f32 0.01, %v403_v6  ;;  %v5466_v58 = vmul.f32 0.01, %v5443_v3  ;;  %v5472_v52 = vsel %vm720_vm0, %v5274_v29, %v5306_v1 }
 0x134   :  { %v913_v13 = vsel %vm657_vm10, %v401_v57, %v785_v55  ;;  %v912_v27 = vsel %vm656_vm9, %v399_v45, %v784_v56  ;;  %v5476_v23 = vadd.f32 %v610_v37, %v5147_v21  ;;  %v5481_v35 = vmul.f32 0.01, %v5452_v60 }
 0x135   :  { %v406_v25 = vpop.f32.mrb[44].mxu0  ;;  %v914_v30 = vsel %vm658_vm11, %v403_v6, %v786_v28  ;;  %v1019_v48 = vpack.c.bf16 %v913_v13, %v911_v16  ;;  %v5487_v29 = vsel %vm722_vm3, %v5286_v43, %v5314_v8  ;;  %v5492_v13 = vmul.f32 0.01, %v5457_v51 }
 0x136   :  { %v407_v10 = vadd.f32 %v406_v25, %v5147_v21  ;;  %v408_v57 = vpop.f32.mrb[45].mxu0  ;;  %v1020_v55 = vpack.c.bf16 %v914_v30, %v912_v27  ;;  %v5495_v30 = vmul.f32 0.01, %v5460_v9  ;;  %v5498_v25 = vadd.f32 %v612_v19, %v5151_v22 }
 0x137   :  { %v409_v16 = vadd.f32 %v408_v57, %v5151_v22  ;;  %v410_v1 = vpop.f32.mrb[46].mxu0  ;;  %v5502_v43 = vmul.f32 0.01, %v5476_v23  ;;  %v5508_v8 = vsel %vm719_vm4, %v5259_v53, %v5278_v36  ;;  %vm732_vm6 = vcmp.gt.f32.partialorder %v5390_v47, 0.0 }
 0x138   :  { %v787_v45 = vmul.f32 0.01, %v407_v10  ;;  %v411_v56 = vadd.f32 %v410_v1, %v5147_v21  ;;  %v412_v6 = vpop.f32.mrb[47].mxu0  ;;  %1398 = vmatprep.mubr.bf16.mxu1 %v1020_v55  ;;  %6931 = vst [vmem:[#allocation11_spill] sm:$0xff] %v5508_v8  ;;  %vm659_vm2 = vcmp.gt.f32.partialorder %v407_v10, 0.0  ;;  %v5521_v53 = vsel %vm721_vm5, %v5282_v41, %v5309_v49 }
 0x139   :  { %v788_v37 = vmul.f32 0.01, %v409_v16  ;;  %v413_v28 = vadd.f32 %v412_v6, %v5151_v22  ;;  %1399 = vmatmul.mubr.bf16.gmra.mrb[72].mxu1 %v1019_v48  ;;  %vm660_vm10 = vcmp.gt.f32.partialorder %v409_v16, 0.0  ;;  %vm736_vm3 = vcmp.gt.f32.partialorder %v5421_v5, 0.0 }
 0x13a   :  { %vm661_vm11 = vcmp.gt.f32.partialorder %v411_v56, 0.0  ;;  %v789_v27 = vmul.f32 0.01, %v411_v56  ;;  %v5525_v48 = vmul.f32 0.01, %v5498_v25  ;;  %v915_v55 = vsel %vm659_vm2, %v407_v10, %v787_v45 }
 0x13b   :  { %vm662_vm0 = vcmp.gt.f32.partialorder %v413_v28, 0.0  ;;  %v790_v36 = vmul.f32 0.01, %v413_v28  ;;  %vm735_vm4 = vcmp.gt.f32.partialorder %v5416_v18, 0.0  ;;  %vm737_vm9 = vcmp.gt.f32.partialorder %v5443_v3, 0.0 }
 0x13c   :  { %v917_v1 = vsel %vm661_vm11, %v411_v56, %v789_v27  ;;  %vm738_vm5 = vcmp.gt.f32.partialorder %v5452_v60, 0.0  ;;  %v5537_v41 = vsel %vm724_vm7, %v5318_v50, %v5351_v46  ;;  %v5543_v49 = vsel %vm726_vm8, %v5330_v15, %v5361_v61 }
 0x13d   :  { %v416_v10 = vpop.f32.mrb[48].mxu0  ;;  %v916_v45 = vsel %vm660_vm10, %v409_v16, %v788_v37  ;;  %v918_v56 = vsel %vm662_vm0, %v413_v28, %v790_v36  ;;  %v1021_v6 = vpack.c.bf16 %v917_v1, %v915_v55  ;;  %v1054_v27 = vpack.c.bf16 %v5543_v49, %v5537_v41 }
 0x13e   :  { %v417_v57 = vadd.f32 %v416_v10, %v5147_v21  ;;  %v418_v19 = vpop.f32.mrb[49].mxu0  ;;  %v1022_v8 = vpack.c.bf16 %v918_v56, %v916_v45  ;;  %v5553_v50 = vsel %vm723_vm12, %v5302_v59, %v5334_v17  ;;  %v5559_v15 = vsel %vm725_vm13, %v5326_v14, %v5357_v42 }
 0x13f   :  { %v419_v46 = vadd.f32 %v418_v19, %v5151_v22  ;;  %v420_v61 = vpop.f32.mrb[50].mxu0  ;;  %vm740_vm7 = vcmp.gt.f32.partialorder %v5460_v9, 0.0  ;;  %v1053_v16 = vpack.c.bf16 %v5559_v15, %v5553_v50  ;;  %v5569_v59 = vsel %vm728_vm14, %v5341_v31, %v5369_v7 }
 0x140   :  { %v5575_v14 = vsel %vm730_vm15, %v5354_v24, %v5382_v2  ;;  %vm663_vm8 = vcmp.gt.f32.partialorder %v417_v57, 0.0  ;;  %v791_v17 = vmul.f32 0.01, %v417_v57  ;;  %v421_v42 = vadd.f32 %v420_v61, %v5147_v21  ;;  %v422_v37 = vpop.f32.mrb[51].mxu0  ;;  %1408 = vmatprep.mubr.bf16.mxu1 %v1022_v8  ;;  %v4417_v24 = vld [vmem:[%s6893_s3 + $0x78] sm:$0xff]  }
 0x141   :  { %vm742_vm12 = vcmp.gt.f32.partialorder %v5498_v25, 0.0  ;;  %v1056_v28 = vpack.c.bf16 %v5575_v14, %v5569_v59  ;;  %vm664_vm13 = vcmp.gt.f32.partialorder %v419_v46, 0.0  ;;  %v792_v31 = vmul.f32 0.01, %v419_v46  ;;  %1409 = vmatmul.mubr.bf16.gmra.mrb[76].mxu1 %v1021_v6  ;;  %2230 = vmatpush1.bf16.msra.mxu0 %v4417_v24 }
 0x142   :  { %v423_v7 = vadd.f32 %v422_v37, %v5151_v22  ;;  %vm739_vm14 = vcmp.gt.f32.partialorder %v5457_v51, 0.0  ;;  %v5590_v2 = vsel %vm727_vm1, %v5338_v63, %v5364_v4  ;;  %vm665_vm15 = vcmp.gt.f32.partialorder %v421_v42, 0.0 }
 0x143   :  { %v793_v8 = vmul.f32 0.01, %v421_v42  ;;  %v919_v19 = vsel %vm663_vm8, %v417_v57, %v791_v17  ;;  %vm6932_vm0 = vcmp.gt.f32.partialorder %v5344_v33, 0.0  ;;  %v920_v1 = vsel %vm664_vm13, %v419_v46, %v792_v31 }
 0x144   :  { %v5597_v36 = vsel %vm6932_vm0, %v5344_v33, %v5372_v11  ;;  %vm666_vm2 = vcmp.gt.f32.partialorder %v423_v7, 0.0  ;;  %v794_v55 = vmul.f32 0.01, %v423_v7  ;;  %v5605_v63 = vsel %vm732_vm6, %v5390_v47, %v5425_v12 }
 0x145   :  { %v1055_v10 = vpack.c.bf16 %v5597_v36, %v5590_v2  ;;  %v921_v45 = vsel %vm665_vm15, %v421_v42, %v793_v8  ;;  %vm6933_vm1 = vcmp.gt.f32.partialorder %v5403_v0, 0.0  ;;  %vm6934_vm10 = vcmp.gt.f32.partialorder %v5385_v40, 0.0  ;;  %v426_v11 = vpop.f32.mrb[52].mxu0 }
 0x146   :  { %v5611_v33 = vsel %vm6933_vm1, %v5403_v0, %v5436_v62  ;;  %v5617_v4 = vsel %vm6934_vm10, %v5385_v40, %v5413_v20  ;;  %v922_v57 = vsel %vm666_vm2, %v423_v7, %v794_v55  ;;  %v1023_v56 = vpack.c.bf16 %v921_v45, %v919_v19  ;;  %v428_v12 = vpop.f32.mrb[53].mxu0 }
 0x147   :  { %v1058_v6 = vpack.c.bf16 %v5611_v33, %v5605_v63  ;;  %vm6935_vm6 = vcmp.gt.f32.partialorder %v5393_v54, 0.0  ;;  %v427_v0 = vadd.f32 %v426_v11, %v5147_v21  ;;  %v1024_v62 = vpack.c.bf16 %v922_v57, %v920_v1  ;;  %v430_v61 = vpop.f32.mrb[54].mxu0  ;;  %v4422_v63 = vld [vmem:[%s6893_s3 + $0xa8] sm:$0xff]  }
 0x148   :  { %v5625_v47 = vsel %vm6935_vm6, %v5393_v54, %v5433_v44  ;;  %v5634_v40 = vsel %vm736_vm3, %v5421_v5, %v5449_v26  ;;  %v429_v46 = vadd.f32 %v428_v12, %v5151_v22  ;;  %v5641_v54 = vsel %vm738_vm5, %v5452_v60, %v5481_v35  ;;  %v432_v42 = vpop.f32.mrb[55].mxu0 }
 0x149   :  { %v1057_v20 = vpack.c.bf16 %v5625_v47, %v5617_v4  ;;  %v5647_v44 = vsel %vm735_vm4, %v5416_v18, %v5440_v32  ;;  %v5653_v5 = vsel %vm737_vm9, %v5443_v3, %v5466_v58  ;;  %vm667_vm3 = vcmp.gt.f32.partialorder %v427_v0, 0.0  ;;  %1418 = vmatprep.mubr.bf16.mxu1 %v1024_v62 }
 0x14a   :  { %v795_v26 = vmul.f32 0.01, %v427_v0  ;;  %v431_v17 = vadd.f32 %v430_v61, %v5147_v21  ;;  %v1060_v35 = vpack.c.bf16 %v5641_v54, %v5634_v40  ;;  %v796_v60 = vmul.f32 0.01, %v429_v46  ;;  %1419 = vmatmul.mubr.bf16.gmra.mrb[80].mxu1 %v1023_v56 }
 0x14b   :  { %v433_v37 = vadd.f32 %v432_v42, %v5151_v22  ;;  %vm741_vm11 = vcmp.gt.f32.partialorder %v5476_v23, 0.0  ;;  %v1059_v18 = vpack.c.bf16 %v5653_v5, %v5647_v44  ;;  %vm668_vm9 = vcmp.gt.f32.partialorder %v429_v46, 0.0 }
 0x14c   :  { %vm669_vm4 = vcmp.gt.f32.partialorder %v431_v17, 0.0  ;;  %v797_v32 = vmul.f32 0.01, %v431_v17  ;;  %v5666_v3 = vsel %vm740_vm7, %v5460_v9, %v5495_v30  ;;  %v923_v31 = vsel %vm667_vm3, %v427_v0, %v795_v26 }
 0x14d   :  { %vm670_vm5 = vcmp.gt.f32.partialorder %v433_v37, 0.0  ;;  %v798_v58 = vmul.f32 0.01, %v433_v37  ;;  %v5673_v7 = vsel %vm742_vm12, %v5498_v25, %v5525_v48  ;;  %v5681_v9 = vsel %vm739_vm14, %v5457_v51, %v5492_v13  ;;  %v436_v19 = vpop.f32.mrb[56].mxu0  ;;  %v4418_v51 = vld [vmem:[%s6893_s3 + $0x88] sm:$0xff]  }
 0x14e   :  { %v925_v24 = vsel %vm669_vm4, %v431_v17, %v797_v32  ;;  %v1062_v8 = vpack.c.bf16 %v5673_v7, %v5666_v3  ;;  %v5685_v30 = vsel %vm741_vm11, %v5476_v23, %v5502_v43  ;;  %v924_v55 = vsel %vm668_vm9, %v429_v46, %v796_v60  ;;  %v438_v11 = vpop.f32.mrb[57].mxu0  ;;  %4262 = vmatprep.subr.bf16.mxu1 %v4418_v51 }
 0x14f   :  { %v926_v1 = vsel %vm670_vm5, %v433_v37, %v798_v58  ;;  %v1025_v45 = vpack.c.bf16 %v925_v24, %v923_v31  ;;  %v1061_v25 = vpack.c.bf16 %v5685_v30, %v5681_v9  ;;  %v437_v48 = vadd.f32 %v436_v19, %v5147_v21  ;;  %v440_v0 = vpop.f32.mrb[58].mxu0  ;;  %4263 = vmatpush3.bf16.msra.mxu1 %v4418_v51 }
 0x150   :  { %v1026_v57 = vpack.c.bf16 %v926_v1, %v924_v55  ;;  %v439_v56 = vadd.f32 %v438_v11, %v5151_v22  ;;  %v441_v13 = vadd.f32 %v440_v0, %v5147_v21  ;;  %v442_v43 = vpop.f32.mrb[59].mxu0 }
 0x151   :  { %v799_v23 = vmul.f32 0.01, %v437_v48  ;;  %vm671_vm7 = vcmp.gt.f32.partialorder %v437_v48, 0.0  ;;  %v443_v62 = vadd.f32 %v442_v43, %v5151_v22 }
 0x152   :  { %1428 = vmatprep.mubr.bf16.mxu1 %v1026_v57  ;;  %v800_v12 = vmul.f32 0.01, %v439_v56  ;;  %vm672_vm8 = vcmp.gt.f32.partialorder %v439_v56, 0.0  ;;  %vm673_vm12 = vcmp.gt.f32.partialorder %v441_v13, 0.0  ;;  %v801_v46 = vmul.f32 0.01, %v441_v13 }
 0x153   :  { %1429 = vmatmul.mubr.bf16.gmra.mrb[84].mxu1 %v1025_v45  ;;  %vm674_vm13 = vcmp.gt.f32.partialorder %v443_v62, 0.0  ;;  %v802_v61 = vmul.f32 0.01, %v443_v62  ;;  %v927_v26 = vsel %vm671_vm7, %v437_v48, %v799_v23 }
 0x154   :  { %v929_v17 = vsel %vm673_vm12, %v441_v13, %v801_v46  ;;  %v928_v60 = vsel %vm672_vm8, %v439_v56, %v800_v12 }
 0x155   :  { %v446_v42 = vpop.f32.mrb[60].mxu0  ;;  %v930_v37 = vsel %vm674_vm13, %v443_v62, %v802_v61  ;;  %v1027_v32 = vpack.c.bf16 %v929_v17, %v927_v26 }
 0x156   :  { %v447_v58 = vadd.f32 %v446_v42, %v5147_v21  ;;  %v448_v31 = vpop.f32.mrb[61].mxu0  ;;  %v1028_v24 = vpack.c.bf16 %v930_v37, %v928_v60 }
 0x157   :  { %v449_v19 = vadd.f32 %v448_v31, %v5151_v22  ;;  %v450_v55 = vpop.f32.mrb[62].mxu0 }
 0x158   :  { %v803_v1 = vmul.f32 0.01, %v447_v58  ;;  %v451_v45 = vadd.f32 %v450_v55, %v5147_v21  ;;  %v452_v11 = vpop.f32.mrb[63].mxu0  ;;  %1438 = vmatprep.mubr.bf16.mxu1 %v1028_v24  ;;  %vm675_vm14 = vcmp.gt.f32.partialorder %v447_v58, 0.0 }
 0x159   :  { %v804_v57 = vmul.f32 0.01, %v449_v19  ;;  %v453_v48 = vadd.f32 %v452_v11, %v5151_v22  ;;  %vm676_vm15 = vcmp.gt.f32.partialorder %v449_v19, 0.0 }
 0x15a   :  { %vm677_vm0 = vcmp.gt.f32.partialorder %v451_v45, 0.0  ;;  %v805_v56 = vmul.f32 0.01, %v451_v45  ;;  %v931_v51 = vsel %vm675_vm14, %v447_v58, %v803_v1 }
 0x15b   :  { %1439 = vmatmul.mubr.bf16.gmra.mrb[88].mxu1 %v1027_v32  ;;  %vm678_vm2 = vcmp.gt.f32.partialorder %v453_v48, 0.0  ;;  %v806_v0 = vmul.f32 0.01, %v453_v48  ;;  %v932_v43 = vsel %vm676_vm15, %v449_v19, %v804_v57 }
 0x15c   :  { %v933_v23 = vsel %vm677_vm0, %v451_v45, %v805_v56 }
 0x15d   :  { %v456_v13 = vpop.f32.mrb[64].mxu0  ;;  %v934_v12 = vsel %vm678_vm2, %v453_v48, %v806_v0  ;;  %v1029_v62 = vpack.c.bf16 %v933_v23, %v931_v51 }
 0x15e   :  { %v457_v46 = vadd.f32 %v456_v13, %v5147_v21  ;;  %v458_v61 = vpop.f32.mrb[65].mxu0  ;;  %v1030_v26 = vpack.c.bf16 %v934_v12, %v932_v43 }
 0x15f   :  { %v459_v17 = vadd.f32 %v458_v61, %v5151_v22  ;;  %v460_v42 = vpop.f32.mrb[66].mxu0 }
 0x160   :  { %v807_v60 = vmul.f32 0.01, %v457_v46  ;;  %v461_v37 = vadd.f32 %v460_v42, %v5147_v21  ;;  %v462_v32 = vpop.f32.mrb[67].mxu0  ;;  %1448 = vmatprep.mubr.bf16.mxu1 %v1030_v26  ;;  %vm679_vm1 = vcmp.gt.f32.partialorder %v457_v46, 0.0 }
 0x161   :  { %v808_v31 = vmul.f32 0.01, %v459_v17  ;;  %v463_v58 = vadd.f32 %v462_v32, %v5151_v22  ;;  %vm680_vm10 = vcmp.gt.f32.partialorder %v459_v17, 0.0 }
 0x162   :  { %vm681_vm6 = vcmp.gt.f32.partialorder %v461_v37, 0.0  ;;  %v809_v24 = vmul.f32 0.01, %v461_v37  ;;  %v935_v55 = vsel %vm679_vm1, %v457_v46, %v807_v60 }
 0x163   :  { %1449 = vmatmul.mubr.bf16.gmra.mrb[92].mxu1 %v1029_v62  ;;  %vm682_vm3 = vcmp.gt.f32.partialorder %v463_v58, 0.0  ;;  %v810_v19 = vmul.f32 0.01, %v463_v58  ;;  %v936_v11 = vsel %vm680_vm10, %v459_v17, %v808_v31 }
 0x164   :  { %v937_v1 = vsel %vm681_vm6, %v461_v37, %v809_v24 }
 0x165   :  { %v466_v45 = vpop.f32.mrb[68].mxu0  ;;  %v938_v57 = vsel %vm682_vm3, %v463_v58, %v810_v19  ;;  %v1031_v48 = vpack.c.bf16 %v937_v1, %v935_v55 }
 0x166   :  { %v467_v56 = vadd.f32 %v466_v45, %v5147_v21  ;;  %v468_v0 = vpop.f32.mrb[69].mxu0  ;;  %v1032_v51 = vpack.c.bf16 %v938_v57, %v936_v11  ;;  %v4419_v11 = vld [vmem:[%s6893_s3 + $0x90] sm:$0xff]  }
 0x167   :  { %v469_v23 = vadd.f32 %v468_v0, %v5151_v22  ;;  %v470_v13 = vpop.f32.mrb[70].mxu0  ;;  %4264 = vmatprep.subr.bf16.mxu1 %v4419_v11 }
 0x168   :  { %v811_v43 = vmul.f32 0.01, %v467_v56  ;;  %v471_v12 = vadd.f32 %v470_v13, %v5147_v21  ;;  %v472_v62 = vpop.f32.mrb[71].mxu0  ;;  %1458 = vmatprep.mubr.bf16.mxu1 %v1032_v51  ;;  %vm683_vm11 = vcmp.gt.f32.partialorder %v467_v56, 0.0  ;;  %4265 = vmatpush3.bf16.msra.mxu1 %v4419_v11 }
 0x169   :  { %v812_v61 = vmul.f32 0.01, %v469_v23  ;;  %v473_v46 = vadd.f32 %v472_v62, %v5151_v22  ;;  %vm684_vm9 = vcmp.gt.f32.partialorder %v469_v23, 0.0 }
 0x16a   :  { %vm685_vm4 = vcmp.gt.f32.partialorder %v471_v12, 0.0  ;;  %v813_v26 = vmul.f32 0.01, %v471_v12  ;;  %v939_v42 = vsel %vm683_vm11, %v467_v56, %v811_v43 }
 0x16b   :  { %1459 = vmatmul.mubr.bf16.gmra.mrb[96].mxu1 %v1031_v48  ;;  %vm686_vm5 = vcmp.gt.f32.partialorder %v473_v46, 0.0  ;;  %v814_v17 = vmul.f32 0.01, %v473_v46  ;;  %v940_v32 = vsel %vm684_vm9, %v469_v23, %v812_v61 }
 0x16c   :  { %v941_v60 = vsel %vm685_vm4, %v471_v12, %v813_v26 }
 0x16d   :  { %v476_v37 = vpop.f32.mrb[72].mxu0  ;;  %v942_v31 = vsel %vm686_vm5, %v473_v46, %v814_v17  ;;  %v1033_v58 = vpack.c.bf16 %v941_v60, %v939_v42 }
 0x16e   :  { %v477_v24 = vadd.f32 %v476_v37, %v5147_v21  ;;  %v478_v19 = vpop.f32.mrb[73].mxu0  ;;  %v1034_v55 = vpack.c.bf16 %v942_v31, %v940_v32 }
 0x16f   :  { %v479_v1 = vadd.f32 %v478_v19, %v5151_v22  ;;  %v480_v45 = vpop.f32.mrb[74].mxu0 }
 0x170   :  { %v815_v57 = vmul.f32 0.01, %v477_v24  ;;  %v481_v48 = vadd.f32 %v480_v45, %v5147_v21  ;;  %v482_v56 = vpop.f32.mrb[75].mxu0  ;;  %1468 = vmatprep.mubr.bf16.mxu1 %v1034_v55  ;;  %vm687_vm7 = vcmp.gt.f32.partialorder %v477_v24, 0.0 }
 0x171   :  { %v816_v0 = vmul.f32 0.01, %v479_v1  ;;  %v483_v51 = vadd.f32 %v482_v56, %v5151_v22  ;;  %vm688_vm8 = vcmp.gt.f32.partialorder %v479_v1, 0.0 }
 0x172   :  { %vm689_vm12 = vcmp.gt.f32.partialorder %v481_v48, 0.0  ;;  %v817_v23 = vmul.f32 0.01, %v481_v48  ;;  %v943_v43 = vsel %vm687_vm7, %v477_v24, %v815_v57 }
 0x173   :  { %1469 = vmatmul.mubr.bf16.gmra.mrb[100].mxu1 %v1033_v58  ;;  %vm690_vm13 = vcmp.gt.f32.partialorder %v483_v51, 0.0  ;;  %v818_v13 = vmul.f32 0.01, %v483_v51  ;;  %v944_v61 = vsel %vm688_vm8, %v479_v1, %v816_v0 }
 0x174   :  { %v945_v12 = vsel %vm689_vm12, %v481_v48, %v817_v23 }
 0x175   :  { %v486_v62 = vpop.f32.mrb[76].mxu0  ;;  %v946_v46 = vsel %vm690_vm13, %v483_v51, %v818_v13  ;;  %v1035_v26 = vpack.c.bf16 %v945_v12, %v943_v43 }
 0x176   :  { %v487_v17 = vadd.f32 %v486_v62, %v5147_v21  ;;  %v488_v42 = vpop.f32.mrb[77].mxu0  ;;  %v1036_v60 = vpack.c.bf16 %v946_v46, %v944_v61 }
 0x177   :  { %v489_v37 = vadd.f32 %v488_v42, %v5151_v22  ;;  %v490_v32 = vpop.f32.mrb[78].mxu0 }
 0x178   :  { %v819_v31 = vmul.f32 0.01, %v487_v17  ;;  %v491_v58 = vadd.f32 %v490_v32, %v5147_v21  ;;  %v492_v19 = vpop.f32.mrb[79].mxu0  ;;  %1478 = vmatprep.mubr.bf16.mxu1 %v1036_v60  ;;  %vm691_vm14 = vcmp.gt.f32.partialorder %v487_v17, 0.0 }
 0x179   :  { %v820_v55 = vmul.f32 0.01, %v489_v37  ;;  %v493_v24 = vadd.f32 %v492_v19, %v5151_v22  ;;  %vm692_vm15 = vcmp.gt.f32.partialorder %v489_v37, 0.0 }
 0x17a   :  { %vm693_vm0 = vcmp.gt.f32.partialorder %v491_v58, 0.0  ;;  %v821_v1 = vmul.f32 0.01, %v491_v58  ;;  %v947_v11 = vsel %vm691_vm14, %v487_v17, %v819_v31 }
 0x17b   :  { %1479 = vmatmul.mubr.bf16.gmra.mrb[104].mxu1 %v1035_v26  ;;  %vm694_vm2 = vcmp.gt.f32.partialorder %v493_v24, 0.0  ;;  %v822_v45 = vmul.f32 0.01, %v493_v24  ;;  %v948_v56 = vsel %vm692_vm15, %v489_v37, %v820_v55 }
 0x17c   :  { %v949_v57 = vsel %vm693_vm0, %v491_v58, %v821_v1 }
 0x17d   :  { %v496_v48 = vpop.f32.mrb[80].mxu0  ;;  %v950_v0 = vsel %vm694_vm2, %v493_v24, %v822_v45  ;;  %v1037_v51 = vpack.c.bf16 %v949_v57, %v947_v11 }
 0x17e   :  { %v497_v23 = vadd.f32 %v496_v48, %v5147_v21  ;;  %v498_v13 = vpop.f32.mrb[81].mxu0  ;;  %v1038_v43 = vpack.c.bf16 %v950_v0, %v948_v56 }
 0x17f   :  { %v499_v12 = vadd.f32 %v498_v13, %v5151_v22  ;;  %v500_v62 = vpop.f32.mrb[82].mxu0 }
 0x180   :  { %v823_v61 = vmul.f32 0.01, %v497_v23  ;;  %v501_v46 = vadd.f32 %v500_v62, %v5147_v21  ;;  %v502_v26 = vpop.f32.mrb[83].mxu0  ;;  %1488 = vmatprep.mubr.bf16.mxu1 %v1038_v43  ;;  %vm695_vm1 = vcmp.gt.f32.partialorder %v497_v23, 0.0 }
 0x181   :  { %v824_v42 = vmul.f32 0.01, %v499_v12  ;;  %v503_v17 = vadd.f32 %v502_v26, %v5151_v22  ;;  %vm696_vm10 = vcmp.gt.f32.partialorder %v499_v12, 0.0 }
 0x182   :  { %vm697_vm6 = vcmp.gt.f32.partialorder %v501_v46, 0.0  ;;  %v825_v60 = vmul.f32 0.01, %v501_v46  ;;  %v951_v32 = vsel %vm695_vm1, %v497_v23, %v823_v61 }
 0x183   :  { %1489 = vmatmul.mubr.bf16.gmra.mrb[108].mxu1 %v1037_v51  ;;  %vm698_vm3 = vcmp.gt.f32.partialorder %v503_v17, 0.0  ;;  %v826_v37 = vmul.f32 0.01, %v503_v17  ;;  %v952_v19 = vsel %vm696_vm10, %v499_v12, %v824_v42 }
 0x184   :  { %v953_v31 = vsel %vm697_vm6, %v501_v46, %v825_v60 }
 0x185   :  { %v506_v58 = vpop.f32.mrb[84].mxu0  ;;  %v954_v55 = vsel %vm698_vm3, %v503_v17, %v826_v37  ;;  %v1039_v24 = vpack.c.bf16 %v953_v31, %v951_v32 }
 0x186   :  { %v507_v1 = vadd.f32 %v506_v58, %v5147_v21  ;;  %v508_v45 = vpop.f32.mrb[85].mxu0  ;;  %v1040_v11 = vpack.c.bf16 %v954_v55, %v952_v19  ;;  %v4420_v19 = vld [vmem:[%s6893_s3 + $0x98] sm:$0xff]  }
 0x187   :  { %v509_v57 = vadd.f32 %v508_v45, %v5151_v22  ;;  %v510_v48 = vpop.f32.mrb[86].mxu0  ;;  %4266 = vmatprep.subr.bf16.mxu1 %v4420_v19 }
 0x188   :  { %v827_v56 = vmul.f32 0.01, %v507_v1  ;;  %v511_v0 = vadd.f32 %v510_v48, %v5147_v21  ;;  %v512_v51 = vpop.f32.mrb[87].mxu0  ;;  %1498 = vmatprep.mubr.bf16.mxu1 %v1040_v11  ;;  %vm699_vm11 = vcmp.gt.f32.partialorder %v507_v1, 0.0  ;;  %4267 = vmatpush3.bf16.msra.mxu1 %v4420_v19 }
 0x189   :  { %v828_v13 = vmul.f32 0.01, %v509_v57  ;;  %v513_v23 = vadd.f32 %v512_v51, %v5151_v22  ;;  %vm700_vm9 = vcmp.gt.f32.partialorder %v509_v57, 0.0 }
 0x18a   :  { %vm701_vm4 = vcmp.gt.f32.partialorder %v511_v0, 0.0  ;;  %v829_v43 = vmul.f32 0.01, %v511_v0  ;;  %v955_v62 = vsel %vm699_vm11, %v507_v1, %v827_v56 }
 0x18b   :  { %1499 = vmatmul.mubr.bf16.gmra.mrb[112].mxu1 %v1039_v24  ;;  %vm702_vm5 = vcmp.gt.f32.partialorder %v513_v23, 0.0  ;;  %v830_v12 = vmul.f32 0.01, %v513_v23  ;;  %v956_v26 = vsel %vm700_vm9, %v509_v57, %v828_v13 }
 0x18c   :  { %v957_v61 = vsel %vm701_vm4, %v511_v0, %v829_v43 }
 0x18d   :  { %v516_v46 = vpop.f32.mrb[88].mxu0  ;;  %v958_v42 = vsel %vm702_vm5, %v513_v23, %v830_v12  ;;  %v1041_v17 = vpack.c.bf16 %v957_v61, %v955_v62 }
 0x18e   :  { %v517_v60 = vadd.f32 %v516_v46, %v5147_v21  ;;  %v518_v37 = vpop.f32.mrb[89].mxu0  ;;  %v1042_v32 = vpack.c.bf16 %v958_v42, %v956_v26 }
 0x18f   :  { %v519_v31 = vadd.f32 %v518_v37, %v5151_v22  ;;  %v520_v58 = vpop.f32.mrb[90].mxu0 }
 0x190   :  { %v831_v55 = vmul.f32 0.01, %v517_v60  ;;  %v521_v24 = vadd.f32 %v520_v58, %v5147_v21  ;;  %v522_v1 = vpop.f32.mrb[91].mxu0  ;;  %1508 = vmatprep.mubr.bf16.mxu1 %v1042_v32  ;;  %vm703_vm7 = vcmp.gt.f32.partialorder %v517_v60, 0.0 }
 0x191   :  { %v832_v45 = vmul.f32 0.01, %v519_v31  ;;  %v523_v11 = vadd.f32 %v522_v1, %v5151_v22  ;;  %vm704_vm8 = vcmp.gt.f32.partialorder %v519_v31, 0.0 }
 0x192   :  { %vm705_vm12 = vcmp.gt.f32.partialorder %v521_v24, 0.0  ;;  %v833_v57 = vmul.f32 0.01, %v521_v24  ;;  %v959_v56 = vsel %vm703_vm7, %v517_v60, %v831_v55 }
 0x193   :  { %1509 = vmatmul.mubr.bf16.gmra.mrb[116].mxu1 %v1041_v17  ;;  %vm706_vm13 = vcmp.gt.f32.partialorder %v523_v11, 0.0  ;;  %v834_v48 = vmul.f32 0.01, %v523_v11  ;;  %v960_v13 = vsel %vm704_vm8, %v519_v31, %v832_v45 }
 0x194   :  { %v961_v0 = vsel %vm705_vm12, %v521_v24, %v833_v57 }
 0x195   :  { %v526_v51 = vpop.f32.mrb[92].mxu0  ;;  %v962_v23 = vsel %vm706_vm13, %v523_v11, %v834_v48  ;;  %v1043_v43 = vpack.c.bf16 %v961_v0, %v959_v56  ;;  %v6939_v48 = vld [vmem:[#allocation8_spill] sm:$0xff]  ;;  %v6940_v56 = vld [vmem:[#allocation7_spill] sm:$0xff] }
 0x196   :  { %v527_v12 = vadd.f32 %v526_v51, %v5147_v21  ;;  %v528_v62 = vpop.f32.mrb[93].mxu0  ;;  %v1044_v61 = vpack.c.bf16 %v962_v23, %v960_v13  ;;  %v6941_v0 = vpack.c.bf16 %v6939_v48, %v6940_v56  ;;  %v4421_v51 = vld [vmem:[%s6893_s3 + $0xa0] sm:$0xff]   ;;  %v6942_v13 = vld [vmem:[#allocation10_spill] sm:$0xff] }
 0x197   :  { %v529_v46 = vadd.f32 %v528_v62, %v5151_v22  ;;  %v530_v26 = vpop.f32.mrb[94].mxu0  ;;  %v6943_v23 = vld [vmem:[#allocation9_spill] sm:$0xff]  ;;  %4268 = vmatprep.subr.bf16.mxu1 %v4421_v51 }
 0x198   :  { %v835_v42 = vmul.f32 0.01, %v527_v12  ;;  %v531_v17 = vadd.f32 %v530_v26, %v5147_v21  ;;  %v532_v37 = vpop.f32.mrb[95].mxu0  ;;  %1518 = vmatprep.mubr.bf16.mxu1 %v1044_v61  ;;  %vm707_vm14 = vcmp.gt.f32.partialorder %v527_v12, 0.0  ;;  %v6936_v21 = vpack.c.bf16 %v5223_v38, %v5217_v34  ;;  %4269 = vmatpush3.bf16.msra.mxu1 %v4421_v51  ;;  %v6948_v62 = vld [vmem:[#allocation5_spill] sm:$0xff] }
 0x199   :  { %v836_v32 = vmul.f32 0.01, %v529_v46  ;;  %v533_v60 = vadd.f32 %v532_v37, %v5151_v22  ;;  %vm708_vm15 = vcmp.gt.f32.partialorder %v529_v46, 0.0  ;;  %v6937_v22 = vld [vmem:[#allocation6_spill] sm:$0xff]  ;;  %v6945_v34 = vpack.c.bf16 %v5487_v29, %v5472_v52  ;;  %4270 = vmatprep.subr.bf16.mxu1 %v4422_v63 }
 0x19a   :  { %vm709_vm0 = vcmp.gt.f32.partialorder %v531_v17, 0.0  ;;  %v837_v31 = vmul.f32 0.01, %v531_v17  ;;  %v963_v19 = vsel %vm707_vm14, %v527_v12, %v835_v42  ;;  %v6938_v57 = vpack.c.bf16 %v5226_v39, %v6937_v22  ;;  %v4121_v38 = vld [vmem:[%s6894_s4 + $0x1] ss:$2 sm:$0x3] }
 0x19b   :  { %1519 = vmatmul.mubr.bf16.gmra.mrb[120].mxu1 %v1043_v43  ;;  %vm710_vm2 = vcmp.gt.f32.partialorder %v533_v60, 0.0  ;;  %v838_v58 = vmul.f32 0.01, %v533_v60  ;;  %v964_v24 = vsel %vm708_vm15, %v529_v46, %v836_v32  ;;  %v6944_v43 = vpack.c.bf16 %v6942_v13, %v6943_v23  ;;  %v6946_v39 = vld [vmem:[#allocation11_spill] sm:$0xff] }
 0x19c   :  { %v965_v55 = vsel %vm709_vm0, %v531_v17, %v837_v31  ;;  %v6947_v12 = vpack.c.bf16 %v5521_v53, %v6946_v39  ;;  %v6949_v61 = vsub.s32 0, %v6948_v62  ;;  %v6950_v52 = vsub.s32 1, %v6948_v62  ;;  %4271 = vmatpush3.bf16.msra.mxu1 %v4422_v63 }
 0x19d   :  { %v966_v1 = vsel %vm710_vm2, %v533_v60, %v838_v58  ;;  %v1045_v45 = vpack.c.bf16 %v965_v55, %v963_v19 }
 0x19e   :  { %v1046_v11 = vpack.c.bf16 %v966_v1, %v964_v24  ;;  %v5764_v46 = vrot.slane %v4121_v38, %v6949_v61  ;;  %v5771_v29 = vrot.slane %v4121_v38, %v6950_v52 }
 0x1a0   :  { %1528 = vmatprep.mubr.bf16.mxu1 %v1046_v11 }
 0x1a3   :  { %1529 = vmatmul.mubr.bf16.gmra.mrb[124].mxu1 %v1045_v45 }
 0x1a4   :  { %1538 = vmatprep.mubr.bf16.mxu1 %v6936_v21 }
 0x1ab   :  { %1539 = vmatmul.mubr.bf16.gmra.mrb[128].mxu1 %v6938_v57 }
 0x1ac   :  { %1548 = vmatprep.mubr.bf16.mxu1 %v6941_v0 }
 0x1b3   :  { %1549 = vmatmul.mubr.bf16.gmra.mrb[132].mxu1 %v6944_v43 }
 0x1b4   :  { %1558 = vmatprep.mubr.bf16.mxu1 %v6945_v34 }
 0x1bb   :  { %1559 = vmatmul.mubr.bf16.gmra.mrb[136].mxu1 %v6947_v12 }
 0x1bc   :  { %1568 = vmatprep.mubr.bf16.mxu1 %v1054_v27  ;;  %v1300_v26 = vpop.f32.mrb[32].mxu1 }
 0x1bd   :  { %v1301_v42 = vadd.f32 %v1300_v26, %v5764_v46  ;;  %v1302_v17 = vpop.f32.mrb[33].mxu1 }
 0x1be   :  { %v1303_v37 = vadd.f32 %v1302_v17, %v5771_v29  ;;  %v1304_v53 = vpop.f32.mrb[34].mxu1 }
 0x1bf   :  { %v1747_v32 = vmul.f32 0.01, %v1301_v42  ;;  %v1305_v60 = vadd.f32 %v1304_v53, %v5764_v46  ;;  %v1306_v31 = vpop.f32.mrb[35].mxu1  ;;  %vm1619_vm1 = vcmp.gt.f32.partialorder %v1301_v42, 0.0 }
 0x1c0   :  { %v1748_v58 = vmul.f32 0.01, %v1303_v37  ;;  %v1307_v41 = vadd.f32 %v1306_v31, %v5771_v29  ;;  %vm1620_vm10 = vcmp.gt.f32.partialorder %v1303_v37, 0.0 }
 0x1c1   :  { %vm1621_vm6 = vcmp.gt.f32.partialorder %v1305_v60, 0.0  ;;  %v1749_v49 = vmul.f32 0.01, %v1305_v60  ;;  %v1875_v19 = vsel %vm1619_vm1, %v1301_v42, %v1747_v32 }
 0x1c2   :  { %vm1622_vm3 = vcmp.gt.f32.partialorder %v1307_v41, 0.0  ;;  %v1750_v27 = vmul.f32 0.01, %v1307_v41  ;;  %v1876_v45 = vsel %vm1620_vm10, %v1303_v37, %v1748_v58 }
 0x1c3   :  { %1569 = vmatmul.mubr.bf16.gmra.mrb[140].mxu1 %v1053_v16  ;;  %v1877_v55 = vsel %vm1621_vm6, %v1305_v60, %v1749_v49 }
 0x1c4   :  { %1578 = vmatprep.mubr.bf16.mxu1 %v1056_v28  ;;  %v2003_v24 = vpack.c.bf16 %v1877_v55, %v1875_v19  ;;  %v1310_v1 = vpop.f32.mrb[36].mxu1  ;;  %v1878_v11 = vsel %vm1622_vm3, %v1307_v41, %v1750_v27 }
 0x1c5   :  { %v1311_v21 = vadd.f32 %v1310_v1, %v5764_v46  ;;  %v1312_v22 = vpop.f32.mrb[37].mxu1  ;;  %v2004_v57 = vpack.c.bf16 %v1878_v11, %v1876_v45 }
 0x1c6   :  { %v1313_v48 = vadd.f32 %v1312_v22, %v5771_v29  ;;  %v1314_v50 = vpop.f32.mrb[38].mxu1 }
 0x1c7   :  { %v1751_v15 = vmul.f32 0.01, %v1311_v21  ;;  %v1315_v16 = vadd.f32 %v1314_v50, %v5764_v46  ;;  %v1316_v56 = vpop.f32.mrb[39].mxu1  ;;  %2231 = vmatprep.mubr.bf16.mxu0 %v2004_v57  ;;  %vm1623_vm11 = vcmp.gt.f32.partialorder %v1311_v21, 0.0 }
 0x1c8   :  { %v1752_v59 = vmul.f32 0.01, %v1313_v48  ;;  %v1317_v14 = vadd.f32 %v1316_v56, %v5771_v29  ;;  %2232 = vmatmul.mubr.bf16.vlgmr.msra.gmra.mrb[96].mxu0 %v2003_v24  ;;  %vm1624_vm9 = vcmp.gt.f32.partialorder %v1313_v48, 0.0 }
 0x1c9   :  { %vm1625_vm4 = vcmp.gt.f32.partialorder %v1315_v16, 0.0  ;;  %v1753_v28 = vmul.f32 0.01, %v1315_v16  ;;  %v1879_v51 = vsel %vm1623_vm11, %v1311_v21, %v1751_v15 }
 0x1ca   :  { %vm1626_vm5 = vcmp.gt.f32.partialorder %v1317_v14, 0.0  ;;  %v1754_v0 = vmul.f32 0.01, %v1317_v14  ;;  %v1880_v43 = vsel %vm1624_vm9, %v1313_v48, %v1752_v59 }
 0x1cb   :  { %1579 = vmatmul.mubr.bf16.gmra.mrb[144].mxu1 %v1055_v10  ;;  %v1881_v13 = vsel %vm1625_vm4, %v1315_v16, %v1753_v28 }
 0x1cc   :  { %1588 = vmatprep.mubr.bf16.mxu1 %v1058_v6  ;;  %v1320_v23 = vpop.f32.mrb[40].mxu1  ;;  %v1882_v34 = vsel %vm1626_vm5, %v1317_v14, %v1754_v0  ;;  %v2005_v38 = vpack.c.bf16 %v1881_v13, %v1879_v51 }
 0x1cd   :  { %v1321_v39 = vadd.f32 %v1320_v23, %v5764_v46  ;;  %v1322_v12 = vpop.f32.mrb[41].mxu1  ;;  %v2006_v62 = vpack.c.bf16 %v1882_v34, %v1880_v43 }
 0x1ce   :  { %v1323_v61 = vadd.f32 %v1322_v12, %v5771_v29  ;;  %v1324_v2 = vpop.f32.mrb[42].mxu1 }
 0x1cf   :  { %v1755_v36 = vmul.f32 0.01, %v1321_v39  ;;  %v1325_v10 = vadd.f32 %v1324_v2, %v5764_v46  ;;  %v1326_v52 = vpop.f32.mrb[43].mxu1  ;;  %2239 = vmatprep.mubr.bf16.mxu0 %v2006_v62  ;;  %vm1627_vm7 = vcmp.gt.f32.partialorder %v1321_v39, 0.0 }
 0x1d0   :  { %v1756_v33 = vmul.f32 0.01, %v1323_v61  ;;  %v1327_v6 = vadd.f32 %v1326_v52, %v5771_v29  ;;  %2240 = vmatmul.mubr.bf16.gmra.mrb[100].mxu0 %v2005_v38  ;;  %vm1628_vm8 = vcmp.gt.f32.partialorder %v1323_v61, 0.0 }
 0x1d1   :  { %vm1629_vm12 = vcmp.gt.f32.partialorder %v1325_v10, 0.0  ;;  %v1757_v26 = vmul.f32 0.01, %v1325_v10  ;;  %v1883_v17 = vsel %vm1627_vm7, %v1321_v39, %v1755_v36 }
 0x1d2   :  { %vm1630_vm13 = vcmp.gt.f32.partialorder %v1327_v6, 0.0  ;;  %v1758_v42 = vmul.f32 0.01, %v1327_v6  ;;  %v1884_v32 = vsel %vm1628_vm8, %v1323_v61, %v1756_v33 }
 0x1d3   :  { %1589 = vmatmul.mubr.bf16.gmra.mrb[148].mxu1 %v1057_v20  ;;  %v1885_v37 = vsel %vm1629_vm12, %v1325_v10, %v1757_v26 }
 0x1d4   :  { %1598 = vmatprep.mubr.bf16.mxu1 %v1060_v35  ;;  %v1330_v53 = vpop.f32.mrb[44].mxu1  ;;  %v1886_v60 = vsel %vm1630_vm13, %v1327_v6, %v1758_v42  ;;  %v2007_v31 = vpack.c.bf16 %v1885_v37, %v1883_v17 }
 0x1d5   :  { %v1331_v58 = vadd.f32 %v1330_v53, %v5764_v46  ;;  %v1332_v41 = vpop.f32.mrb[45].mxu1  ;;  %v2008_v49 = vpack.c.bf16 %v1886_v60, %v1884_v32 }
 0x1d6   :  { %v1333_v4 = vadd.f32 %v1332_v41, %v5771_v29  ;;  %v1334_v47 = vpop.f32.mrb[46].mxu1 }
 0x1d7   :  { %v1759_v20 = vmul.f32 0.01, %v1331_v58  ;;  %v1335_v27 = vadd.f32 %v1334_v47, %v5764_v46  ;;  %v1336_v19 = vpop.f32.mrb[47].mxu1  ;;  %2247 = vmatprep.mubr.bf16.mxu0 %v2008_v49  ;;  %vm1631_vm14 = vcmp.gt.f32.partialorder %v1331_v58, 0.0 }
 0x1d8   :  { %v1760_v40 = vmul.f32 0.01, %v1333_v4  ;;  %v1337_v54 = vadd.f32 %v1336_v19, %v5771_v29  ;;  %2248 = vmatmul.mubr.bf16.gmra.mrb[104].mxu0 %v2007_v31  ;;  %vm1632_vm15 = vcmp.gt.f32.partialorder %v1333_v4, 0.0 }
 0x1d9   :  { %vm1633_vm0 = vcmp.gt.f32.partialorder %v1335_v27, 0.0  ;;  %v1761_v35 = vmul.f32 0.01, %v1335_v27  ;;  %v1887_v24 = vsel %vm1631_vm14, %v1331_v58, %v1759_v20  ;;  %v4423_v58 = vld [vmem:[%s6893_s3 + $0xb0] sm:$0xff]  }
 0x1da   :  { %vm1634_vm2 = vcmp.gt.f32.partialorder %v1337_v54, 0.0  ;;  %v1762_v55 = vmul.f32 0.01, %v1337_v54  ;;  %v1888_v11 = vsel %vm1632_vm15, %v1333_v4, %v1760_v40  ;;  %4272 = vmatprep.subr.bf16.mxu1 %v4423_v58 }
 0x1db   :  { %1599 = vmatmul.mubr.bf16.gmra.mrb[152].mxu1 %v1059_v18  ;;  %v1889_v1 = vsel %vm1633_vm0, %v1335_v27, %v1761_v35 }
 0x1dc   :  { %1608 = vmatprep.mubr.bf16.mxu1 %v1062_v8  ;;  %v1340_v45 = vpop.f32.mrb[48].mxu1  ;;  %v1890_v21 = vsel %vm1634_vm2, %v1337_v54, %v1762_v55  ;;  %v2009_v22 = vpack.c.bf16 %v1889_v1, %v1887_v24  ;;  %4273 = vmatpush3.bf16.msra.mxu1 %v4423_v58 }
 0x1dd   :  { %v1341_v57 = vadd.f32 %v1340_v45, %v5764_v46  ;;  %v1342_v48 = vpop.f32.mrb[49].mxu1  ;;  %v2010_v50 = vpack.c.bf16 %v1890_v21, %v1888_v11 }
 0x1de   :  { %v1343_v15 = vadd.f32 %v1342_v48, %v5771_v29  ;;  %v1344_v44 = vpop.f32.mrb[50].mxu1 }
 0x1df   :  { %v1763_v5 = vmul.f32 0.01, %v1341_v57  ;;  %v1345_v18 = vadd.f32 %v1344_v44, %v5764_v46  ;;  %v1346_v16 = vpop.f32.mrb[51].mxu1  ;;  %2255 = vmatprep.mubr.bf16.mxu0 %v2010_v50  ;;  %vm1635_vm1 = vcmp.gt.f32.partialorder %v1341_v57, 0.0 }
 0x1e0   :  { %v1764_v3 = vmul.f32 0.01, %v1343_v15  ;;  %v1347_v7 = vadd.f32 %v1346_v16, %v5771_v29  ;;  %2256 = vmatmul.mubr.bf16.gmra.mrb[108].mxu0 %v2009_v22  ;;  %vm1636_vm10 = vcmp.gt.f32.partialorder %v1343_v15, 0.0 }
 0x1e1   :  { %vm1637_vm6 = vcmp.gt.f32.partialorder %v1345_v18, 0.0  ;;  %v1765_v8 = vmul.f32 0.01, %v1345_v18  ;;  %v1891_v59 = vsel %vm1635_vm1, %v1341_v57, %v1763_v5 }
 0x1e2   :  { %vm1638_vm3 = vcmp.gt.f32.partialorder %v1347_v7, 0.0  ;;  %v1766_v56 = vmul.f32 0.01, %v1347_v7  ;;  %v1892_v0 = vsel %vm1636_vm10, %v1343_v15, %v1764_v3 }
 0x1e3   :  { %1609 = vmatmul.mubr.bf16.gmra.mrb[156].mxu1 %v1061_v25  ;;  %v1893_v14 = vsel %vm1637_vm6, %v1345_v18, %v1765_v8 }
 0x1e4   :  { %v1350_v28 = vpop.f32.mrb[52].mxu1  ;;  %v1894_v51 = vsel %vm1638_vm3, %v1347_v7, %v1766_v56  ;;  %v2011_v13 = vpack.c.bf16 %v1893_v14, %v1891_v59 }
 0x1e5   :  { %v1351_v23 = vadd.f32 %v1350_v28, %v5764_v46  ;;  %v1352_v43 = vpop.f32.mrb[53].mxu1  ;;  %v2012_v34 = vpack.c.bf16 %v1894_v51, %v1892_v0 }
 0x1e6   :  { %v1353_v38 = vadd.f32 %v1352_v43, %v5771_v29  ;;  %v1354_v39 = vpop.f32.mrb[54].mxu1 }
 0x1e7   :  { %v1767_v12 = vmul.f32 0.01, %v1351_v23  ;;  %v1355_v62 = vadd.f32 %v1354_v39, %v5764_v46  ;;  %v1356_v9 = vpop.f32.mrb[55].mxu1  ;;  %2263 = vmatprep.mubr.bf16.mxu0 %v2012_v34  ;;  %vm1639_vm11 = vcmp.gt.f32.partialorder %v1351_v23, 0.0 }
 0x1e8   :  { %v1768_v30 = vmul.f32 0.01, %v1353_v38  ;;  %v1357_v25 = vadd.f32 %v1356_v9, %v5771_v29  ;;  %2264 = vmatmul.mubr.bf16.gmra.mrb[112].mxu0 %v2011_v13  ;;  %vm1640_vm9 = vcmp.gt.f32.partialorder %v1353_v38, 0.0 }
 0x1e9   :  { %vm1641_vm4 = vcmp.gt.f32.partialorder %v1355_v62, 0.0  ;;  %v1769_v61 = vmul.f32 0.01, %v1355_v62  ;;  %v1895_v36 = vsel %vm1639_vm11, %v1351_v23, %v1767_v12 }
 0x1ea   :  { %vm1642_vm5 = vcmp.gt.f32.partialorder %v1357_v25, 0.0  ;;  %v1770_v2 = vmul.f32 0.01, %v1357_v25  ;;  %v1896_v63 = vsel %vm1640_vm9, %v1353_v38, %v1768_v30 }
 0x1eb   :  { %v1897_v10 = vsel %vm1641_vm4, %v1355_v62, %v1769_v61 }
 0x1ec   :  { %v1360_v52 = vpop.f32.mrb[56].mxu1  ;;  %v1898_v33 = vsel %vm1642_vm5, %v1357_v25, %v1770_v2  ;;  %v2013_v6 = vpack.c.bf16 %v1897_v10, %v1895_v36 }
 0x1ed   :  { %v1361_v26 = vadd.f32 %v1360_v52, %v5764_v46  ;;  %v1362_v42 = vpop.f32.mrb[57].mxu1  ;;  %v2014_v17 = vpack.c.bf16 %v1898_v33, %v1896_v63 }
 0x1ee   :  { %v1363_v37 = vadd.f32 %v1362_v42, %v5771_v29  ;;  %v1364_v53 = vpop.f32.mrb[58].mxu1 }
 0x1ef   :  { %v1771_v32 = vmul.f32 0.01, %v1361_v26  ;;  %v1365_v60 = vadd.f32 %v1364_v53, %v5764_v46  ;;  %v1366_v31 = vpop.f32.mrb[59].mxu1  ;;  %2271 = vmatprep.mubr.bf16.mxu0 %v2014_v17  ;;  %vm1643_vm7 = vcmp.gt.f32.partialorder %v1361_v26, 0.0 }
 0x1f0   :  { %v1772_v41 = vmul.f32 0.01, %v1363_v37  ;;  %v1367_v49 = vadd.f32 %v1366_v31, %v5771_v29  ;;  %2272 = vmatmul.mubr.bf16.gmra.mrb[116].mxu0 %v2013_v6  ;;  %vm1644_vm8 = vcmp.gt.f32.partialorder %v1363_v37, 0.0 }
 0x1f1   :  { %vm1645_vm12 = vcmp.gt.f32.partialorder %v1365_v60, 0.0  ;;  %v1773_v4 = vmul.f32 0.01, %v1365_v60  ;;  %v1899_v20 = vsel %vm1643_vm7, %v1361_v26, %v1771_v32 }
 0x1f2   :  { %vm1646_vm13 = vcmp.gt.f32.partialorder %v1367_v49, 0.0  ;;  %v1774_v47 = vmul.f32 0.01, %v1367_v49  ;;  %v1900_v40 = vsel %vm1644_vm8, %v1363_v37, %v1772_v41 }
 0x1f3   :  { %v1901_v27 = vsel %vm1645_vm12, %v1365_v60, %v1773_v4 }
 0x1f4   :  { %v1370_v19 = vpop.f32.mrb[60].mxu1  ;;  %v1902_v54 = vsel %vm1646_vm13, %v1367_v49, %v1774_v47  ;;  %v2015_v35 = vpack.c.bf16 %v1901_v27, %v1899_v20 }
 0x1f5   :  { %v1371_v55 = vadd.f32 %v1370_v19, %v5764_v46  ;;  %v1372_v24 = vpop.f32.mrb[61].mxu1  ;;  %v2016_v1 = vpack.c.bf16 %v1902_v54, %v1900_v40 }
 0x1f6   :  { %v1373_v45 = vadd.f32 %v1372_v24, %v5771_v29  ;;  %v1374_v11 = vpop.f32.mrb[62].mxu1 }
 0x1f7   :  { %v1775_v21 = vmul.f32 0.01, %v1371_v55  ;;  %v1375_v22 = vadd.f32 %v1374_v11, %v5764_v46  ;;  %v1376_v57 = vpop.f32.mrb[63].mxu1  ;;  %2279 = vmatprep.mubr.bf16.mxu0 %v2016_v1  ;;  %vm1647_vm14 = vcmp.gt.f32.partialorder %v1371_v55, 0.0 }
 0x1f8   :  { %v1776_v48 = vmul.f32 0.01, %v1373_v45  ;;  %v1377_v50 = vadd.f32 %v1376_v57, %v5771_v29  ;;  %2280 = vmatmul.mubr.bf16.gmra.mrb[120].mxu0 %v2015_v35  ;;  %vm1648_vm15 = vcmp.gt.f32.partialorder %v1373_v45, 0.0 }
 0x1f9   :  { %vm1649_vm0 = vcmp.gt.f32.partialorder %v1375_v22, 0.0  ;;  %v1777_v15 = vmul.f32 0.01, %v1375_v22  ;;  %v1903_v5 = vsel %vm1647_vm14, %v1371_v55, %v1775_v21  ;;  %v4424_v55 = vld [vmem:[%s6893_s3 + $0xb8] sm:$0xff]  }
 0x1fa   :  { %vm1650_vm2 = vcmp.gt.f32.partialorder %v1377_v50, 0.0  ;;  %v1778_v44 = vmul.f32 0.01, %v1377_v50  ;;  %v1904_v3 = vsel %vm1648_vm15, %v1373_v45, %v1776_v48  ;;  %4274 = vmatprep.subr.bf16.mxu1 %v4424_v55 }
 0x1fb   :  { %v1905_v18 = vsel %vm1649_vm0, %v1375_v22, %v1777_v15  ;;  %4275 = vmatpush3.bf16.msra.mxu1 %v4424_v55 }
 0x1fc   :  { %v1380_v16 = vpop.f32.mrb[64].mxu1  ;;  %v1906_v7 = vsel %vm1650_vm2, %v1377_v50, %v1778_v44  ;;  %v2017_v8 = vpack.c.bf16 %v1905_v18, %v1903_v5 }
 0x1fd   :  { %v1381_v56 = vadd.f32 %v1380_v16, %v5764_v46  ;;  %v1382_v59 = vpop.f32.mrb[65].mxu1  ;;  %v2018_v14 = vpack.c.bf16 %v1906_v7, %v1904_v3 }
 0x1fe   :  { %v1383_v28 = vadd.f32 %v1382_v59, %v5771_v29  ;;  %v1384_v0 = vpop.f32.mrb[66].mxu1 }
 0x1ff   :  { %v1779_v51 = vmul.f32 0.01, %v1381_v56  ;;  %v1385_v13 = vadd.f32 %v1384_v0, %v5764_v46  ;;  %v1386_v23 = vpop.f32.mrb[67].mxu1  ;;  %2287 = vmatprep.mubr.bf16.mxu0 %v2018_v14  ;;  %vm1651_vm1 = vcmp.gt.f32.partialorder %v1381_v56, 0.0 }
 0x200   :  { %v1780_v43 = vmul.f32 0.01, %v1383_v28  ;;  %v1387_v34 = vadd.f32 %v1386_v23, %v5771_v29  ;;  %2288 = vmatmul.mubr.bf16.gmra.mrb[124].mxu0 %v2017_v8  ;;  %vm1652_vm10 = vcmp.gt.f32.partialorder %v1383_v28, 0.0 }
 0x201   :  { %vm1653_vm6 = vcmp.gt.f32.partialorder %v1385_v13, 0.0  ;;  %v1781_v38 = vmul.f32 0.01, %v1385_v13  ;;  %v1907_v12 = vsel %vm1651_vm1, %v1381_v56, %v1779_v51 }
 0x202   :  { %vm1654_vm3 = vcmp.gt.f32.partialorder %v1387_v34, 0.0  ;;  %v1782_v39 = vmul.f32 0.01, %v1387_v34  ;;  %v1908_v30 = vsel %vm1652_vm10, %v1383_v28, %v1780_v43 }
 0x203   :  { %v1909_v62 = vsel %vm1653_vm6, %v1385_v13, %v1781_v38 }
 0x204   :  { %v1390_v9 = vpop.f32.mrb[68].mxu1  ;;  %v1910_v25 = vsel %vm1654_vm3, %v1387_v34, %v1782_v39  ;;  %v2019_v61 = vpack.c.bf16 %v1909_v62, %v1907_v12 }
 0x205   :  { %v1391_v2 = vadd.f32 %v1390_v9, %v5764_v46  ;;  %v1392_v36 = vpop.f32.mrb[69].mxu1  ;;  %v2020_v10 = vpack.c.bf16 %v1910_v25, %v1908_v30 }
 0x206   :  { %v1393_v52 = vadd.f32 %v1392_v36, %v5771_v29  ;;  %v1394_v63 = vpop.f32.mrb[70].mxu1 }
 0x207   :  { %v1783_v33 = vmul.f32 0.01, %v1391_v2  ;;  %v1395_v6 = vadd.f32 %v1394_v63, %v5764_v46  ;;  %v1396_v26 = vpop.f32.mrb[71].mxu1  ;;  %2295 = vmatprep.mubr.bf16.mxu0 %v2020_v10  ;;  %vm1655_vm11 = vcmp.gt.f32.partialorder %v1391_v2, 0.0 }
 0x208   :  { %v1784_v42 = vmul.f32 0.01, %v1393_v52  ;;  %v1397_v17 = vadd.f32 %v1396_v26, %v5771_v29  ;;  %2296 = vmatmul.mubr.bf16.gmra.mrb[128].mxu0 %v2019_v61  ;;  %vm1656_vm9 = vcmp.gt.f32.partialorder %v1393_v52, 0.0 }
 0x209   :  { %vm1657_vm4 = vcmp.gt.f32.partialorder %v1395_v6, 0.0  ;;  %v1785_v37 = vmul.f32 0.01, %v1395_v6  ;;  %v1911_v32 = vsel %vm1655_vm11, %v1391_v2, %v1783_v33 }
 0x20a   :  { %vm1658_vm5 = vcmp.gt.f32.partialorder %v1397_v17, 0.0  ;;  %v1786_v53 = vmul.f32 0.01, %v1397_v17  ;;  %v1912_v58 = vsel %vm1656_vm9, %v1393_v52, %v1784_v42 }
 0x20b   :  { %v1913_v60 = vsel %vm1657_vm4, %v1395_v6, %v1785_v37 }
 0x20c   :  { %v1400_v31 = vpop.f32.mrb[72].mxu1  ;;  %v1914_v41 = vsel %vm1658_vm5, %v1397_v17, %v1786_v53  ;;  %v2021_v49 = vpack.c.bf16 %v1913_v60, %v1911_v32 }
 0x20d   :  { %v1401_v4 = vadd.f32 %v1400_v31, %v5764_v46  ;;  %v1402_v47 = vpop.f32.mrb[73].mxu1  ;;  %v2022_v20 = vpack.c.bf16 %v1914_v41, %v1912_v58 }
 0x20e   :  { %v1403_v27 = vadd.f32 %v1402_v47, %v5771_v29  ;;  %v1404_v19 = vpop.f32.mrb[74].mxu1 }
 0x20f   :  { %v1787_v40 = vmul.f32 0.01, %v1401_v4  ;;  %v1405_v54 = vadd.f32 %v1404_v19, %v5764_v46  ;;  %v1406_v35 = vpop.f32.mrb[75].mxu1  ;;  %2303 = vmatprep.mubr.bf16.mxu0 %v2022_v20  ;;  %vm1659_vm7 = vcmp.gt.f32.partialorder %v1401_v4, 0.0 }
 0x210   :  { %v1788_v24 = vmul.f32 0.01, %v1403_v27  ;;  %v1407_v1 = vadd.f32 %v1406_v35, %v5771_v29  ;;  %2304 = vmatmul.mubr.bf16.gmra.mrb[132].mxu0 %v2021_v49  ;;  %vm1660_vm8 = vcmp.gt.f32.partialorder %v1403_v27, 0.0 }
 0x211   :  { %vm1661_vm12 = vcmp.gt.f32.partialorder %v1405_v54, 0.0  ;;  %v1789_v45 = vmul.f32 0.01, %v1405_v54  ;;  %v1915_v21 = vsel %vm1659_vm7, %v1401_v4, %v1787_v40 }
 0x212   :  { %vm1662_vm13 = vcmp.gt.f32.partialorder %v1407_v1, 0.0  ;;  %v1790_v11 = vmul.f32 0.01, %v1407_v1  ;;  %v1916_v48 = vsel %vm1660_vm8, %v1403_v27, %v1788_v24 }
 0x213   :  { %v1917_v22 = vsel %vm1661_vm12, %v1405_v54, %v1789_v45 }
 0x214   :  { %v1410_v57 = vpop.f32.mrb[76].mxu1  ;;  %v1918_v50 = vsel %vm1662_vm13, %v1407_v1, %v1790_v11  ;;  %v2023_v15 = vpack.c.bf16 %v1917_v22, %v1915_v21 }
 0x215   :  { %v1411_v44 = vadd.f32 %v1410_v57, %v5764_v46  ;;  %v1412_v5 = vpop.f32.mrb[77].mxu1  ;;  %v2024_v18 = vpack.c.bf16 %v1918_v50, %v1916_v48 }
 0x216   :  { %v1413_v16 = vadd.f32 %v1412_v5, %v5771_v29  ;;  %v1414_v3 = vpop.f32.mrb[78].mxu1 }
 0x217   :  { %v1791_v7 = vmul.f32 0.01, %v1411_v44  ;;  %v1415_v8 = vadd.f32 %v1414_v3, %v5764_v46  ;;  %v1416_v56 = vpop.f32.mrb[79].mxu1  ;;  %2311 = vmatprep.mubr.bf16.mxu0 %v2024_v18  ;;  %vm1663_vm14 = vcmp.gt.f32.partialorder %v1411_v44, 0.0 }
 0x218   :  { %v1792_v59 = vmul.f32 0.01, %v1413_v16  ;;  %v1417_v14 = vadd.f32 %v1416_v56, %v5771_v29  ;;  %2312 = vmatmul.mubr.bf16.gmra.mrb[136].mxu0 %v2023_v15  ;;  %vm1664_vm15 = vcmp.gt.f32.partialorder %v1413_v16, 0.0 }
 0x219   :  { %vm1665_vm0 = vcmp.gt.f32.partialorder %v1415_v8, 0.0  ;;  %v1793_v28 = vmul.f32 0.01, %v1415_v8  ;;  %v1919_v51 = vsel %vm1663_vm14, %v1411_v44, %v1791_v7 }
 0x21a   :  { %vm1666_vm2 = vcmp.gt.f32.partialorder %v1417_v14, 0.0  ;;  %v1794_v0 = vmul.f32 0.01, %v1417_v14  ;;  %v1920_v43 = vsel %vm1664_vm15, %v1413_v16, %v1792_v59 }
 0x21b   :  { %v1921_v13 = vsel %vm1665_vm0, %v1415_v8, %v1793_v28 }
 0x21c   :  { %v1922_v34 = vsel %vm1666_vm2, %v1417_v14, %v1794_v0  ;;  %v2025_v38 = vpack.c.bf16 %v1921_v13, %v1919_v51 }
 0x21d   :  { %v1420_v23 = vpop.f32.mrb[80].mxu1  ;;  %v2026_v62 = vpack.c.bf16 %v1922_v34, %v1920_v43 }
 0x21e   :  { %v1421_v39 = vadd.f32 %v1420_v23, %v5764_v46  ;;  %v1422_v12 = vpop.f32.mrb[81].mxu1 }
 0x21f   :  { %v1423_v9 = vadd.f32 %v1422_v12, %v5771_v29  ;;  %v1424_v30 = vpop.f32.mrb[82].mxu1  ;;  %2319 = vmatprep.mubr.bf16.mxu0 %v2026_v62 }
 0x220   :  { %v1795_v25 = vmul.f32 0.01, %v1421_v39  ;;  %v1425_v61 = vadd.f32 %v1424_v30, %v5764_v46  ;;  %v1426_v2 = vpop.f32.mrb[83].mxu1  ;;  %vm1667_vm1 = vcmp.gt.f32.partialorder %v1421_v39, 0.0  ;;  %2320 = vmatmul.mubr.bf16.gmra.mrb[140].mxu0 %v2025_v38 }
 0x221   :  { %v1796_v36 = vmul.f32 0.01, %v1423_v9  ;;  %v1427_v10 = vadd.f32 %v1426_v2, %v5771_v29  ;;  %vm1668_vm10 = vcmp.gt.f32.partialorder %v1423_v9, 0.0 }
 0x222   :  { %vm1669_vm6 = vcmp.gt.f32.partialorder %v1425_v61, 0.0  ;;  %v1797_v52 = vmul.f32 0.01, %v1425_v61  ;;  %v1923_v33 = vsel %vm1667_vm1, %v1421_v39, %v1795_v25 }
 0x223   :  { %vm1670_vm3 = vcmp.gt.f32.partialorder %v1427_v10, 0.0  ;;  %v1798_v63 = vmul.f32 0.01, %v1427_v10  ;;  %v1924_v42 = vsel %vm1668_vm10, %v1423_v9, %v1796_v36 }
 0x224   :  { %v1925_v6 = vsel %vm1669_vm6, %v1425_v61, %v1797_v52 }
 0x225   :  { %v1926_v17 = vsel %vm1670_vm3, %v1427_v10, %v1798_v63  ;;  %v2027_v37 = vpack.c.bf16 %v1925_v6, %v1923_v33 }
 0x226   :  { %v1430_v26 = vpop.f32.mrb[84].mxu1  ;;  %v2028_v60 = vpack.c.bf16 %v1926_v17, %v1924_v42 }
 0x227   :  { %v1431_v53 = vadd.f32 %v1430_v26, %v5764_v46  ;;  %v1432_v32 = vpop.f32.mrb[85].mxu1 }
 0x228   :  { %v1433_v31 = vadd.f32 %v1432_v32, %v5771_v29  ;;  %v1434_v58 = vpop.f32.mrb[86].mxu1  ;;  %2327 = vmatprep.mubr.bf16.mxu0 %v2028_v60 }
 0x229   :  { %v1799_v41 = vmul.f32 0.01, %v1431_v53  ;;  %v1435_v49 = vadd.f32 %v1434_v58, %v5764_v46  ;;  %v1436_v4 = vpop.f32.mrb[87].mxu1  ;;  %vm1671_vm11 = vcmp.gt.f32.partialorder %v1431_v53, 0.0  ;;  %2328 = vmatmul.mubr.bf16.gmra.mrb[144].mxu0 %v2027_v37 }
 0x22a   :  { %v1800_v47 = vmul.f32 0.01, %v1433_v31  ;;  %v1437_v20 = vadd.f32 %v1436_v4, %v5771_v29  ;;  %vm1672_vm9 = vcmp.gt.f32.partialorder %v1433_v31, 0.0 }
 0x22b   :  { %vm1673_vm4 = vcmp.gt.f32.partialorder %v1435_v49, 0.0  ;;  %v1801_v27 = vmul.f32 0.01, %v1435_v49  ;;  %v1927_v40 = vsel %vm1671_vm11, %v1431_v53, %v1799_v41 }
 0x22c   :  { %vm1674_vm5 = vcmp.gt.f32.partialorder %v1437_v20, 0.0  ;;  %v1802_v19 = vmul.f32 0.01, %v1437_v20  ;;  %v1928_v55 = vsel %vm1672_vm9, %v1433_v31, %v1800_v47 }
 0x22d   :  { %v1929_v54 = vsel %vm1673_vm4, %v1435_v49, %v1801_v27 }
 0x22e   :  { %v1440_v35 = vpop.f32.mrb[88].mxu1  ;;  %v1930_v24 = vsel %vm1674_vm5, %v1437_v20, %v1802_v19  ;;  %v2029_v1 = vpack.c.bf16 %v1929_v54, %v1927_v40 }
 0x22f   :  { %v1441_v45 = vadd.f32 %v1440_v35, %v5764_v46  ;;  %v1442_v11 = vpop.f32.mrb[89].mxu1  ;;  %v2030_v21 = vpack.c.bf16 %v1930_v24, %v1928_v55 }
 0x230   :  { %v1443_v22 = vadd.f32 %v1442_v11, %v5771_v29  ;;  %v1444_v57 = vpop.f32.mrb[90].mxu1 }
 0x231   :  { %v1803_v48 = vmul.f32 0.01, %v1441_v45  ;;  %v1445_v50 = vadd.f32 %v1444_v57, %v5764_v46  ;;  %v1446_v15 = vpop.f32.mrb[91].mxu1  ;;  %2335 = vmatprep.mubr.bf16.mxu0 %v2030_v21  ;;  %vm1675_vm7 = vcmp.gt.f32.partialorder %v1441_v45, 0.0 }
 0x232   :  { %v1804_v44 = vmul.f32 0.01, %v1443_v22  ;;  %v1447_v5 = vadd.f32 %v1446_v15, %v5771_v29  ;;  %2336 = vmatmul.mubr.bf16.gmra.mrb[148].mxu0 %v2029_v1  ;;  %vm1676_vm8 = vcmp.gt.f32.partialorder %v1443_v22, 0.0 }
 0x233   :  { %vm1677_vm12 = vcmp.gt.f32.partialorder %v1445_v50, 0.0  ;;  %v1805_v18 = vmul.f32 0.01, %v1445_v50  ;;  %v1931_v3 = vsel %vm1675_vm7, %v1441_v45, %v1803_v48 }
 0x234   :  { %vm1678_vm13 = vcmp.gt.f32.partialorder %v1447_v5, 0.0  ;;  %v1806_v16 = vmul.f32 0.01, %v1447_v5  ;;  %v1932_v56 = vsel %vm1676_vm8, %v1443_v22, %v1804_v44 }
 0x235   :  { %v1933_v7 = vsel %vm1677_vm12, %v1445_v50, %v1805_v18 }
 0x236   :  { %v1450_v8 = vpop.f32.mrb[92].mxu1  ;;  %v1934_v59 = vsel %vm1678_vm13, %v1447_v5, %v1806_v16  ;;  %v2031_v14 = vpack.c.bf16 %v1933_v7, %v1931_v3 }
 0x237   :  { %v1451_v28 = vadd.f32 %v1450_v8, %v5764_v46  ;;  %v1452_v0 = vpop.f32.mrb[93].mxu1  ;;  %v2032_v51 = vpack.c.bf16 %v1934_v59, %v1932_v56 }
 0x238   :  { %v1453_v13 = vadd.f32 %v1452_v0, %v5771_v29  ;;  %v1454_v23 = vpop.f32.mrb[94].mxu1 }
 0x239   :  { %v1807_v43 = vmul.f32 0.01, %v1451_v28  ;;  %v1455_v34 = vadd.f32 %v1454_v23, %v5764_v46  ;;  %v1456_v38 = vpop.f32.mrb[95].mxu1  ;;  %2343 = vmatprep.mubr.bf16.mxu0 %v2032_v51  ;;  %vm1679_vm14 = vcmp.gt.f32.partialorder %v1451_v28, 0.0 }
 0x23a   :  { %v1808_v39 = vmul.f32 0.01, %v1453_v13  ;;  %v1457_v12 = vadd.f32 %v1456_v38, %v5771_v29  ;;  %2344 = vmatmul.mubr.bf16.gmra.mrb[152].mxu0 %v2031_v14  ;;  %vm1680_vm15 = vcmp.gt.f32.partialorder %v1453_v13, 0.0 }
 0x23b   :  { %vm1681_vm0 = vcmp.gt.f32.partialorder %v1455_v34, 0.0  ;;  %v1809_v62 = vmul.f32 0.01, %v1455_v34  ;;  %v1935_v30 = vsel %vm1679_vm14, %v1451_v28, %v1807_v43 }
 0x23c   :  { %vm1682_vm2 = vcmp.gt.f32.partialorder %v1457_v12, 0.0  ;;  %v1810_v9 = vmul.f32 0.01, %v1457_v12  ;;  %v1936_v2 = vsel %vm1680_vm15, %v1453_v13, %v1808_v39 }
 0x23d   :  { %v1937_v25 = vsel %vm1681_vm0, %v1455_v34, %v1809_v62 }
 0x23e   :  { %v1460_v61 = vpop.f32.mrb[96].mxu1  ;;  %v1938_v36 = vsel %vm1682_vm2, %v1457_v12, %v1810_v9  ;;  %v2033_v10 = vpack.c.bf16 %v1937_v25, %v1935_v30 }
 0x23f   :  { %v1461_v52 = vadd.f32 %v1460_v61, %v5764_v46  ;;  %v1462_v63 = vpop.f32.mrb[97].mxu1  ;;  %v2034_v33 = vpack.c.bf16 %v1938_v36, %v1936_v2 }
 0x240   :  { %v1463_v6 = vadd.f32 %v1462_v63, %v5771_v29  ;;  %v1464_v26 = vpop.f32.mrb[98].mxu1 }
 0x241   :  { %v1811_v42 = vmul.f32 0.01, %v1461_v52  ;;  %v1465_v17 = vadd.f32 %v1464_v26, %v5764_v46  ;;  %v1466_v37 = vpop.f32.mrb[99].mxu1  ;;  %2351 = vmatprep.mubr.bf16.mxu0 %v2034_v33  ;;  %vm1683_vm1 = vcmp.gt.f32.partialorder %v1461_v52, 0.0 }
 0x242   :  { %v1812_v53 = vmul.f32 0.01, %v1463_v6  ;;  %v1467_v32 = vadd.f32 %v1466_v37, %v5771_v29  ;;  %2352 = vmatmul.mubr.bf16.gmra.mrb[156].mxu0 %v2033_v10  ;;  %vm1684_vm10 = vcmp.gt.f32.partialorder %v1463_v6, 0.0 }
 0x243   :  { %vm1685_vm6 = vcmp.gt.f32.partialorder %v1465_v17, 0.0  ;;  %v1813_v60 = vmul.f32 0.01, %v1465_v17  ;;  %v1939_v58 = vsel %vm1683_vm1, %v1461_v52, %v1811_v42 }
 0x244   :  { %vm1686_vm3 = vcmp.gt.f32.partialorder %v1467_v32, 0.0  ;;  %v1814_v31 = vmul.f32 0.01, %v1467_v32  ;;  %v1940_v4 = vsel %vm1684_vm10, %v1463_v6, %v1812_v53 }
 0x245   :  { %v1941_v41 = vsel %vm1685_vm6, %v1465_v17, %v1813_v60 }
 0x246   :  { %v1470_v49 = vpop.f32.mrb[100].mxu1  ;;  %v1942_v47 = vsel %vm1686_vm3, %v1467_v32, %v1814_v31  ;;  %v2035_v20 = vpack.c.bf16 %v1941_v41, %v1939_v58 }
 0x247   :  { %v1471_v27 = vadd.f32 %v1470_v49, %v5764_v46  ;;  %v1472_v19 = vpop.f32.mrb[101].mxu1  ;;  %v2036_v40 = vpack.c.bf16 %v1942_v47, %v1940_v4 }
 0x248   :  { %v1473_v54 = vadd.f32 %v1472_v19, %v5771_v29  ;;  %v1474_v35 = vpop.f32.mrb[102].mxu1 }
 0x249   :  { %v1815_v55 = vmul.f32 0.01, %v1471_v27  ;;  %v1475_v24 = vadd.f32 %v1474_v35, %v5764_v46  ;;  %v1476_v1 = vpop.f32.mrb[103].mxu1  ;;  %2359 = vmatprep.mubr.bf16.mxu0 %v2036_v40  ;;  %vm1687_vm11 = vcmp.gt.f32.partialorder %v1471_v27, 0.0 }
 0x24a   :  { %v1816_v45 = vmul.f32 0.01, %v1473_v54  ;;  %v1477_v11 = vadd.f32 %v1476_v1, %v5771_v29  ;;  %2360 = vmatmul.mubr.bf16.gmra.mrb[160].mxu0 %v2035_v20  ;;  %vm1688_vm9 = vcmp.gt.f32.partialorder %v1473_v54, 0.0 }
 0x24b   :  { %vm1689_vm4 = vcmp.gt.f32.partialorder %v1475_v24, 0.0  ;;  %v1817_v21 = vmul.f32 0.01, %v1475_v24  ;;  %v1943_v57 = vsel %vm1687_vm11, %v1471_v27, %v1815_v55 }
 0x24c   :  { %vm1690_vm5 = vcmp.gt.f32.partialorder %v1477_v11, 0.0  ;;  %v1818_v22 = vmul.f32 0.01, %v1477_v11  ;;  %v1944_v15 = vsel %vm1688_vm9, %v1473_v54, %v1816_v45 }
 0x24d   :  { %v1945_v48 = vsel %vm1689_vm4, %v1475_v24, %v1817_v21 }
 0x24e   :  { %v1480_v50 = vpop.f32.mrb[104].mxu1  ;;  %v1946_v44 = vsel %vm1690_vm5, %v1477_v11, %v1818_v22  ;;  %v2037_v5 = vpack.c.bf16 %v1945_v48, %v1943_v57 }
 0x24f   :  { %v1481_v18 = vadd.f32 %v1480_v50, %v5764_v46  ;;  %v1482_v16 = vpop.f32.mrb[105].mxu1  ;;  %v2038_v3 = vpack.c.bf16 %v1946_v44, %v1944_v15 }
 0x250   :  { %v1483_v7 = vadd.f32 %v1482_v16, %v5771_v29  ;;  %v1484_v8 = vpop.f32.mrb[106].mxu1 }
 0x251   :  { %v1819_v56 = vmul.f32 0.01, %v1481_v18  ;;  %v1485_v59 = vadd.f32 %v1484_v8, %v5764_v46  ;;  %v1486_v14 = vpop.f32.mrb[107].mxu1  ;;  %2367 = vmatprep.mubr.bf16.mxu0 %v2038_v3  ;;  %vm1691_vm7 = vcmp.gt.f32.partialorder %v1481_v18, 0.0 }
 0x252   :  { %v1820_v28 = vmul.f32 0.01, %v1483_v7  ;;  %v1487_v0 = vadd.f32 %v1486_v14, %v5771_v29  ;;  %2368 = vmatmul.mubr.bf16.gmra.mrb[164].mxu0 %v2037_v5  ;;  %vm1692_vm8 = vcmp.gt.f32.partialorder %v1483_v7, 0.0 }
 0x253   :  { %vm1693_vm12 = vcmp.gt.f32.partialorder %v1485_v59, 0.0  ;;  %v1821_v51 = vmul.f32 0.01, %v1485_v59  ;;  %v1947_v23 = vsel %vm1691_vm7, %v1481_v18, %v1819_v56 }
 0x254   :  { %vm1694_vm13 = vcmp.gt.f32.partialorder %v1487_v0, 0.0  ;;  %v1822_v13 = vmul.f32 0.01, %v1487_v0  ;;  %v1948_v38 = vsel %vm1692_vm8, %v1483_v7, %v1820_v28 }
 0x255   :  { %v1949_v43 = vsel %vm1693_vm12, %v1485_v59, %v1821_v51 }
 0x256   :  { %v1490_v34 = vpop.f32.mrb[108].mxu1  ;;  %v1950_v39 = vsel %vm1694_vm13, %v1487_v0, %v1822_v13  ;;  %v2039_v12 = vpack.c.bf16 %v1949_v43, %v1947_v23 }
 0x257   :  { %v1491_v62 = vadd.f32 %v1490_v34, %v5764_v46  ;;  %v1492_v9 = vpop.f32.mrb[109].mxu1  ;;  %v2040_v30 = vpack.c.bf16 %v1950_v39, %v1948_v38 }
 0x258   :  { %v1493_v25 = vadd.f32 %v1492_v9, %v5771_v29  ;;  %v1494_v61 = vpop.f32.mrb[110].mxu1 }
 0x259   :  { %v1823_v2 = vmul.f32 0.01, %v1491_v62  ;;  %v1495_v36 = vadd.f32 %v1494_v61, %v5764_v46  ;;  %v1496_v10 = vpop.f32.mrb[111].mxu1  ;;  %2375 = vmatprep.mubr.bf16.mxu0 %v2040_v30  ;;  %vm1695_vm14 = vcmp.gt.f32.partialorder %v1491_v62, 0.0 }
 0x25a   :  { %v1824_v52 = vmul.f32 0.01, %v1493_v25  ;;  %v1497_v63 = vadd.f32 %v1496_v10, %v5771_v29  ;;  %2376 = vmatmul.mubr.bf16.gmra.mrb[168].mxu0 %v2039_v12  ;;  %vm1696_vm15 = vcmp.gt.f32.partialorder %v1493_v25, 0.0 }
 0x25b   :  { %vm1697_vm0 = vcmp.gt.f32.partialorder %v1495_v36, 0.0  ;;  %v1825_v33 = vmul.f32 0.01, %v1495_v36  ;;  %v1951_v26 = vsel %vm1695_vm14, %v1491_v62, %v1823_v2 }
 0x25c   :  { %vm1698_vm2 = vcmp.gt.f32.partialorder %v1497_v63, 0.0  ;;  %v1826_v6 = vmul.f32 0.01, %v1497_v63  ;;  %v1952_v37 = vsel %vm1696_vm15, %v1493_v25, %v1824_v52 }
 0x25d   :  { %v1953_v42 = vsel %vm1697_vm0, %v1495_v36, %v1825_v33 }
 0x25e   :  { %v1500_v17 = vpop.f32.mrb[112].mxu1  ;;  %v1954_v53 = vsel %vm1698_vm2, %v1497_v63, %v1826_v6  ;;  %v2041_v32 = vpack.c.bf16 %v1953_v42, %v1951_v26 }
 0x25f   :  { %v1501_v60 = vadd.f32 %v1500_v17, %v5764_v46  ;;  %v1502_v31 = vpop.f32.mrb[113].mxu1  ;;  %v2042_v58 = vpack.c.bf16 %v1954_v53, %v1952_v37 }
 0x260   :  { %v1503_v41 = vadd.f32 %v1502_v31, %v5771_v29  ;;  %v1504_v49 = vpop.f32.mrb[114].mxu1 }
 0x261   :  { %v1827_v4 = vmul.f32 0.01, %v1501_v60  ;;  %v1505_v47 = vadd.f32 %v1504_v49, %v5764_v46  ;;  %v1506_v20 = vpop.f32.mrb[115].mxu1  ;;  %2383 = vmatprep.mubr.bf16.mxu0 %v2042_v58  ;;  %vm1699_vm1 = vcmp.gt.f32.partialorder %v1501_v60, 0.0 }
 0x262   :  { %v1828_v27 = vmul.f32 0.01, %v1503_v41  ;;  %v1507_v19 = vadd.f32 %v1506_v20, %v5771_v29  ;;  %2384 = vmatmul.mubr.bf16.gmra.mrb[172].mxu0 %v2041_v32  ;;  %vm1700_vm10 = vcmp.gt.f32.partialorder %v1503_v41, 0.0 }
 0x263   :  { %vm1701_vm6 = vcmp.gt.f32.partialorder %v1505_v47, 0.0  ;;  %v1829_v40 = vmul.f32 0.01, %v1505_v47  ;;  %v1955_v35 = vsel %vm1699_vm1, %v1501_v60, %v1827_v4 }
 0x264   :  { %vm1702_vm3 = vcmp.gt.f32.partialorder %v1507_v19, 0.0  ;;  %v1830_v54 = vmul.f32 0.01, %v1507_v19  ;;  %v1956_v1 = vsel %vm1700_vm10, %v1503_v41, %v1828_v27 }
 0x265   :  { %v1957_v55 = vsel %vm1701_vm6, %v1505_v47, %v1829_v40 }
 0x266   :  { %v1510_v24 = vpop.f32.mrb[116].mxu1  ;;  %v1958_v45 = vsel %vm1702_vm3, %v1507_v19, %v1830_v54  ;;  %v2043_v11 = vpack.c.bf16 %v1957_v55, %v1955_v35 }
 0x267   :  { %v1511_v21 = vadd.f32 %v1510_v24, %v5764_v46  ;;  %v1512_v22 = vpop.f32.mrb[117].mxu1  ;;  %v2044_v57 = vpack.c.bf16 %v1958_v45, %v1956_v1 }
 0x268   :  { %v1513_v48 = vadd.f32 %v1512_v22, %v5771_v29  ;;  %v1514_v50 = vpop.f32.mrb[118].mxu1 }
 0x269   :  { %v1831_v15 = vmul.f32 0.01, %v1511_v21  ;;  %v1515_v44 = vadd.f32 %v1514_v50, %v5764_v46  ;;  %v1516_v5 = vpop.f32.mrb[119].mxu1  ;;  %2391 = vmatprep.mubr.bf16.mxu0 %v2044_v57  ;;  %vm1703_vm11 = vcmp.gt.f32.partialorder %v1511_v21, 0.0 }
 0x26a   :  { %v1832_v18 = vmul.f32 0.01, %v1513_v48  ;;  %v1517_v16 = vadd.f32 %v1516_v5, %v5771_v29  ;;  %2392 = vmatmul.mubr.bf16.gmra.mrb[176].mxu0 %v2043_v11  ;;  %vm1704_vm9 = vcmp.gt.f32.partialorder %v1513_v48, 0.0 }
 0x26b   :  { %vm1705_vm4 = vcmp.gt.f32.partialorder %v1515_v44, 0.0  ;;  %v1833_v3 = vmul.f32 0.01, %v1515_v44  ;;  %v1959_v8 = vsel %vm1703_vm11, %v1511_v21, %v1831_v15 }
 0x26c   :  { %vm1706_vm5 = vcmp.gt.f32.partialorder %v1517_v16, 0.0  ;;  %v1834_v7 = vmul.f32 0.01, %v1517_v16  ;;  %v1960_v14 = vsel %vm1704_vm9, %v1513_v48, %v1832_v18 }
 0x26d   :  { %v1961_v56 = vsel %vm1705_vm4, %v1515_v44, %v1833_v3 }
 0x26e   :  { %v1520_v59 = vpop.f32.mrb[120].mxu1  ;;  %v1962_v28 = vsel %vm1706_vm5, %v1517_v16, %v1834_v7  ;;  %v2045_v0 = vpack.c.bf16 %v1961_v56, %v1959_v8 }
 0x26f   :  { %v1521_v51 = vadd.f32 %v1520_v59, %v5764_v46  ;;  %v1522_v13 = vpop.f32.mrb[121].mxu1  ;;  %v2046_v23 = vpack.c.bf16 %v1962_v28, %v1960_v14 }
 0x270   :  { %v1523_v43 = vadd.f32 %v1522_v13, %v5771_v29  ;;  %v1524_v34 = vpop.f32.mrb[122].mxu1 }
 0x271   :  { %v1835_v38 = vmul.f32 0.01, %v1521_v51  ;;  %v1525_v39 = vadd.f32 %v1524_v34, %v5764_v46  ;;  %v1526_v12 = vpop.f32.mrb[123].mxu1  ;;  %2399 = vmatprep.mubr.bf16.mxu0 %v2046_v23  ;;  %vm1707_vm7 = vcmp.gt.f32.partialorder %v1521_v51, 0.0 }
 0x272   :  { %v1836_v62 = vmul.f32 0.01, %v1523_v43  ;;  %v1527_v9 = vadd.f32 %v1526_v12, %v5771_v29  ;;  %2400 = vmatmul.mubr.bf16.gmra.mrb[180].mxu0 %v2045_v0  ;;  %vm1708_vm8 = vcmp.gt.f32.partialorder %v1523_v43, 0.0 }
 0x273   :  { %vm1709_vm12 = vcmp.gt.f32.partialorder %v1525_v39, 0.0  ;;  %v1837_v30 = vmul.f32 0.01, %v1525_v39  ;;  %v1963_v61 = vsel %vm1707_vm7, %v1521_v51, %v1835_v38 }
 0x274   :  { %vm1710_vm13 = vcmp.gt.f32.partialorder %v1527_v9, 0.0  ;;  %v1838_v25 = vmul.f32 0.01, %v1527_v9  ;;  %v1964_v10 = vsel %vm1708_vm8, %v1523_v43, %v1836_v62 }
 0x275   :  { %v1965_v2 = vsel %vm1709_vm12, %v1525_v39, %v1837_v30 }
 0x276   :  { %v1530_v36 = vpop.f32.mrb[124].mxu1  ;;  %v1966_v52 = vsel %vm1710_vm13, %v1527_v9, %v1838_v25  ;;  %v2047_v63 = vpack.c.bf16 %v1965_v2, %v1963_v61 }
 0x277   :  { %v1531_v33 = vadd.f32 %v1530_v36, %v5764_v46  ;;  %v1532_v6 = vpop.f32.mrb[125].mxu1  ;;  %v2048_v26 = vpack.c.bf16 %v1966_v52, %v1964_v10 }
 0x278   :  { %v1533_v42 = vadd.f32 %v1532_v6, %v5771_v29  ;;  %v1534_v17 = vpop.f32.mrb[126].mxu1 }
 0x279   :  { %v1839_v37 = vmul.f32 0.01, %v1531_v33  ;;  %v1535_v53 = vadd.f32 %v1534_v17, %v5764_v46  ;;  %v1536_v32 = vpop.f32.mrb[127].mxu1  ;;  %2407 = vmatprep.mubr.bf16.mxu0 %v2048_v26  ;;  %vm1711_vm14 = vcmp.gt.f32.partialorder %v1531_v33, 0.0 }
 0x27a   :  { %v1840_v60 = vmul.f32 0.01, %v1533_v42  ;;  %v1537_v31 = vadd.f32 %v1536_v32, %v5771_v29  ;;  %2408 = vmatmul.mubr.bf16.gmra.mrb[184].mxu0 %v2047_v63  ;;  %vm1712_vm15 = vcmp.gt.f32.partialorder %v1533_v42, 0.0 }
 0x27b   :  { %vm1713_vm0 = vcmp.gt.f32.partialorder %v1535_v53, 0.0  ;;  %v1841_v58 = vmul.f32 0.01, %v1535_v53  ;;  %v1967_v49 = vsel %vm1711_vm14, %v1531_v33, %v1839_v37 }
 0x27c   :  { %vm1714_vm2 = vcmp.gt.f32.partialorder %v1537_v31, 0.0  ;;  %v1842_v41 = vmul.f32 0.01, %v1537_v31  ;;  %v1968_v20 = vsel %vm1712_vm15, %v1533_v42, %v1840_v60 }
 0x27d   :  { %v1969_v4 = vsel %vm1713_vm0, %v1535_v53, %v1841_v58 }
 0x27e   :  { %v1540_v47 = vpop.f32.mrb[128].mxu1  ;;  %v1970_v27 = vsel %vm1714_vm2, %v1537_v31, %v1842_v41  ;;  %v2049_v19 = vpack.c.bf16 %v1969_v4, %v1967_v49 }
 0x27f   :  { %v1541_v40 = vadd.f32 %v1540_v47, %v5764_v46  ;;  %v1542_v54 = vpop.f32.mrb[129].mxu1  ;;  %v2050_v35 = vpack.c.bf16 %v1970_v27, %v1968_v20 }
 0x280   :  { %v1543_v55 = vadd.f32 %v1542_v54, %v5771_v29  ;;  %v1544_v24 = vpop.f32.mrb[130].mxu1 }
 0x281   :  { %v1843_v1 = vmul.f32 0.01, %v1541_v40  ;;  %v1545_v45 = vadd.f32 %v1544_v24, %v5764_v46  ;;  %v1546_v11 = vpop.f32.mrb[131].mxu1  ;;  %2415 = vmatprep.mubr.bf16.mxu0 %v2050_v35  ;;  %vm1715_vm1 = vcmp.gt.f32.partialorder %v1541_v40, 0.0 }
 0x282   :  { %v1844_v21 = vmul.f32 0.01, %v1543_v55  ;;  %v1547_v22 = vadd.f32 %v1546_v11, %v5771_v29  ;;  %2416 = vmatmul.mubr.bf16.gmra.mrb[188].mxu0 %v2049_v19  ;;  %vm1716_vm10 = vcmp.gt.f32.partialorder %v1543_v55, 0.0 }
 0x283   :  { %vm1717_vm6 = vcmp.gt.f32.partialorder %v1545_v45, 0.0  ;;  %v1845_v57 = vmul.f32 0.01, %v1545_v45  ;;  %v1971_v50 = vsel %vm1715_vm1, %v1541_v40, %v1843_v1 }
 0x284   :  { %vm1718_vm3 = vcmp.gt.f32.partialorder %v1547_v22, 0.0  ;;  %v1846_v48 = vmul.f32 0.01, %v1547_v22  ;;  %v1972_v5 = vsel %vm1716_vm10, %v1543_v55, %v1844_v21  ;;  %v5924_v55 = vld [vmem:[%s6895_s5] ss:$0 sm:$0xff] }
 0x285   :  { %v1973_v15 = vsel %vm1717_vm6, %v1545_v45, %v1845_v57 }
 0x286   :  { %v1550_v44 = vpop.f32.mrb[132].mxu1  ;;  %v1974_v18 = vsel %vm1718_vm3, %v1547_v22, %v1846_v48  ;;  %v2051_v16 = vpack.c.bf16 %v1973_v15, %v1971_v50 }
 0x287   :  { %v1551_v3 = vadd.f32 %v1550_v44, %v5764_v46  ;;  %v1552_v7 = vpop.f32.mrb[133].mxu1  ;;  %v2052_v8 = vpack.c.bf16 %v1974_v18, %v1972_v5 }
 0x288   :  { %v1553_v56 = vadd.f32 %v1552_v7, %v5771_v29  ;;  %v1554_v59 = vpop.f32.mrb[134].mxu1 }
 0x289   :  { %v1847_v14 = vmul.f32 0.01, %v1551_v3  ;;  %v1555_v28 = vadd.f32 %v1554_v59, %v5764_v46  ;;  %v1556_v0 = vpop.f32.mrb[135].mxu1  ;;  %2423 = vmatprep.mubr.bf16.mxu0 %v2052_v8  ;;  %vm1719_vm11 = vcmp.gt.f32.partialorder %v1551_v3, 0.0 }
 0x28a   :  { %v1848_v51 = vmul.f32 0.01, %v1553_v56  ;;  %v1557_v13 = vadd.f32 %v1556_v0, %v5771_v29  ;;  %2424 = vmatmul.mubr.bf16.gmra.mrb[192].mxu0 %v2051_v16  ;;  %vm1720_vm9 = vcmp.gt.f32.partialorder %v1553_v56, 0.0 }
 0x28b   :  { %vm1721_vm4 = vcmp.gt.f32.partialorder %v1555_v28, 0.0  ;;  %v1849_v23 = vmul.f32 0.01, %v1555_v28  ;;  %v1975_v34 = vsel %vm1719_vm11, %v1551_v3, %v1847_v14 }
 0x28c   :  { %vm1722_vm5 = vcmp.gt.f32.partialorder %v1557_v13, 0.0  ;;  %v1850_v43 = vmul.f32 0.01, %v1557_v13  ;;  %v1976_v12 = vsel %vm1720_vm9, %v1553_v56, %v1848_v51 }
 0x28d   :  { %v1977_v38 = vsel %vm1721_vm4, %v1555_v28, %v1849_v23 }
 0x28e   :  { %v1560_v39 = vpop.f32.mrb[136].mxu1  ;;  %v1978_v62 = vsel %vm1722_vm5, %v1557_v13, %v1850_v43  ;;  %v2053_v9 = vpack.c.bf16 %v1977_v38, %v1975_v34 }
 0x28f   :  { %v1561_v30 = vadd.f32 %v1560_v39, %v5764_v46  ;;  %v1562_v25 = vpop.f32.mrb[137].mxu1  ;;  %v2054_v61 = vpack.c.bf16 %v1978_v62, %v1976_v12 }
 0x290   :  { %v1563_v2 = vadd.f32 %v1562_v25, %v5771_v29  ;;  %v1564_v36 = vpop.f32.mrb[138].mxu1 }
 0x291   :  { %v1851_v10 = vmul.f32 0.01, %v1561_v30  ;;  %v1565_v52 = vadd.f32 %v1564_v36, %v5764_v46  ;;  %v1566_v63 = vpop.f32.mrb[139].mxu1  ;;  %2431 = vmatprep.mubr.bf16.mxu0 %v2054_v61  ;;  %vm1723_vm7 = vcmp.gt.f32.partialorder %v1561_v30, 0.0 }
 0x292   :  { %v1852_v33 = vmul.f32 0.01, %v1563_v2  ;;  %v1567_v6 = vadd.f32 %v1566_v63, %v5771_v29  ;;  %2432 = vmatmul.mubr.bf16.gmra.mrb[196].mxu0 %v2053_v9  ;;  %vm1724_vm8 = vcmp.gt.f32.partialorder %v1563_v2, 0.0 }
 0x293   :  { %vm1725_vm12 = vcmp.gt.f32.partialorder %v1565_v52, 0.0  ;;  %v1853_v26 = vmul.f32 0.01, %v1565_v52  ;;  %v1979_v17 = vsel %vm1723_vm7, %v1561_v30, %v1851_v10 }
 0x294   :  { %vm1726_vm13 = vcmp.gt.f32.partialorder %v1567_v6, 0.0  ;;  %v1854_v42 = vmul.f32 0.01, %v1567_v6  ;;  %v1980_v32 = vsel %vm1724_vm8, %v1563_v2, %v1852_v33 }
 0x295   :  { %v1981_v37 = vsel %vm1725_vm12, %v1565_v52, %v1853_v26 }
 0x296   :  { %v1570_v53 = vpop.f32.mrb[140].mxu1  ;;  %v1982_v60 = vsel %vm1726_vm13, %v1567_v6, %v1854_v42  ;;  %v2055_v31 = vpack.c.bf16 %v1981_v37, %v1979_v17 }
 0x297   :  { %v1571_v58 = vadd.f32 %v1570_v53, %v5764_v46  ;;  %v1572_v41 = vpop.f32.mrb[141].mxu1  ;;  %v2056_v49 = vpack.c.bf16 %v1982_v60, %v1980_v32 }
 0x298   :  { %v1573_v4 = vadd.f32 %v1572_v41, %v5771_v29  ;;  %v1574_v47 = vpop.f32.mrb[142].mxu1 }
 0x299   :  { %v1855_v20 = vmul.f32 0.01, %v1571_v58  ;;  %v1575_v27 = vadd.f32 %v1574_v47, %v5764_v46  ;;  %v1576_v19 = vpop.f32.mrb[143].mxu1  ;;  %2439 = vmatprep.mubr.bf16.mxu0 %v2056_v49  ;;  %vm1727_vm14 = vcmp.gt.f32.partialorder %v1571_v58, 0.0 }
 0x29a   :  { %v1856_v40 = vmul.f32 0.01, %v1573_v4  ;;  %v1577_v54 = vadd.f32 %v1576_v19, %v5771_v29  ;;  %2440 = vmatmul.mubr.bf16.gmra.mrb[200].mxu0 %v2055_v31  ;;  %vm1728_vm15 = vcmp.gt.f32.partialorder %v1573_v4, 0.0 }
 0x29b   :  { %vm1729_vm0 = vcmp.gt.f32.partialorder %v1575_v27, 0.0  ;;  %v1857_v35 = vmul.f32 0.01, %v1575_v27  ;;  %v2233_v1 = vpop.f32.mrb[96].mxu0  ;;  %v1983_v45 = vsel %vm1727_vm14, %v1571_v58, %v1855_v20 }
 0x29c   :  { %vm1730_vm2 = vcmp.gt.f32.partialorder %v1577_v54, 0.0  ;;  %v1858_v24 = vmul.f32 0.01, %v1577_v54  ;;  %v2234_v21 = vadd.f32 %v5924_v55, %v2233_v1  ;;  %v2235_v57 = vpop.f32.mrb[97].mxu0  ;;  %v1984_v48 = vsel %vm1728_vm15, %v1573_v4, %v1856_v40 }
 0x29d   :  { %v1985_v11 = vsel %vm1729_vm0, %v1575_v27, %v1857_v35  ;;  %v2236_v18 = vpop.f32.mrb[98].mxu0 }
 0x29e   :  { %v1580_v22 = vpop.f32.mrb[144].mxu1  ;;  %v1986_v50 = vsel %vm1730_vm2, %v1577_v54, %v1858_v24  ;;  %v2057_v15 = vpack.c.bf16 %v1985_v11, %v1983_v45  ;;  %v2552_v3 = vmul.f32 0.01, %v2234_v21  ;;  %v2237_v8 = vadd.f32 %v5924_v55, %v2236_v18  ;;  %v2238_v59 = vpop.f32.mrb[99].mxu0 }
 0x29f   :  { %v1581_v44 = vadd.f32 %v1580_v22, %v5764_v46  ;;  %v1582_v5 = vpop.f32.mrb[145].mxu1  ;;  %v2058_v16 = vpack.c.bf16 %v1986_v50, %v1984_v48  ;;  %vm2488_vm1 = vcmp.gt.f32.partialorder %v2234_v21, 0.0 }
 0x2a0   :  { %v1583_v7 = vadd.f32 %v1582_v5, %v5771_v29  ;;  %v1584_v56 = vpop.f32.mrb[146].mxu1  ;;  %vm2489_vm6 = vcmp.gt.f32.partialorder %v2237_v8, 0.0  ;;  %v2553_v51 = vmul.f32 0.01, %v2237_v8  ;;  %v2616_v34 = vsel %vm2488_vm1, %v2234_v21, %v2552_v3 }
 0x2a1   :  { %vm1731_vm10 = vcmp.gt.f32.partialorder %v1581_v44, 0.0  ;;  %v1859_v14 = vmul.f32 0.01, %v1581_v44  ;;  %v1585_v28 = vadd.f32 %v1584_v56, %v5764_v46  ;;  %v1586_v0 = vpop.f32.mrb[147].mxu1  ;;  %2447 = vmatprep.mubr.bf16.mxu0 %v2058_v16 }
 0x2a2   :  { %2448 = vmatmul.mubr.bf16.gmra.mrb[204].mxu0 %v2057_v15  ;;  %v1860_v13 = vmul.f32 0.01, %v1583_v7  ;;  %v1587_v43 = vadd.f32 %v1586_v0, %v5771_v29  ;;  %vm1732_vm11 = vcmp.gt.f32.partialorder %v1583_v7, 0.0  ;;  %v2617_v38 = vsel %vm2489_vm6, %v2237_v8, %v2553_v51 }
 0x2a3   :  { %vm1733_vm3 = vcmp.gt.f32.partialorder %v1585_v28, 0.0  ;;  %v1861_v23 = vmul.f32 0.01, %v1585_v28  ;;  %v1987_v39 = vsel %vm1731_vm10, %v1581_v44, %v1859_v14  ;;  %v2241_v62 = vpop.f32.mrb[100].mxu0  ;;  %v2680_v9 = vpack.c.bf16 %v2617_v38, %v2616_v34 }
 0x2a4   :  { %vm1734_vm9 = vcmp.gt.f32.partialorder %v1587_v43, 0.0  ;;  %v1862_v12 = vmul.f32 0.01, %v1587_v43  ;;  %v2242_v25 = vadd.f32 %v5924_v55, %v2241_v62  ;;  %v2243_v2 = vpop.f32.mrb[101].mxu0  ;;  %v1988_v33 = vsel %vm1732_vm11, %v1583_v7, %v1860_v13 }
 0x2a5   :  { %v1989_v30 = vsel %vm1733_vm3, %v1585_v28, %v1861_v23  ;;  %v2244_v63 = vpop.f32.mrb[102].mxu0  ;;  %4276 = vmatprep.mubr.bf16.mxu1 %v2680_v9 }
 0x2a6   :  { %v1590_v61 = vpop.f32.mrb[148].mxu1  ;;  %v2059_v36 = vpack.c.bf16 %v1989_v30, %v1987_v39  ;;  %v1990_v6 = vsel %vm1734_vm9, %v1587_v43, %v1862_v12  ;;  %vm2490_vm4 = vcmp.gt.f32.partialorder %v2242_v25, 0.0  ;;  %v2554_v26 = vmul.f32 0.01, %v2242_v25  ;;  %v2246_v53 = vpop.f32.mrb[103].mxu0 }
 0x2a7   :  { %v1591_v10 = vadd.f32 %v1590_v61, %v5764_v46  ;;  %v1592_v52 = vpop.f32.mrb[149].mxu1  ;;  %v2245_v17 = vadd.f32 %v5924_v55, %v2244_v63  ;;  %v2060_v58 = vpack.c.bf16 %v1990_v6, %v1988_v33 }
 0x2a8   :  { %v1593_v42 = vadd.f32 %v1592_v52, %v5771_v29  ;;  %v1594_v37 = vpop.f32.mrb[150].mxu1  ;;  %v2618_v20 = vsel %vm2490_vm4, %v2242_v25, %v2554_v26 }
 0x2a9   :  { %vm1735_vm5 = vcmp.gt.f32.partialorder %v1591_v10, 0.0  ;;  %v1863_v32 = vmul.f32 0.01, %v1591_v10  ;;  %v1595_v60 = vadd.f32 %v1594_v37, %v5764_v46  ;;  %v1596_v31 = vpop.f32.mrb[151].mxu1  ;;  %vm2491_vm7 = vcmp.gt.f32.partialorder %v2245_v17, 0.0  ;;  %2455 = vmatprep.mubr.bf16.mxu0 %v2060_v58 }
 0x2aa   :  { %v1864_v41 = vmul.f32 0.01, %v1593_v42  ;;  %v2555_v49 = vmul.f32 0.01, %v2245_v17  ;;  %v1597_v47 = vadd.f32 %v1596_v31, %v5771_v29  ;;  %vm1736_vm12 = vcmp.gt.f32.partialorder %v1593_v42, 0.0  ;;  %2456 = vmatmul.mubr.bf16.gmra.mrb[208].mxu0 %v2059_v36 }
 0x2ab   :  { %vm1737_vm8 = vcmp.gt.f32.partialorder %v1595_v60, 0.0  ;;  %v1865_v4 = vmul.f32 0.01, %v1595_v60  ;;  %v1991_v27 = vsel %vm1735_vm5, %v1591_v10, %v1863_v32  ;;  %v2249_v54 = vpop.f32.mrb[104].mxu0 }
 0x2ac   :  { %v2619_v19 = vsel %vm2491_vm7, %v2245_v17, %v2555_v49  ;;  %vm1738_vm13 = vcmp.gt.f32.partialorder %v1597_v47, 0.0  ;;  %v1866_v40 = vmul.f32 0.01, %v1597_v47  ;;  %v2250_v1 = vadd.f32 %v5924_v55, %v2249_v54  ;;  %v2251_v11 = vpop.f32.mrb[105].mxu0 }
 0x2ad   :  { %v1993_v35 = vsel %vm1737_vm8, %v1595_v60, %v1865_v4  ;;  %v2681_v24 = vpack.c.bf16 %v2619_v19, %v2618_v20  ;;  %v2252_v48 = vpop.f32.mrb[106].mxu0  ;;  %v1992_v50 = vsel %vm1736_vm12, %v1593_v42, %v1864_v41 }
 0x2ae   :  { %v1600_v45 = vpop.f32.mrb[152].mxu1  ;;  %v2061_v21 = vpack.c.bf16 %v1993_v35, %v1991_v27  ;;  %v1994_v15 = vsel %vm1738_vm13, %v1597_v47, %v1866_v40  ;;  %vm2492_vm14 = vcmp.gt.f32.partialorder %v2250_v1, 0.0  ;;  %v2556_v44 = vmul.f32 0.01, %v2250_v1  ;;  %v2254_v3 = vpop.f32.mrb[107].mxu0 }
 0x2af   :  { %v1601_v22 = vadd.f32 %v1600_v45, %v5764_v46  ;;  %v1602_v57 = vpop.f32.mrb[153].mxu1  ;;  %v2253_v18 = vadd.f32 %v5924_v55, %v2252_v48  ;;  %4277 = vmatmul.mubr.bf16.vlgmr.msra.gmra.mrb[160].mxu1 %v2681_v24  ;;  %v2062_v59 = vpack.c.bf16 %v1994_v15, %v1992_v50 }
 0x2b0   :  { %v1603_v5 = vadd.f32 %v1602_v57, %v5771_v29  ;;  %v1604_v16 = vpop.f32.mrb[154].mxu1  ;;  %v2620_v13 = vsel %vm2492_vm14, %v2250_v1, %v2556_v44 }
 0x2b1   :  { %vm1739_vm15 = vcmp.gt.f32.partialorder %v1601_v22, 0.0  ;;  %v1867_v7 = vmul.f32 0.01, %v1601_v22  ;;  %v1605_v8 = vadd.f32 %v1604_v16, %v5764_v46  ;;  %v1606_v56 = vpop.f32.mrb[155].mxu1  ;;  %vm2493_vm0 = vcmp.gt.f32.partialorder %v2253_v18, 0.0  ;;  %2463 = vmatprep.mubr.bf16.mxu0 %v2062_v59 }
 0x2b2   :  { %v2557_v14 = vmul.f32 0.01, %v2253_v18  ;;  %v1868_v28 = vmul.f32 0.01, %v1603_v5  ;;  %v1607_v51 = vadd.f32 %v1606_v56, %v5771_v29  ;;  %vm1740_vm1 = vcmp.gt.f32.partialorder %v1603_v5, 0.0  ;;  %2464 = vmatmul.mubr.bf16.gmra.mrb[212].mxu0 %v2061_v21 }
 0x2b3   :  { %vm1741_vm2 = vcmp.gt.f32.partialorder %v1605_v8, 0.0  ;;  %v1869_v0 = vmul.f32 0.01, %v1605_v8  ;;  %v1995_v43 = vsel %vm1739_vm15, %v1601_v22, %v1867_v7  ;;  %v2257_v38 = vpop.f32.mrb[108].mxu0 }
 0x2b4   :  { %v2621_v23 = vsel %vm2493_vm0, %v2253_v18, %v2557_v14  ;;  %vm1742_vm10 = vcmp.gt.f32.partialorder %v1607_v51, 0.0  ;;  %v1870_v34 = vmul.f32 0.01, %v1607_v51  ;;  %v2258_v62 = vadd.f32 %v5924_v55, %v2257_v38  ;;  %v2259_v30 = vpop.f32.mrb[109].mxu0 }
 0x2b5   :  { %v2682_v39 = vpack.c.bf16 %v2621_v23, %v2620_v13  ;;  %v1997_v12 = vsel %vm1741_vm2, %v1605_v8, %v1869_v0  ;;  %v2260_v36 = vpop.f32.mrb[110].mxu0  ;;  %v1996_v10 = vsel %vm1740_vm1, %v1603_v5, %v1868_v28 }
 0x2b6   :  { %v1610_v9 = vpop.f32.mrb[156].mxu1  ;;  %v2063_v25 = vpack.c.bf16 %v1997_v12, %v1995_v43  ;;  %v1998_v52 = vsel %vm1742_vm10, %v1607_v51, %v1870_v34  ;;  %vm2494_vm6 = vcmp.gt.f32.partialorder %v2258_v62, 0.0  ;;  %v2558_v63 = vmul.f32 0.01, %v2258_v62  ;;  %v2262_v42 = vpop.f32.mrb[111].mxu0 }
 0x2b7   :  { %v1611_v61 = vadd.f32 %v1610_v9, %v5764_v46  ;;  %v1612_v2 = vpop.f32.mrb[157].mxu1  ;;  %4280 = vmatprep.mubr.bf16.mxu1 %v2682_v39  ;;  %v2261_v6 = vadd.f32 %v5924_v55, %v2260_v36  ;;  %v2064_v32 = vpack.c.bf16 %v1998_v52, %v1996_v10 }
 0x2b8   :  { %v1613_v33 = vadd.f32 %v1612_v2, %v5771_v29  ;;  %v1614_v26 = vpop.f32.mrb[158].mxu1  ;;  %v2622_v49 = vsel %vm2494_vm6, %v2258_v62, %v2558_v63 }
 0x2b9   :  { %vm1743_vm3 = vcmp.gt.f32.partialorder %v1611_v61, 0.0  ;;  %v1871_v17 = vmul.f32 0.01, %v1611_v61  ;;  %v1615_v37 = vadd.f32 %v1614_v26, %v5764_v46  ;;  %v1616_v53 = vpop.f32.mrb[159].mxu1  ;;  %vm2495_vm11 = vcmp.gt.f32.partialorder %v2261_v6, 0.0  ;;  %2471 = vmatprep.mubr.bf16.mxu0 %v2064_v32 }
 0x2ba   :  { %v2559_v60 = vmul.f32 0.01, %v2261_v6  ;;  %v1872_v31 = vmul.f32 0.01, %v1613_v33  ;;  %v1617_v41 = vadd.f32 %v1616_v53, %v5771_v29  ;;  %vm1744_vm4 = vcmp.gt.f32.partialorder %v1613_v33, 0.0  ;;  %2472 = vmatmul.mubr.bf16.gmra.mrb[216].mxu0 %v2063_v25 }
 0x2bb   :  { %vm1745_vm9 = vcmp.gt.f32.partialorder %v1615_v37, 0.0  ;;  %v1873_v58 = vmul.f32 0.01, %v1615_v37  ;;  %v1999_v47 = vsel %vm1743_vm3, %v1611_v61, %v1871_v17  ;;  %v2265_v46 = vpop.f32.mrb[112].mxu0 }
 0x2bc   :  { %v2623_v4 = vsel %vm2495_vm11, %v2261_v6, %v2559_v60  ;;  %vm1746_vm5 = vcmp.gt.f32.partialorder %v1617_v41, 0.0  ;;  %v1874_v20 = vmul.f32 0.01, %v1617_v41  ;;  %v2266_v40 = vadd.f32 %v5924_v55, %v2265_v46  ;;  %v2267_v54 = vpop.f32.mrb[113].mxu0 }
 0x2bd   :  { %v2683_v27 = vpack.c.bf16 %v2623_v4, %v2622_v49  ;;  %v2001_v19 = vsel %vm1745_vm9, %v1615_v37, %v1873_v58  ;;  %v2268_v24 = vpop.f32.mrb[114].mxu0  ;;  %v2000_v29 = vsel %vm1744_vm4, %v1613_v33, %v1872_v31 }
 0x2be   :  { %v2065_v35 = vpack.c.bf16 %v2001_v19, %v1999_v47  ;;  %v2002_v1 = vsel %vm1746_vm5, %v1617_v41, %v1874_v20  ;;  %v2560_v45 = vmul.f32 0.01, %v2266_v40  ;;  %v2269_v11 = vadd.f32 %v5924_v55, %v2268_v24  ;;  %v2270_v21 = vpop.f32.mrb[115].mxu0 }
 0x2bf   :  { %4281 = vmatmul.mubr.bf16.gmra.mrb[164].mxu1 %v2683_v27  ;;  %v2066_v22 = vpack.c.bf16 %v2002_v1, %v2000_v29  ;;  %vm2496_vm7 = vcmp.gt.f32.partialorder %v2266_v40, 0.0 }
 0x2c0   :  { %vm2497_vm8 = vcmp.gt.f32.partialorder %v2269_v11, 0.0  ;;  %v2561_v57 = vmul.f32 0.01, %v2269_v11  ;;  %v2624_v48 = vsel %vm2496_vm7, %v2266_v40, %v2560_v45 }
 0x2c1   :  { %2479 = vmatprep.mubr.bf16.mxu0 %v2066_v22 }
 0x2c2   :  { %2480 = vmatmul.mubr.bf16.gmra.mrb[220].mxu0 %v2065_v35  ;;  %v2625_v50 = vsel %vm2497_vm8, %v2269_v11, %v2561_v57 }
 0x2c3   :  { %v2273_v15 = vpop.f32.mrb[116].mxu0  ;;  %v2684_v44 = vpack.c.bf16 %v2625_v50, %v2624_v48 }
 0x2c4   :  { %v2274_v5 = vadd.f32 %v5924_v55, %v2273_v15  ;;  %v2275_v18 = vpop.f32.mrb[117].mxu0 }
 0x2c5   :  { %v2276_v16 = vpop.f32.mrb[118].mxu0  ;;  %4284 = vmatprep.mubr.bf16.mxu1 %v2684_v44 }
 0x2c6   :  { %v2562_v3 = vmul.f32 0.01, %v2274_v5  ;;  %v2277_v7 = vadd.f32 %v5924_v55, %v2276_v16  ;;  %v2278_v8 = vpop.f32.mrb[119].mxu0  ;;  %vm2498_vm12 = vcmp.gt.f32.partialorder %v2274_v5, 0.0 }
 0x2c8   :  { %vm2499_vm13 = vcmp.gt.f32.partialorder %v2277_v7, 0.0  ;;  %v2563_v56 = vmul.f32 0.01, %v2277_v7  ;;  %v2626_v59 = vsel %vm2498_vm12, %v2274_v5, %v2562_v3 }
 0x2ca   :  { %v2627_v14 = vsel %vm2499_vm13, %v2277_v7, %v2563_v56 }
 0x2cb   :  { %v2281_v28 = vpop.f32.mrb[120].mxu0  ;;  %v2685_v0 = vpack.c.bf16 %v2627_v14, %v2626_v59 }
 0x2cc   :  { %v2282_v51 = vadd.f32 %v5924_v55, %v2281_v28  ;;  %v2283_v13 = vpop.f32.mrb[121].mxu0 }
 0x2cd   :  { %v2284_v23 = vpop.f32.mrb[122].mxu0  ;;  %4285 = vmatmul.mubr.bf16.gmra.mrb[168].mxu1 %v2685_v0 }
 0x2ce   :  { %v2564_v43 = vmul.f32 0.01, %v2282_v51  ;;  %v2285_v34 = vadd.f32 %v5924_v55, %v2284_v23  ;;  %v2286_v38 = vpop.f32.mrb[123].mxu0  ;;  %vm2500_vm14 = vcmp.gt.f32.partialorder %v2282_v51, 0.0 }
 0x2d0   :  { %vm2501_vm15 = vcmp.gt.f32.partialorder %v2285_v34, 0.0  ;;  %v2565_v39 = vmul.f32 0.01, %v2285_v34  ;;  %v2628_v12 = vsel %vm2500_vm14, %v2282_v51, %v2564_v43 }
 0x2d2   :  { %v2629_v62 = vsel %vm2501_vm15, %v2285_v34, %v2565_v39 }
 0x2d3   :  { %v2289_v9 = vpop.f32.mrb[124].mxu0  ;;  %v2686_v30 = vpack.c.bf16 %v2629_v62, %v2628_v12 }
 0x2d4   :  { %v2290_v25 = vadd.f32 %v5924_v55, %v2289_v9  ;;  %v2291_v61 = vpop.f32.mrb[125].mxu0 }
 0x2d5   :  { %v2292_v2 = vpop.f32.mrb[126].mxu0  ;;  %4288 = vmatprep.mubr.bf16.mxu1 %v2686_v30 }
 0x2d6   :  { %v2566_v36 = vmul.f32 0.01, %v2290_v25  ;;  %v2293_v10 = vadd.f32 %v5924_v55, %v2292_v2  ;;  %v2294_v52 = vpop.f32.mrb[127].mxu0  ;;  %vm2502_vm0 = vcmp.gt.f32.partialorder %v2290_v25, 0.0 }
 0x2d8   :  { %vm2503_vm2 = vcmp.gt.f32.partialorder %v2293_v10, 0.0  ;;  %v2567_v63 = vmul.f32 0.01, %v2293_v10  ;;  %v2630_v33 = vsel %vm2502_vm0, %v2290_v25, %v2566_v36 }
 0x2da   :  { %v2631_v6 = vsel %vm2503_vm2, %v2293_v10, %v2567_v63 }
 0x2db   :  { %v2297_v26 = vpop.f32.mrb[128].mxu0  ;;  %v2687_v42 = vpack.c.bf16 %v2631_v6, %v2630_v33 }
 0x2dc   :  { %v2298_v17 = vadd.f32 %v5924_v55, %v2297_v26  ;;  %v2299_v37 = vpop.f32.mrb[129].mxu0 }
 0x2dd   :  { %v2300_v53 = vpop.f32.mrb[130].mxu0  ;;  %4289 = vmatmul.mubr.bf16.gmra.mrb[172].mxu1 %v2687_v42 }
 0x2de   :  { %v2568_v32 = vmul.f32 0.01, %v2298_v17  ;;  %v2301_v60 = vadd.f32 %v5924_v55, %v2300_v53  ;;  %v2302_v31 = vpop.f32.mrb[131].mxu0  ;;  %vm2504_vm1 = vcmp.gt.f32.partialorder %v2298_v17, 0.0 }
 0x2e0   :  { %vm2505_vm10 = vcmp.gt.f32.partialorder %v2301_v60, 0.0  ;;  %v2569_v58 = vmul.f32 0.01, %v2301_v60  ;;  %v2632_v41 = vsel %vm2504_vm1, %v2298_v17, %v2568_v32 }
 0x2e2   :  { %v2633_v49 = vsel %vm2505_vm10, %v2301_v60, %v2569_v58 }
 0x2e3   :  { %v2305_v4 = vpop.f32.mrb[132].mxu0  ;;  %v2688_v47 = vpack.c.bf16 %v2633_v49, %v2632_v41 }
 0x2e4   :  { %v2306_v20 = vadd.f32 %v5924_v55, %v2305_v4  ;;  %v2307_v46 = vpop.f32.mrb[133].mxu0 }
 0x2e5   :  { %v2308_v27 = vpop.f32.mrb[134].mxu0  ;;  %4292 = vmatprep.mubr.bf16.mxu1 %v2688_v47 }
 0x2e6   :  { %v2570_v19 = vmul.f32 0.01, %v2306_v20  ;;  %v2309_v40 = vadd.f32 %v5924_v55, %v2308_v27  ;;  %v2310_v54 = vpop.f32.mrb[135].mxu0  ;;  %vm2506_vm6 = vcmp.gt.f32.partialorder %v2306_v20, 0.0 }
 0x2e8   :  { %vm2507_vm3 = vcmp.gt.f32.partialorder %v2309_v40, 0.0  ;;  %v2571_v35 = vmul.f32 0.01, %v2309_v40  ;;  %v2634_v24 = vsel %vm2506_vm6, %v2306_v20, %v2570_v19 }
 0x2ea   :  { %v2635_v29 = vsel %vm2507_vm3, %v2309_v40, %v2571_v35 }
 0x2eb   :  { %v2313_v1 = vpop.f32.mrb[136].mxu0  ;;  %v2689_v45 = vpack.c.bf16 %v2635_v29, %v2634_v24 }
 0x2ec   :  { %v2314_v11 = vadd.f32 %v5924_v55, %v2313_v1  ;;  %v2315_v21 = vpop.f32.mrb[137].mxu0 }
 0x2ed   :  { %v2316_v22 = vpop.f32.mrb[138].mxu0  ;;  %4293 = vmatmul.mubr.bf16.gmra.mrb[176].mxu1 %v2689_v45 }
 0x2ee   :  { %v2572_v57 = vmul.f32 0.01, %v2314_v11  ;;  %v2317_v48 = vadd.f32 %v5924_v55, %v2316_v22  ;;  %v2318_v50 = vpop.f32.mrb[139].mxu0  ;;  %vm2508_vm11 = vcmp.gt.f32.partialorder %v2314_v11, 0.0 }
 0x2f0   :  { %vm2509_vm9 = vcmp.gt.f32.partialorder %v2317_v48, 0.0  ;;  %v2573_v15 = vmul.f32 0.01, %v2317_v48  ;;  %v2636_v44 = vsel %vm2508_vm11, %v2314_v11, %v2572_v57 }
 0x2f2   :  { %v2637_v5 = vsel %vm2509_vm9, %v2317_v48, %v2573_v15 }
 0x2f3   :  { %v2321_v18 = vpop.f32.mrb[140].mxu0  ;;  %v2690_v16 = vpack.c.bf16 %v2637_v5, %v2636_v44 }
 0x2f4   :  { %v2322_v3 = vadd.f32 %v5924_v55, %v2321_v18  ;;  %v2323_v7 = vpop.f32.mrb[141].mxu0 }
 0x2f5   :  { %v2324_v8 = vpop.f32.mrb[142].mxu0  ;;  %4296 = vmatprep.mubr.bf16.mxu1 %v2690_v16 }
 0x2f6   :  { %v2574_v56 = vmul.f32 0.01, %v2322_v3  ;;  %v2325_v59 = vadd.f32 %v5924_v55, %v2324_v8  ;;  %v2326_v14 = vpop.f32.mrb[143].mxu0  ;;  %vm2510_vm4 = vcmp.gt.f32.partialorder %v2322_v3, 0.0 }
 0x2f8   :  { %vm2511_vm5 = vcmp.gt.f32.partialorder %v2325_v59, 0.0  ;;  %v2575_v28 = vmul.f32 0.01, %v2325_v59  ;;  %v2638_v0 = vsel %vm2510_vm4, %v2322_v3, %v2574_v56 }
 0x2fa   :  { %v2639_v51 = vsel %vm2511_vm5, %v2325_v59, %v2575_v28 }
 0x2fb   :  { %v2691_v23 = vpack.c.bf16 %v2639_v51, %v2638_v0 }
 0x2fc   :  { %v2329_v13 = vpop.f32.mrb[144].mxu0 }
 0x2fd   :  { %v2330_v43 = vadd.f32 %v5924_v55, %v2329_v13  ;;  %v2331_v34 = vpop.f32.mrb[145].mxu0  ;;  %4297 = vmatmul.mubr.bf16.gmra.mrb[180].mxu1 %v2691_v23 }
 0x2fe   :  { %v2332_v38 = vpop.f32.mrb[146].mxu0 }
 0x2ff   :  { %v2576_v39 = vmul.f32 0.01, %v2330_v43  ;;  %v2333_v12 = vadd.f32 %v5924_v55, %v2332_v38  ;;  %v2334_v62 = vpop.f32.mrb[147].mxu0  ;;  %vm2512_vm7 = vcmp.gt.f32.partialorder %v2330_v43, 0.0 }
 0x301   :  { %vm2513_vm8 = vcmp.gt.f32.partialorder %v2333_v12, 0.0  ;;  %v2577_v9 = vmul.f32 0.01, %v2333_v12  ;;  %v2640_v30 = vsel %vm2512_vm7, %v2330_v43, %v2576_v39 }
 0x303   :  { %v2641_v25 = vsel %vm2513_vm8, %v2333_v12, %v2577_v9 }
 0x304   :  { %v2692_v2 = vpack.c.bf16 %v2641_v25, %v2640_v30 }
 0x305   :  { %v2337_v61 = vpop.f32.mrb[148].mxu0 }
 0x306   :  { %v2338_v36 = vadd.f32 %v5924_v55, %v2337_v61  ;;  %v2339_v10 = vpop.f32.mrb[149].mxu0  ;;  %4300 = vmatprep.mubr.bf16.mxu1 %v2692_v2 }
 0x307   :  { %v2340_v52 = vpop.f32.mrb[150].mxu0 }
 0x308   :  { %v2578_v63 = vmul.f32 0.01, %v2338_v36  ;;  %v2341_v33 = vadd.f32 %v5924_v55, %v2340_v52  ;;  %v2342_v6 = vpop.f32.mrb[151].mxu0  ;;  %vm2514_vm12 = vcmp.gt.f32.partialorder %v2338_v36, 0.0 }
 0x30a   :  { %vm2515_vm13 = vcmp.gt.f32.partialorder %v2341_v33, 0.0  ;;  %v2579_v26 = vmul.f32 0.01, %v2341_v33  ;;  %v2642_v42 = vsel %vm2514_vm12, %v2338_v36, %v2578_v63 }
 0x30c   :  { %v2643_v17 = vsel %vm2515_vm13, %v2341_v33, %v2579_v26 }
 0x30d   :  { %v2345_v37 = vpop.f32.mrb[152].mxu0  ;;  %v2693_v53 = vpack.c.bf16 %v2643_v17, %v2642_v42 }
 0x30e   :  { %v2346_v32 = vadd.f32 %v5924_v55, %v2345_v37  ;;  %v2347_v60 = vpop.f32.mrb[153].mxu0 }
 0x30f   :  { %v2348_v31 = vpop.f32.mrb[154].mxu0  ;;  %4301 = vmatmul.mubr.bf16.gmra.mrb[184].mxu1 %v2693_v53 }
 0x310   :  { %v2580_v58 = vmul.f32 0.01, %v2346_v32  ;;  %v2349_v41 = vadd.f32 %v5924_v55, %v2348_v31  ;;  %v2350_v49 = vpop.f32.mrb[155].mxu0  ;;  %vm2516_vm14 = vcmp.gt.f32.partialorder %v2346_v32, 0.0 }
 0x312   :  { %vm2517_vm15 = vcmp.gt.f32.partialorder %v2349_v41, 0.0  ;;  %v2581_v4 = vmul.f32 0.01, %v2349_v41  ;;  %v2644_v47 = vsel %vm2516_vm14, %v2346_v32, %v2580_v58 }
 0x314   :  { %v2645_v20 = vsel %vm2517_vm15, %v2349_v41, %v2581_v4 }
 0x315   :  { %v2353_v46 = vpop.f32.mrb[156].mxu0  ;;  %v2694_v27 = vpack.c.bf16 %v2645_v20, %v2644_v47 }
 0x316   :  { %v2354_v19 = vadd.f32 %v5924_v55, %v2353_v46  ;;  %v2355_v40 = vpop.f32.mrb[157].mxu0 }
 0x317   :  { %v2356_v54 = vpop.f32.mrb[158].mxu0  ;;  %4304 = vmatprep.mubr.bf16.mxu1 %v2694_v27 }
 0x318   :  { %v2582_v35 = vmul.f32 0.01, %v2354_v19  ;;  %v2357_v24 = vadd.f32 %v5924_v55, %v2356_v54  ;;  %v2358_v29 = vpop.f32.mrb[159].mxu0  ;;  %vm2518_vm0 = vcmp.gt.f32.partialorder %v2354_v19, 0.0 }
 0x31a   :  { %vm2519_vm2 = vcmp.gt.f32.partialorder %v2357_v24, 0.0  ;;  %v2583_v1 = vmul.f32 0.01, %v2357_v24  ;;  %v2646_v45 = vsel %vm2518_vm0, %v2354_v19, %v2582_v35 }
 0x31c   :  { %v2647_v11 = vsel %vm2519_vm2, %v2357_v24, %v2583_v1 }
 0x31d   :  { %v2361_v21 = vpop.f32.mrb[160].mxu0  ;;  %v2695_v22 = vpack.c.bf16 %v2647_v11, %v2646_v45 }
 0x31e   :  { %v2362_v57 = vadd.f32 %v5924_v55, %v2361_v21  ;;  %v2363_v48 = vpop.f32.mrb[161].mxu0 }
 0x31f   :  { %v2364_v50 = vpop.f32.mrb[162].mxu0  ;;  %4305 = vmatmul.mubr.bf16.gmra.mrb[188].mxu1 %v2695_v22 }
 0x320   :  { %v2584_v15 = vmul.f32 0.01, %v2362_v57  ;;  %v2365_v44 = vadd.f32 %v5924_v55, %v2364_v50  ;;  %v2366_v5 = vpop.f32.mrb[163].mxu0  ;;  %vm2520_vm1 = vcmp.gt.f32.partialorder %v2362_v57, 0.0 }
 0x322   :  { %vm2521_vm10 = vcmp.gt.f32.partialorder %v2365_v44, 0.0  ;;  %v2585_v18 = vmul.f32 0.01, %v2365_v44  ;;  %v2648_v16 = vsel %vm2520_vm1, %v2362_v57, %v2584_v15 }
 0x324   :  { %v2649_v3 = vsel %vm2521_vm10, %v2365_v44, %v2585_v18 }
 0x325   :  { %v2369_v7 = vpop.f32.mrb[164].mxu0  ;;  %v2696_v8 = vpack.c.bf16 %v2649_v3, %v2648_v16 }
 0x326   :  { %v2370_v56 = vadd.f32 %v5924_v55, %v2369_v7  ;;  %v2371_v59 = vpop.f32.mrb[165].mxu0 }
 0x327   :  { %v2372_v14 = vpop.f32.mrb[166].mxu0  ;;  %4308 = vmatprep.mubr.bf16.mxu1 %v2696_v8 }
 0x328   :  { %v2586_v28 = vmul.f32 0.01, %v2370_v56  ;;  %v2373_v0 = vadd.f32 %v5924_v55, %v2372_v14  ;;  %v2374_v51 = vpop.f32.mrb[167].mxu0  ;;  %vm2522_vm6 = vcmp.gt.f32.partialorder %v2370_v56, 0.0 }
 0x32a   :  { %vm2523_vm3 = vcmp.gt.f32.partialorder %v2373_v0, 0.0  ;;  %v2587_v13 = vmul.f32 0.01, %v2373_v0  ;;  %v2650_v23 = vsel %vm2522_vm6, %v2370_v56, %v2586_v28 }
 0x32c   :  { %v2651_v43 = vsel %vm2523_vm3, %v2373_v0, %v2587_v13 }
 0x32d   :  { %v2377_v34 = vpop.f32.mrb[168].mxu0  ;;  %v2697_v38 = vpack.c.bf16 %v2651_v43, %v2650_v23 }
 0x32e   :  { %v2378_v39 = vadd.f32 %v5924_v55, %v2377_v34  ;;  %v2379_v12 = vpop.f32.mrb[169].mxu0 }
 0x32f   :  { %v2380_v62 = vpop.f32.mrb[170].mxu0  ;;  %4309 = vmatmul.mubr.bf16.gmra.mrb[192].mxu1 %v2697_v38 }
 0x330   :  { %v2588_v9 = vmul.f32 0.01, %v2378_v39  ;;  %v2381_v30 = vadd.f32 %v5924_v55, %v2380_v62  ;;  %v2382_v25 = vpop.f32.mrb[171].mxu0  ;;  %vm2524_vm11 = vcmp.gt.f32.partialorder %v2378_v39, 0.0 }
 0x332   :  { %vm2525_vm9 = vcmp.gt.f32.partialorder %v2381_v30, 0.0  ;;  %v2589_v61 = vmul.f32 0.01, %v2381_v30  ;;  %v2652_v2 = vsel %vm2524_vm11, %v2378_v39, %v2588_v9 }
 0x334   :  { %v2653_v36 = vsel %vm2525_vm9, %v2381_v30, %v2589_v61 }
 0x335   :  { %v2385_v10 = vpop.f32.mrb[172].mxu0  ;;  %v2698_v52 = vpack.c.bf16 %v2653_v36, %v2652_v2 }
 0x336   :  { %v2386_v63 = vadd.f32 %v5924_v55, %v2385_v10  ;;  %v2387_v33 = vpop.f32.mrb[173].mxu0 }
 0x337   :  { %v2388_v6 = vpop.f32.mrb[174].mxu0  ;;  %4312 = vmatprep.mubr.bf16.mxu1 %v2698_v52 }
 0x338   :  { %v2590_v26 = vmul.f32 0.01, %v2386_v63  ;;  %v2389_v42 = vadd.f32 %v5924_v55, %v2388_v6  ;;  %v2390_v17 = vpop.f32.mrb[175].mxu0  ;;  %vm2526_vm4 = vcmp.gt.f32.partialorder %v2386_v63, 0.0 }
 0x33a   :  { %vm2527_vm5 = vcmp.gt.f32.partialorder %v2389_v42, 0.0  ;;  %v2591_v37 = vmul.f32 0.01, %v2389_v42  ;;  %v2654_v53 = vsel %vm2526_vm4, %v2386_v63, %v2590_v26 }
 0x33c   :  { %v2655_v32 = vsel %vm2527_vm5, %v2389_v42, %v2591_v37 }
 0x33d   :  { %v2393_v60 = vpop.f32.mrb[176].mxu0  ;;  %v2699_v31 = vpack.c.bf16 %v2655_v32, %v2654_v53 }
 0x33e   :  { %v2394_v58 = vadd.f32 %v5924_v55, %v2393_v60  ;;  %v2395_v41 = vpop.f32.mrb[177].mxu0 }
 0x33f   :  { %v2396_v49 = vpop.f32.mrb[178].mxu0  ;;  %4313 = vmatmul.mubr.bf16.gmra.mrb[196].mxu1 %v2699_v31 }
 0x340   :  { %v2592_v4 = vmul.f32 0.01, %v2394_v58  ;;  %v2397_v47 = vadd.f32 %v5924_v55, %v2396_v49  ;;  %v2398_v20 = vpop.f32.mrb[179].mxu0  ;;  %vm2528_vm7 = vcmp.gt.f32.partialorder %v2394_v58, 0.0 }
 0x342   :  { %vm2529_vm8 = vcmp.gt.f32.partialorder %v2397_v47, 0.0  ;;  %v2593_v46 = vmul.f32 0.01, %v2397_v47  ;;  %v2656_v27 = vsel %vm2528_vm7, %v2394_v58, %v2592_v4 }
 0x344   :  { %v2657_v19 = vsel %vm2529_vm8, %v2397_v47, %v2593_v46 }
 0x345   :  { %v2401_v40 = vpop.f32.mrb[180].mxu0  ;;  %v2700_v54 = vpack.c.bf16 %v2657_v19, %v2656_v27 }
 0x346   :  { %v2402_v35 = vadd.f32 %v5924_v55, %v2401_v40  ;;  %v2403_v24 = vpop.f32.mrb[181].mxu0 }
 0x347   :  { %v2404_v29 = vpop.f32.mrb[182].mxu0  ;;  %4316 = vmatprep.mubr.bf16.mxu1 %v2700_v54 }
 0x348   :  { %v2594_v1 = vmul.f32 0.01, %v2402_v35  ;;  %v2405_v45 = vadd.f32 %v5924_v55, %v2404_v29  ;;  %v2406_v11 = vpop.f32.mrb[183].mxu0  ;;  %vm2530_vm12 = vcmp.gt.f32.partialorder %v2402_v35, 0.0 }
 0x34a   :  { %vm2531_vm13 = vcmp.gt.f32.partialorder %v2405_v45, 0.0  ;;  %v2595_v21 = vmul.f32 0.01, %v2405_v45  ;;  %v2658_v22 = vsel %vm2530_vm12, %v2402_v35, %v2594_v1 }
 0x34c   :  { %v2659_v57 = vsel %vm2531_vm13, %v2405_v45, %v2595_v21 }
 0x34d   :  { %v2409_v48 = vpop.f32.mrb[184].mxu0  ;;  %v2701_v50 = vpack.c.bf16 %v2659_v57, %v2658_v22 }
 0x34e   :  { %v2410_v15 = vadd.f32 %v5924_v55, %v2409_v48  ;;  %v2411_v44 = vpop.f32.mrb[185].mxu0 }
 0x34f   :  { %v2412_v5 = vpop.f32.mrb[186].mxu0  ;;  %4317 = vmatmul.mubr.bf16.gmra.mrb[200].mxu1 %v2701_v50 }
 0x350   :  { %v2596_v18 = vmul.f32 0.01, %v2410_v15  ;;  %v2413_v16 = vadd.f32 %v5924_v55, %v2412_v5  ;;  %v2414_v3 = vpop.f32.mrb[187].mxu0  ;;  %vm2532_vm14 = vcmp.gt.f32.partialorder %v2410_v15, 0.0 }
 0x352   :  { %vm2533_vm15 = vcmp.gt.f32.partialorder %v2413_v16, 0.0  ;;  %v2597_v7 = vmul.f32 0.01, %v2413_v16  ;;  %v2660_v8 = vsel %vm2532_vm14, %v2410_v15, %v2596_v18 }
 0x354   :  { %v2661_v56 = vsel %vm2533_vm15, %v2413_v16, %v2597_v7  ;;  %v6010_v7 = vld [vmem:[%s6895_s5 + $0x1] ss:$0 sm:$0xff] }
 0x355   :  { %v2417_v59 = vpop.f32.mrb[188].mxu0  ;;  %v2702_v14 = vpack.c.bf16 %v2661_v56, %v2660_v8 }
 0x356   :  { %v2418_v28 = vadd.f32 %v5924_v55, %v2417_v59  ;;  %v2419_v0 = vpop.f32.mrb[189].mxu0 }
 0x357   :  { %v2420_v51 = vpop.f32.mrb[190].mxu0  ;;  %4320 = vmatprep.mubr.bf16.mxu1 %v2702_v14 }
 0x358   :  { %v2598_v13 = vmul.f32 0.01, %v2418_v28  ;;  %v2421_v23 = vadd.f32 %v5924_v55, %v2420_v51  ;;  %v2422_v43 = vpop.f32.mrb[191].mxu0  ;;  %vm2534_vm0 = vcmp.gt.f32.partialorder %v2418_v28, 0.0 }
 0x35a   :  { %vm2535_vm2 = vcmp.gt.f32.partialorder %v2421_v23, 0.0  ;;  %v2599_v34 = vmul.f32 0.01, %v2421_v23  ;;  %v2662_v38 = vsel %vm2534_vm0, %v2418_v28, %v2598_v13 }
 0x35c   :  { %v2663_v39 = vsel %vm2535_vm2, %v2421_v23, %v2599_v34 }
 0x35d   :  { %v2425_v12 = vpop.f32.mrb[192].mxu0  ;;  %v2703_v62 = vpack.c.bf16 %v2663_v39, %v2662_v38 }
 0x35e   :  { %v2426_v9 = vadd.f32 %v5924_v55, %v2425_v12  ;;  %v2427_v30 = vpop.f32.mrb[193].mxu0 }
 0x35f   :  { %v2428_v25 = vpop.f32.mrb[194].mxu0  ;;  %4321 = vmatmul.mubr.bf16.gmra.mrb[204].mxu1 %v2703_v62  ;;  %v4681_v62 = vld [vmem:[%s6895_s5] ss:$0 sm:$0xff] }
 0x360   :  { %v2600_v61 = vmul.f32 0.01, %v2426_v9  ;;  %v2429_v2 = vadd.f32 %v5924_v55, %v2428_v25  ;;  %v2430_v36 = vpop.f32.mrb[195].mxu0  ;;  %vm2536_vm1 = vcmp.gt.f32.partialorder %v2426_v9, 0.0 }
 0x362   :  { %vm2537_vm10 = vcmp.gt.f32.partialorder %v2429_v2, 0.0  ;;  %v2601_v10 = vmul.f32 0.01, %v2429_v2  ;;  %v2664_v52 = vsel %vm2536_vm1, %v2426_v9, %v2600_v61 }
 0x364   :  { %v2665_v63 = vsel %vm2537_vm10, %v2429_v2, %v2601_v10 }
 0x365   :  { %v2433_v33 = vpop.f32.mrb[196].mxu0  ;;  %v2704_v6 = vpack.c.bf16 %v2665_v63, %v2664_v52 }
 0x366   :  { %v2434_v26 = vadd.f32 %v5924_v55, %v2433_v33  ;;  %v2435_v42 = vpop.f32.mrb[197].mxu0 }
 0x367   :  { %v2436_v17 = vpop.f32.mrb[198].mxu0  ;;  %4324 = vmatprep.mubr.bf16.mxu1 %v2704_v6 }
 0x368   :  { %v2602_v37 = vmul.f32 0.01, %v2434_v26  ;;  %v2437_v53 = vadd.f32 %v5924_v55, %v2436_v17  ;;  %v2438_v32 = vpop.f32.mrb[199].mxu0  ;;  %vm2538_vm6 = vcmp.gt.f32.partialorder %v2434_v26, 0.0 }
 0x36a   :  { %vm2539_vm3 = vcmp.gt.f32.partialorder %v2437_v53, 0.0  ;;  %v2603_v60 = vmul.f32 0.01, %v2437_v53  ;;  %v2666_v31 = vsel %vm2538_vm6, %v2434_v26, %v2602_v37 }
 0x36c   :  { %v2667_v58 = vsel %vm2539_vm3, %v2437_v53, %v2603_v60 }
 0x36d   :  { %v2441_v41 = vpop.f32.mrb[200].mxu0  ;;  %v2705_v49 = vpack.c.bf16 %v2667_v58, %v2666_v31 }
 0x36e   :  { %v2442_v4 = vadd.f32 %v5924_v55, %v2441_v41  ;;  %v2443_v47 = vpop.f32.mrb[201].mxu0 }
 0x36f   :  { %v2444_v20 = vpop.f32.mrb[202].mxu0  ;;  %4325 = vmatmul.mubr.bf16.gmra.mrb[208].mxu1 %v2705_v49 }
 0x370   :  { %v2604_v46 = vmul.f32 0.01, %v2442_v4  ;;  %v2445_v27 = vadd.f32 %v5924_v55, %v2444_v20  ;;  %v2446_v19 = vpop.f32.mrb[203].mxu0  ;;  %vm2540_vm11 = vcmp.gt.f32.partialorder %v2442_v4, 0.0 }
 0x372   :  { %vm2541_vm9 = vcmp.gt.f32.partialorder %v2445_v27, 0.0  ;;  %v2605_v40 = vmul.f32 0.01, %v2445_v27  ;;  %v2668_v54 = vsel %vm2540_vm11, %v2442_v4, %v2604_v46 }
 0x374   :  { %v2669_v35 = vsel %vm2541_vm9, %v2445_v27, %v2605_v40 }
 0x375   :  { %v2449_v24 = vpop.f32.mrb[204].mxu0  ;;  %v2706_v29 = vpack.c.bf16 %v2669_v35, %v2668_v54 }
 0x376   :  { %v2450_v1 = vadd.f32 %v5924_v55, %v2449_v24  ;;  %v2451_v45 = vpop.f32.mrb[205].mxu0 }
 0x377   :  { %v2452_v11 = vpop.f32.mrb[206].mxu0  ;;  %4328 = vmatprep.mubr.bf16.mxu1 %v2706_v29 }
 0x378   :  { %v2606_v21 = vmul.f32 0.01, %v2450_v1  ;;  %v2453_v22 = vadd.f32 %v5924_v55, %v2452_v11  ;;  %v2454_v57 = vpop.f32.mrb[207].mxu0  ;;  %vm2542_vm4 = vcmp.gt.f32.partialorder %v2450_v1, 0.0 }
 0x37a   :  { %vm2543_vm5 = vcmp.gt.f32.partialorder %v2453_v22, 0.0  ;;  %v2607_v48 = vmul.f32 0.01, %v2453_v22  ;;  %v2670_v50 = vsel %vm2542_vm4, %v2450_v1, %v2606_v21 }
 0x37c   :  { %v2671_v15 = vsel %vm2543_vm5, %v2453_v22, %v2607_v48 }
 0x37d   :  { %v2707_v44 = vpack.c.bf16 %v2671_v15, %v2670_v50  ;;  %v2457_v5 = vpop.f32.mrb[208].mxu0 }
 0x37e   :  { %v2458_v18 = vadd.f32 %v5924_v55, %v2457_v5  ;;  %v2459_v16 = vpop.f32.mrb[209].mxu0 }
 0x37f   :  { %4329 = vmatmul.mubr.bf16.gmra.mrb[212].mxu1 %v2707_v44  ;;  %v2460_v3 = vpop.f32.mrb[210].mxu0 }
 0x380   :  { %v2608_v8 = vmul.f32 0.01, %v2458_v18  ;;  %v2461_v56 = vadd.f32 %v5924_v55, %v2460_v3  ;;  %v2462_v59 = vpop.f32.mrb[211].mxu0  ;;  %vm2544_vm7 = vcmp.gt.f32.partialorder %v2458_v18, 0.0 }
 0x382   :  { %v4278_v14 = vpop.f32.mrb[160].mxu1  ;;  %vm2545_vm8 = vcmp.gt.f32.partialorder %v2461_v56, 0.0  ;;  %v2609_v28 = vmul.f32 0.01, %v2461_v56  ;;  %v2672_v34 = vsel %vm2544_vm7, %v2458_v18, %v2608_v8 }
 0x383   :  { %v6014_v0 = vadd.f32 %v4278_v14, %v6010_v7  ;;  %v2814_v51 = vpop.f32.mrb[161].mxu1 }
 0x384   :  { %v6017_v13 = vadd.f32 %v6010_v7, %v2814_v51  ;;  %v4279_v23 = vpop.f32.mrb[162].mxu1  ;;  %v2673_v38 = vsel %vm2545_vm8, %v2461_v56, %v2609_v28 }
 0x385   :  { %3073 = vadd.xlane.f32.xlu1 %v6014_v0  ;;  %v2817_v43 = vpop.f32.mrb[163].mxu1  ;;  %v2465_v39 = vpop.f32.mrb[212].mxu0  ;;  %v2708_v55 = vpack.c.bf16 %v2673_v38, %v2672_v34  ;;  %v6022_v12 = vadd.f32 %v4279_v23, %v6010_v7 }
 0x386   :  { %3069 = vadd.xlane.f32.xlu0 %v6017_v13  ;;  %v2466_v9 = vadd.f32 %v4681_v62, %v2465_v39  ;;  %v2467_v30 = vpop.f32.mrb[213].mxu0  ;;  %v6028_v25 = vadd.f32 %v6010_v7, %v2817_v43 }
 0x387   :  { %v2468_v61 = vpop.f32.mrb[214].mxu0  ;;  %4332 = vmatprep.mubr.bf16.mxu1 %v2708_v55 }
 0x388   :  { %v2610_v2 = vmul.f32 0.01, %v2466_v9  ;;  %v2469_v36 = vadd.f32 %v4681_v62, %v2468_v61  ;;  %v2470_v10 = vpop.f32.mrb[215].mxu0  ;;  %vm2546_vm12 = vcmp.gt.f32.partialorder %v2466_v9, 0.0 }
 0x389   :  { %3075 = vadd.xlane.f32.xlu1 %v6022_v12 }
 0x38a   :  { %3071 = vadd.xlane.f32.xlu0 %v6028_v25  ;;  %vm2547_vm13 = vcmp.gt.f32.partialorder %v2469_v36, 0.0  ;;  %v2611_v52 = vmul.f32 0.01, %v2469_v36  ;;  %v2674_v63 = vsel %vm2546_vm12, %v2466_v9, %v2610_v2 }
 0x38c   :  { %v2675_v33 = vsel %vm2547_vm13, %v2469_v36, %v2611_v52 }
 0x38d   :  { %v2473_v6 = vpop.f32.mrb[216].mxu0  ;;  %v2709_v26 = vpack.c.bf16 %v2675_v33, %v2674_v63 }
 0x38e   :  { %v2474_v42 = vadd.f32 %v4681_v62, %v2473_v6  ;;  %v2475_v17 = vpop.f32.mrb[217].mxu0 }
 0x38f   :  { %v2476_v37 = vpop.f32.mrb[218].mxu0  ;;  %4333 = vmatmul.mubr.bf16.gmra.mrb[216].mxu1 %v2709_v26 }
 0x390   :  { %v2612_v53 = vmul.f32 0.01, %v2474_v42  ;;  %v2477_v32 = vadd.f32 %v4681_v62, %v2476_v37  ;;  %v2478_v60 = vpop.f32.mrb[219].mxu0  ;;  %vm2548_vm14 = vcmp.gt.f32.partialorder %v2474_v42, 0.0 }
 0x392   :  { %v4282_v31 = vpop.f32.mrb[164].mxu1  ;;  %vm2549_vm15 = vcmp.gt.f32.partialorder %v2477_v32, 0.0  ;;  %v2613_v49 = vmul.f32 0.01, %v2477_v32  ;;  %v2676_v46 = vsel %vm2548_vm14, %v2474_v42, %v2612_v53 }
 0x393   :  { %v6033_v58 = vadd.f32 %v4282_v31, %v6010_v7  ;;  %v2830_v41 = vpop.f32.mrb[165].mxu1 }
 0x394   :  { %v4283_v4 = vpop.f32.mrb[166].mxu1  ;;  %v2677_v27 = vsel %vm2549_vm15, %v2477_v32, %v2613_v49  ;;  %v6040_v19 = vadd.f32 %v6010_v7, %v2830_v41 }
 0x395   :  { %v6036_v47 = vadd.f32 %v4283_v4, %v6010_v7  ;;  %v2833_v20 = vpop.f32.mrb[167].mxu1  ;;  %3081 = vadd.xlane.f32.xlu0 %v6033_v58  ;;  %v2481_v40 = vpop.f32.mrb[220].mxu0  ;;  %v2710_v54 = vpack.c.bf16 %v2677_v27, %v2676_v46 }
 0x396   :  { %v2482_v35 = vadd.f32 %v4681_v62, %v2481_v40  ;;  %v2483_v24 = vpop.f32.mrb[221].mxu0  ;;  %v6044_v29 = vadd.f32 %v6010_v7, %v2833_v20 }
 0x397   :  { %3083 = vadd.xlane.f32.xlu1 %v6036_v47  ;;  %v2484_v1 = vpop.f32.mrb[222].mxu0  ;;  %4336 = vmatprep.mubr.bf16.mxu1 %v2710_v54 }
 0x398   :  { %v2614_v45 = vmul.f32 0.01, %v2482_v35  ;;  %v2485_v11 = vadd.f32 %v4681_v62, %v2484_v1  ;;  %v2486_v21 = vpop.f32.mrb[223].mxu0  ;;  %vm2550_vm0 = vcmp.gt.f32.partialorder %v2482_v35, 0.0 }
 0x399   :  { %3077 = vadd.xlane.f32.xlu0 %v6040_v19 }
 0x39a   :  { %vm2551_vm2 = vcmp.gt.f32.partialorder %v2485_v11, 0.0  ;;  %v2615_v22 = vmul.f32 0.01, %v2485_v11  ;;  %v2678_v57 = vsel %vm2550_vm0, %v2482_v35, %v2614_v45 }
 0x39b   :  { %3079 = vadd.xlane.f32.xlu1 %v6044_v29 }
 0x39c   :  { %v2679_v48 = vsel %vm2551_vm2, %v2485_v11, %v2615_v22 }
 0x39d   :  { %v2711_v50 = vpack.c.bf16 %v2679_v48, %v2678_v57 }
 0x39f   :  { %4337 = vmatmul.mubr.bf16.gmra.mrb[220].mxu1 %v2711_v50 }
 0x3a0   :  { %v4286_v15 = vpop.f32.mrb[168].mxu1 }
 0x3a1   :  { %v6049_v44 = vadd.f32 %v4286_v15, %v6010_v7  ;;  %v2846_v5 = vpop.f32.mrb[169].mxu1 }
 0x3a2   :  { %v4287_v18 = vpop.f32.mrb[170].mxu1  ;;  %v6056_v8 = vadd.f32 %v6010_v7, %v2846_v5 }
 0x3a3   :  { %v6052_v16 = vadd.f32 %v4287_v18, %v6010_v7  ;;  %v2849_v3 = vpop.f32.mrb[171].mxu1  ;;  %3089 = vadd.xlane.f32.xlu0 %v6049_v44 }
 0x3a4   :  { %v6060_v56 = vadd.f32 %v6010_v7, %v2849_v3 }
 0x3a5   :  { %3091 = vadd.xlane.f32.xlu1 %v6052_v16 }
 0x3a7   :  { %3085 = vadd.xlane.f32.xlu0 %v6056_v8 }
 0x3a9   :  { %3087 = vadd.xlane.f32.xlu1 %v6060_v56 }
 0x3b0   :  { %v4290_v59 = vpop.f32.mrb[172].mxu1 }
 0x3b1   :  { %v6065_v14 = vadd.f32 %v4290_v59, %v6010_v7  ;;  %v2862_v28 = vpop.f32.mrb[173].mxu1 }
 0x3b2   :  { %v4291_v51 = vpop.f32.mrb[174].mxu1  ;;  %v6072_v34 = vadd.f32 %v6010_v7, %v2862_v28 }
 0x3b3   :  { %v6068_v23 = vadd.f32 %v4291_v51, %v6010_v7  ;;  %v2865_v43 = vpop.f32.mrb[175].mxu1  ;;  %3097 = vadd.xlane.f32.xlu0 %v6065_v14 }
 0x3b4   :  { %v6076_v38 = vadd.f32 %v6010_v7, %v2865_v43 }
 0x3b5   :  { %3099 = vadd.xlane.f32.xlu1 %v6068_v23 }
 0x3b7   :  { %3093 = vadd.xlane.f32.xlu0 %v6072_v34 }
 0x3b9   :  { %3095 = vadd.xlane.f32.xlu1 %v6076_v38 }
 0x3c0   :  { %v4294_v39 = vpop.f32.mrb[176].mxu1 }
 0x3c1   :  { %v6081_v55 = vadd.f32 %v4294_v39, %v6010_v7  ;;  %v2878_v62 = vpop.f32.mrb[177].mxu1 }
 0x3c2   :  { %v4295_v9 = vpop.f32.mrb[178].mxu1  ;;  %v6088_v2 = vadd.f32 %v6010_v7, %v2878_v62 }
 0x3c3   :  { %v6084_v30 = vadd.f32 %v4295_v9, %v6010_v7  ;;  %v2881_v61 = vpop.f32.mrb[179].mxu1  ;;  %3105 = vadd.xlane.f32.xlu0 %v6081_v55 }
 0x3c4   :  { %v6092_v36 = vadd.f32 %v6010_v7, %v2881_v61  ;;  %v6170_v61 = vld [vmem:[%s6895_s5 + $0x4] ss:$0 sm:$0xff] }
 0x3c5   :  { %3107 = vadd.xlane.f32.xlu1 %v6084_v30 }
 0x3c7   :  { %3101 = vadd.xlane.f32.xlu0 %v6088_v2 }
 0x3c9   :  { %3103 = vadd.xlane.f32.xlu1 %v6092_v36 }
 0x3d0   :  { %v4298_v10 = vpop.f32.mrb[180].mxu1 }
 0x3d1   :  { %v6097_v52 = vadd.f32 %v4298_v10, %v6010_v7  ;;  %v2894_v63 = vpop.f32.mrb[181].mxu1 }
 0x3d2   :  { %v4299_v33 = vpop.f32.mrb[182].mxu1  ;;  %v6104_v42 = vadd.f32 %v6010_v7, %v2894_v63 }
 0x3d3   :  { %v6100_v6 = vadd.f32 %v4299_v33, %v6010_v7  ;;  %v2897_v26 = vpop.f32.mrb[183].mxu1  ;;  %3113 = vadd.xlane.f32.xlu0 %v6097_v52 }
 0x3d4   :  { %v6108_v17 = vadd.f32 %v6010_v7, %v2897_v26 }
 0x3d5   :  { %3115 = vadd.xlane.f32.xlu1 %v6100_v6 }
 0x3d7   :  { %3109 = vadd.xlane.f32.xlu0 %v6104_v42 }
 0x3d9   :  { %3111 = vadd.xlane.f32.xlu1 %v6108_v17 }
 0x3e2   :  { %v4302_v37 = vpop.f32.mrb[184].mxu1 }
 0x3e3   :  { %v6113_v53 = vadd.f32 %v4302_v37, %v6010_v7  ;;  %v2910_v32 = vpop.f32.mrb[185].mxu1 }
 0x3e4   :  { %v4303_v60 = vpop.f32.mrb[186].mxu1  ;;  %v6120_v49 = vadd.f32 %v6010_v7, %v2910_v32 }
 0x3e5   :  { %v6116_v31 = vadd.f32 %v4303_v60, %v6010_v7  ;;  %v2913_v41 = vpop.f32.mrb[187].mxu1  ;;  %3121 = vadd.xlane.f32.xlu0 %v6113_v53 }
 0x3e6   :  { %v6124_v4 = vadd.f32 %v6010_v7, %v2913_v41 }
 0x3e7   :  { %3123 = vadd.xlane.f32.xlu1 %v6116_v31 }
 0x3e9   :  { %3117 = vadd.xlane.f32.xlu0 %v6120_v49 }
 0x3eb   :  { %3119 = vadd.xlane.f32.xlu1 %v6124_v4 }
 0x3f2   :  { %v4306_v20 = vpop.f32.mrb[188].mxu1 }
 0x3f3   :  { %v6129_v46 = vadd.f32 %v4306_v20, %v6010_v7  ;;  %v2926_v27 = vpop.f32.mrb[189].mxu1 }
 0x3f4   :  { %v4307_v40 = vpop.f32.mrb[190].mxu1  ;;  %v6136_v24 = vadd.f32 %v6010_v7, %v2926_v27 }
 0x3f5   :  { %v6132_v54 = vadd.f32 %v4307_v40, %v6010_v7  ;;  %v2929_v35 = vpop.f32.mrb[191].mxu1  ;;  %3129 = vadd.xlane.f32.xlu0 %v6129_v46 }
 0x3f6   :  { %v6140_v1 = vadd.f32 %v6010_v7, %v2929_v35 }
 0x3f7   :  { %3131 = vadd.xlane.f32.xlu1 %v6132_v54 }
 0x3f9   :  { %3125 = vadd.xlane.f32.xlu0 %v6136_v24 }
 0x3fb   :  { %3127 = vadd.xlane.f32.xlu1 %v6140_v1 }
 0x402   :  { %v4310_v45 = vpop.f32.mrb[192].mxu1 }
 0x403   :  { %v6145_v11 = vadd.f32 %v4310_v45, %v6010_v7  ;;  %v2942_v21 = vpop.f32.mrb[193].mxu1 }
 0x404   :  { %v4311_v22 = vpop.f32.mrb[194].mxu1  ;;  %v6152_v50 = vadd.f32 %v6010_v7, %v2942_v21 }
 0x405   :  { %v6148_v57 = vadd.f32 %v4311_v22, %v6010_v7  ;;  %v2945_v48 = vpop.f32.mrb[195].mxu1  ;;  %3137 = vadd.xlane.f32.xlu0 %v6145_v11 }
 0x406   :  { %v6156_v15 = vadd.f32 %v6010_v7, %v2945_v48 }
 0x407   :  { %3139 = vadd.xlane.f32.xlu1 %v6148_v57 }
 0x409   :  { %3133 = vadd.xlane.f32.xlu0 %v6152_v50 }
 0x40b   :  { %3135 = vadd.xlane.f32.xlu1 %v6156_v15 }
 0x412   :  { %v4314_v5 = vpop.f32.mrb[196].mxu1  ;;  %v3074_v18 = vpop.xlane.xlu1 %3073 }
 0x413   :  { %v6161_v3 = vadd.f32 %v4314_v5, %v6010_v7  ;;  %v2958_v59 = vpop.f32.mrb[197].mxu1  ;;  %v3199_v28 = vmul.f32 0.03125, %v3074_v18  ;;  %v3070_v51 = vpop.xlane.xlu0 %3069 }
 0x414   :  { %v4315_v43 = vpop.f32.mrb[198].mxu1  ;;  %v3197_v39 = vmul.f32 0.03125, %v3070_v51  ;;  %v6174_v63 = vadd.f32 %v6010_v7, %v2958_v59 }
 0x415   :  { %v6164_v62 = vadd.f32 %v4315_v43, %v6010_v7  ;;  %v2961_v9 = vpop.f32.mrb[199].mxu1  ;;  %3145 = vadd.xlane.f32.xlu0 %v6161_v3  ;;  %v3263_v10 = vsub.f32 %v6014_v0, %v3199_v28 }
 0x416   :  { %v3261_v33 = vsub.f32 %v6017_v13, %v3197_v39  ;;  %v3076_v26 = vpop.xlane.xlu1 %3075  ;;  %v6182_v41 = vadd.f32 %v6010_v7, %v2961_v9 }
 0x417   :  { %3147 = vadd.xlane.f32.xlu1 %v6164_v62  ;;  %v3200_v37 = vmul.f32 0.03125, %v3076_v26  ;;  %v3072_v32 = vpop.xlane.xlu0 %3071  ;;  %v6179_v60 = vmul.f32 %v6170_v61, %v3263_v10 }
 0x418   :  { %v3198_v20 = vmul.f32 0.03125, %v3072_v32  ;;  %v6191_v40 = vmul.f32 %v6170_v61, %v3261_v33 }
 0x419   :  { %3141 = vadd.xlane.f32.xlu0 %v6174_v63  ;;  %v3264_v0 = vsub.f32 %v6022_v12, %v3200_v37  ;;  %v3395_v13 = vmul.f32 %v6179_v60, %v6179_v60 }
 0x41a   :  { %v3262_v27 = vsub.f32 %v6028_v25, %v3198_v20  ;;  %v3393_v12 = vmul.f32 %v6191_v40, %v6191_v40 }
 0x41b   :  { %3143 = vadd.xlane.f32.xlu1 %v6182_v41  ;;  %v6194_v35 = vmul.f32 %v6170_v61, %v3264_v0 }
 0x41c   :  { %v6199_v21 = vmul.f32 %v6170_v61, %v3262_v27 }
 0x41d   :  { %3461 = vadd.xlane.f32.xlu0 %v3395_v13  ;;  %v3396_v45 = vmul.f32 %v6194_v35, %v6194_v35 }
 0x41e   :  { %v3394_v48 = vmul.f32 %v6199_v21, %v6199_v21 }
 0x41f   :  { %3463 = vadd.xlane.f32.xlu1 %v3396_v45 }
 0x421   :  { %3457 = vadd.xlane.f32.xlu0 %v3393_v12 }
 0x422   :  { %v4318_v25 = vpop.f32.mrb[200].mxu1  ;;  %v3082_v22 = vpop.xlane.xlu0 %3081 }
 0x423   :  { %v6206_v5 = vadd.f32 %v4318_v25, %v6010_v7  ;;  %v3203_v18 = vmul.f32 0.03125, %v3082_v22  ;;  %v2974_v59 = vpop.f32.mrb[201].mxu1  ;;  %3459 = vadd.xlane.f32.xlu1 %v3394_v48 }
 0x424   :  { %v3084_v28 = vpop.xlane.xlu1 %3083  ;;  %v4319_v51 = vpop.f32.mrb[202].mxu1  ;;  %v6214_v26 = vadd.f32 %v6010_v7, %v2974_v59 }
 0x425   :  { %v3267_v43 = vsub.f32 %v6033_v58, %v3203_v18  ;;  %v3204_v39 = vmul.f32 0.03125, %v3084_v28  ;;  %v6210_v9 = vadd.f32 %v4319_v51, %v6010_v7  ;;  %v2977_v10 = vpop.f32.mrb[203].mxu1  ;;  %3153 = vadd.xlane.f32.xlu0 %v6206_v5 }
 0x426   :  { %v3078_v33 = vpop.xlane.xlu0 %3077  ;;  %v6224_v13 = vadd.f32 %v6010_v7, %v2977_v10 }
 0x427   :  { %v3268_v37 = vsub.f32 %v6036_v47, %v3204_v39  ;;  %v3201_v32 = vmul.f32 0.03125, %v3078_v33  ;;  %v6218_v20 = vmul.f32 %v6170_v61, %v3267_v43  ;;  %3155 = vadd.xlane.f32.xlu1 %v6210_v9 }
 0x428   :  { %v3080_v58 = vpop.xlane.xlu1 %3079 }
 0x429   :  { %v3265_v0 = vsub.f32 %v6040_v19, %v3201_v32  ;;  %v3202_v27 = vmul.f32 0.03125, %v3080_v58  ;;  %3149 = vadd.xlane.f32.xlu0 %v6214_v26  ;;  %v6227_v45 = vmul.f32 %v6170_v61, %v3268_v37  ;;  %v3399_v12 = vmul.f32 %v6218_v20, %v6218_v20 }
 0x42b   :  { %v3266_v47 = vsub.f32 %v6044_v29, %v3202_v27  ;;  %v6233_v25 = vmul.f32 %v6170_v61, %v3265_v0  ;;  %3151 = vadd.xlane.f32.xlu1 %v6224_v13  ;;  %v3400_v19 = vmul.f32 %v6227_v45, %v6227_v45 }
 0x42d   :  { %3469 = vadd.xlane.f32.xlu0 %v3399_v12  ;;  %v6239_v22 = vmul.f32 %v6170_v61, %v3266_v47  ;;  %v3397_v48 = vmul.f32 %v6233_v25, %v6233_v25 }
 0x42f   :  { %3471 = vadd.xlane.f32.xlu1 %v3400_v19  ;;  %v3398_v59 = vmul.f32 %v6239_v22, %v6239_v22 }
 0x430   :  { %v3090_v18 = vpop.xlane.xlu0 %3089 }
 0x431   :  { %3465 = vadd.xlane.f32.xlu0 %v3397_v48  ;;  %v3207_v51 = vmul.f32 0.03125, %v3090_v18 }
 0x432   :  { %v4322_v29 = vpop.f32.mrb[204].mxu1  ;;  %v3092_v10 = vpop.xlane.xlu1 %3091 }
 0x433   :  { %v6246_v28 = vadd.f32 %v4322_v29, %v6010_v7  ;;  %v2990_v43 = vpop.f32.mrb[205].mxu1  ;;  %3467 = vadd.xlane.f32.xlu1 %v3398_v59  ;;  %v3271_v33 = vsub.f32 %v6049_v44, %v3207_v51  ;;  %v3208_v32 = vmul.f32 0.03125, %v3092_v10 }
 0x434   :  { %v4323_v39 = vpop.f32.mrb[206].mxu1  ;;  %v3086_v0 = vpop.xlane.xlu0 %3085  ;;  %v6254_v27 = vadd.f32 %v6010_v7, %v2990_v43 }
 0x435   :  { %v6250_v37 = vadd.f32 %v4323_v39, %v6010_v7  ;;  %v2993_v58 = vpop.f32.mrb[207].mxu1  ;;  %3161 = vadd.xlane.f32.xlu0 %v6246_v28  ;;  %v3272_v47 = vsub.f32 %v6052_v16, %v3208_v32  ;;  %v3205_v12 = vmul.f32 0.03125, %v3086_v0  ;;  %v6258_v19 = vmul.f32 %v6170_v61, %v3271_v33 }
 0x436   :  { %v3088_v44 = vpop.xlane.xlu1 %3087  ;;  %v6264_v18 = vadd.f32 %v6010_v7, %v2993_v58 }
 0x437   :  { %3163 = vadd.xlane.f32.xlu1 %v6250_v37  ;;  %v3269_v48 = vsub.f32 %v6056_v8, %v3205_v12  ;;  %v3206_v29 = vmul.f32 0.03125, %v3088_v44  ;;  %v6267_v59 = vmul.f32 %v6170_v61, %v3272_v47  ;;  %v3403_v51 = vmul.f32 %v6258_v19, %v6258_v19 }
 0x439   :  { %3157 = vadd.xlane.f32.xlu0 %v6254_v27  ;;  %v3270_v16 = vsub.f32 %v6060_v56, %v3206_v29  ;;  %v6273_v43 = vmul.f32 %v6170_v61, %v3269_v48  ;;  %v3404_v8 = vmul.f32 %v6267_v59, %v6267_v59 }
 0x43b   :  { %3159 = vadd.xlane.f32.xlu1 %v6264_v18  ;;  %v6279_v39 = vmul.f32 %v6170_v61, %v3270_v16  ;;  %v3401_v10 = vmul.f32 %v6273_v43, %v6273_v43 }
 0x43d   :  { %3477 = vadd.xlane.f32.xlu0 %v3403_v51  ;;  %v3402_v32 = vmul.f32 %v6279_v39, %v6279_v39 }
 0x43f   :  { %3479 = vadd.xlane.f32.xlu1 %v3404_v8 }
 0x440   :  { %v3098_v33 = vpop.xlane.xlu0 %3097 }
 0x441   :  { %3473 = vadd.xlane.f32.xlu0 %v3401_v10  ;;  %v3211_v0 = vmul.f32 0.03125, %v3098_v33 }
 0x442   :  { %v4326_v56 = vpop.f32.mrb[208].mxu1  ;;  %v3100_v44 = vpop.xlane.xlu1 %3099 }
 0x443   :  { %v6286_v58 = vadd.f32 %v4326_v56, %v6010_v7  ;;  %v3006_v47 = vpop.f32.mrb[209].mxu1  ;;  %3475 = vadd.xlane.f32.xlu1 %v3402_v32  ;;  %v3275_v48 = vsub.f32 %v6065_v14, %v3211_v0  ;;  %v3212_v16 = vmul.f32 0.03125, %v3100_v44 }
 0x444   :  { %v4327_v12 = vpop.f32.mrb[210].mxu1  ;;  %v3094_v8 = vpop.xlane.xlu0 %3093  ;;  %v6294_v10 = vadd.f32 %v6010_v7, %v3006_v47 }
 0x445   :  { %v6290_v29 = vadd.f32 %v4327_v12, %v6010_v7  ;;  %v3009_v51 = vpop.f32.mrb[211].mxu1  ;;  %3169 = vadd.xlane.f32.xlu0 %v6286_v58  ;;  %v3276_v56 = vsub.f32 %v6068_v23, %v3212_v16  ;;  %v3209_v33 = vmul.f32 0.03125, %v3094_v8  ;;  %v6298_v32 = vmul.f32 %v6170_v61, %v3275_v48 }
 0x446   :  { %v3096_v14 = vpop.xlane.xlu1 %3095  ;;  %v6304_v44 = vadd.f32 %v6010_v7, %v3009_v51 }
 0x447   :  { %6951 = vst [vmem:[#allocation6_spill] sm:$0xff] %v6298_v32  ;;  %3171 = vadd.xlane.f32.xlu1 %v6290_v29  ;;  %v3273_v0 = vsub.f32 %v6072_v34, %v3209_v33  ;;  %v3210_v12 = vmul.f32 0.03125, %v3096_v14  ;;  %v6307_v47 = vmul.f32 %v6170_v61, %v3276_v56  ;;  %v3407_v48 = vmul.f32 %v6298_v32, %v6298_v32 }
 0x449   :  { %3165 = vadd.xlane.f32.xlu0 %v6294_v10  ;;  %6952 = vst [vmem:[#allocation8_spill] sm:$0xff] %v6307_v47  ;;  %v3274_v23 = vsub.f32 %v6076_v38, %v3210_v12  ;;  %v6313_v16 = vmul.f32 %v6170_v61, %v3273_v0  ;;  %v3408_v34 = vmul.f32 %v6307_v47, %v6307_v47 }
 0x44b   :  { %6953 = vst [vmem:[#allocation7_spill] sm:$0xff] %v6313_v16  ;;  %3167 = vadd.xlane.f32.xlu1 %v6304_v44  ;;  %v6319_v51 = vmul.f32 %v6170_v61, %v3274_v23  ;;  %v3405_v8 = vmul.f32 %v6313_v16, %v6313_v16 }
 0x44d   :  { %3485 = vadd.xlane.f32.xlu0 %v3407_v48  ;;  %6954 = vst [vmem:[#allocation10_spill] sm:$0xff] %v6319_v51  ;;  %v3406_v33 = vmul.f32 %v6319_v51, %v6319_v51 }
 0x44f   :  { %3487 = vadd.xlane.f32.xlu1 %v3408_v34 }
 0x450   :  { %v3106_v56 = vpop.xlane.xlu0 %3105 }
 0x451   :  { %3481 = vadd.xlane.f32.xlu0 %v3405_v8  ;;  %v3215_v0 = vmul.f32 0.03125, %v3106_v56 }
 0x452   :  { %v4330_v38 = vpop.f32.mrb[212].mxu1  ;;  %v3108_v47 = vpop.xlane.xlu1 %3107 }
 0x453   :  { %v6326_v14 = vadd.f32 %v4330_v38, %v6010_v7  ;;  %v3022_v12 = vpop.f32.mrb[213].mxu1  ;;  %3483 = vadd.xlane.f32.xlu1 %v3406_v33  ;;  %v3279_v23 = vsub.f32 %v6081_v55, %v3215_v0  ;;  %v3216_v34 = vmul.f32 0.03125, %v3108_v47 }
 0x454   :  { %v4331_v48 = vpop.f32.mrb[214].mxu1  ;;  %v3102_v16 = vpop.xlane.xlu0 %3101  ;;  %v6334_v51 = vadd.f32 %v6010_v7, %v3022_v12 }
 0x455   :  { %v6330_v32 = vadd.f32 %v4331_v48, %v6010_v7  ;;  %v3025_v8 = vpop.f32.mrb[215].mxu1  ;;  %3177 = vadd.xlane.f32.xlu0 %v6326_v14  ;;  %v3280_v38 = vsub.f32 %v6084_v30, %v3216_v34  ;;  %v3213_v56 = vmul.f32 0.03125, %v3102_v16  ;;  %v6338_v33 = vmul.f32 %v6170_v61, %v3279_v23 }
 0x456   :  { %v3104_v55 = vpop.xlane.xlu1 %3103  ;;  %v6344_v47 = vadd.f32 %v6010_v7, %v3025_v8 }
 0x457   :  { %6955 = vst [vmem:[#allocation9_spill] sm:$0xff] %v6338_v33  ;;  %3179 = vadd.xlane.f32.xlu1 %v6330_v32  ;;  %v3277_v0 = vsub.f32 %v6088_v2, %v3213_v56  ;;  %v3214_v48 = vmul.f32 0.03125, %v3104_v55  ;;  %v6347_v12 = vmul.f32 %v6170_v61, %v3280_v38  ;;  %v3411_v16 = vmul.f32 %v6338_v33, %v6338_v33 }
 0x458   :  { %6956 = vst [vmem:[#allocation11_spill] sm:$0xff] %v6344_v47 }
 0x459   :  { %3173 = vadd.xlane.f32.xlu0 %v6334_v51  ;;  %6957 = vst [vmem:[#allocation5_spill] sm:$0xff] %v6347_v12  ;;  %v3278_v30 = vsub.f32 %v6092_v36, %v3214_v48  ;;  %v6353_v23 = vmul.f32 %v6170_v61, %v3277_v0  ;;  %v3412_v2 = vmul.f32 %v6347_v12, %v6347_v12 }
 0x45b   :  { %6958 = vst [vmem:[#allocation12_spill] sm:$0xff] %v6353_v23  ;;  %3175 = vadd.xlane.f32.xlu1 %v6344_v47  ;;  %v6359_v34 = vmul.f32 %v6170_v61, %v3278_v30  ;;  %v3409_v8 = vmul.f32 %v6353_v23, %v6353_v23 }
 0x45d   :  { %3493 = vadd.xlane.f32.xlu0 %v3411_v16  ;;  %6959 = vst [vmem:[#allocation13_spill] sm:$0xff] %v6359_v34  ;;  %v3410_v38 = vmul.f32 %v6359_v34, %v6359_v34 }
 0x45f   :  { %3495 = vadd.xlane.f32.xlu1 %v3412_v2 }
 0x460   :  { %v3114_v36 = vpop.xlane.xlu0 %3113 }
 0x461   :  { %3489 = vadd.xlane.f32.xlu0 %v3409_v8  ;;  %v3219_v56 = vmul.f32 0.03125, %v3114_v36 }
 0x462   :  { %v4334_v55 = vpop.f32.mrb[216].mxu1  ;;  %v3116_v0 = vpop.xlane.xlu1 %3115 }
 0x463   :  { %3491 = vadd.xlane.f32.xlu1 %v3410_v38  ;;  %v6366_v48 = vadd.f32 %v4334_v55, %v6010_v7  ;;  %v3283_v16 = vsub.f32 %v6097_v52, %v3219_v56  ;;  %v3038_v30 = vpop.f32.mrb[217].mxu1  ;;  %v3220_v12 = vmul.f32 0.03125, %v3116_v0 }
 0x464   :  { %v4335_v33 = vpop.f32.mrb[218].mxu1  ;;  %v3110_v47 = vpop.xlane.xlu0 %3109  ;;  %v6375_v34 = vadd.f32 %v6010_v7, %v3038_v30 }
 0x465   :  { %v6370_v2 = vadd.f32 %v4335_v33, %v6010_v7  ;;  %v3284_v8 = vsub.f32 %v6100_v6, %v3220_v12  ;;  %v3041_v23 = vpop.f32.mrb[219].mxu1  ;;  %3185 = vadd.xlane.f32.xlu0 %v6366_v48  ;;  %v3217_v36 = vmul.f32 0.03125, %v3110_v47  ;;  %v6380_v56 = vmul.f32 %v6170_v61, %v3283_v16 }
 0x466   :  { %v3112_v38 = vpop.xlane.xlu1 %3111  ;;  %v6383_v33 = vadd.f32 %v6010_v7, %v3041_v23 }
 0x467   :  { %v3281_v55 = vsub.f32 %v6104_v42, %v3217_v36  ;;  %3187 = vadd.xlane.f32.xlu1 %v6370_v2  ;;  %v3218_v52 = vmul.f32 0.03125, %v3112_v38  ;;  %6960 = vst [vmem:[#allocation14_spill] sm:$0xff] %v6380_v56  ;;  %v6388_v47 = vmul.f32 %v6170_v61, %v3284_v8  ;;  %v3415_v42 = vmul.f32 %v6380_v56, %v6380_v56 }
 0x469   :  { %v3282_v6 = vsub.f32 %v6108_v17, %v3218_v52  ;;  %3181 = vadd.xlane.f32.xlu0 %v6375_v34  ;;  %6961 = vst [vmem:[#allocation15_spill] sm:$0xff] %v6388_v47  ;;  %v6394_v12 = vmul.f32 %v6170_v61, %v3281_v55  ;;  %v3416_v23 = vmul.f32 %v6388_v47, %v6388_v47 }
 0x46b   :  { %3183 = vadd.xlane.f32.xlu1 %v6383_v33  ;;  %6962 = vst [vmem:[#allocation16_spill] sm:$0xff] %v6394_v12  ;;  %v6399_v0 = vmul.f32 %v6170_v61, %v3282_v6  ;;  %v3413_v17 = vmul.f32 %v6394_v12, %v6394_v12 }
 0x46d   :  { %3501 = vadd.xlane.f32.xlu0 %v3415_v42  ;;  %6963 = vst [vmem:[#allocation17_spill] sm:$0xff] %v6399_v0  ;;  %v3414_v8 = vmul.f32 %v6399_v0, %v6399_v0 }
 0x46f   :  { %3503 = vadd.xlane.f32.xlu1 %v3416_v23 }
 0x471   :  { %3497 = vadd.xlane.f32.xlu0 %v3413_v17 }
 0x472   :  { %v3122_v16 = vpop.xlane.xlu0 %3121  ;;  %v4338_v36 = vpop.f32.mrb[220].mxu1 }
 0x473   :  { %v3223_v30 = vmul.f32 0.03125, %v3122_v16  ;;  %v6406_v55 = vadd.f32 %v4338_v36, %v6010_v7  ;;  %v3054_v42 = vpop.f32.mrb[221].mxu1  ;;  %3499 = vadd.xlane.f32.xlu1 %v3414_v8 }
 0x474   :  { %v3124_v38 = vpop.xlane.xlu1 %3123  ;;  %v4339_v23 = vpop.f32.mrb[222].mxu1  ;;  %v6415_v36 = vadd.f32 %v6010_v7, %v3054_v42 }
 0x475   :  { %v3287_v52 = vsub.f32 %v6113_v53, %v3223_v30  ;;  %v3224_v6 = vmul.f32 0.03125, %v3124_v38  ;;  %v6410_v12 = vadd.f32 %v4339_v23, %v6010_v7  ;;  %v3057_v16 = vpop.f32.mrb[223].mxu1  ;;  %3193 = vadd.xlane.f32.xlu0 %v6406_v55 }
 0x476   :  { %v3118_v47 = vpop.xlane.xlu0 %3117  ;;  %v6423_v38 = vadd.f32 %v6010_v7, %v3057_v16 }
 0x477   :  { %v3288_v17 = vsub.f32 %v6116_v31, %v3224_v6  ;;  %v3221_v0 = vmul.f32 0.03125, %v3118_v47  ;;  %3195 = vadd.xlane.f32.xlu1 %v6410_v12  ;;  %v6420_v8 = vmul.f32 %v6170_v61, %v3287_v52 }
 0x478   :  { %v3120_v56 = vpop.xlane.xlu1 %3119 }
 0x479   :  { %v3285_v53 = vsub.f32 %v6120_v49, %v3221_v0  ;;  %v3222_v30 = vmul.f32 0.03125, %v3120_v56  ;;  %3189 = vadd.xlane.f32.xlu0 %v6415_v36  ;;  %v6428_v47 = vmul.f32 %v6170_v61, %v3288_v17  ;;  %v3419_v49 = vmul.f32 %v6420_v8, %v6420_v8 }
 0x47b   :  { %v3286_v31 = vsub.f32 %v6124_v4, %v3222_v30  ;;  %3191 = vadd.xlane.f32.xlu1 %v6423_v38  ;;  %v6434_v56 = vmul.f32 %v6170_v61, %v3285_v53  ;;  %v3420_v7 = vmul.f32 %v6428_v47, %v6428_v47 }
 0x47d   :  { %6964 = vst [vmem:[#allocation18_spill] sm:$0xff] %v6434_v56  ;;  %3509 = vadd.xlane.f32.xlu0 %v3419_v49  ;;  %v6439_v0 = vmul.f32 %v6170_v61, %v3286_v31  ;;  %v3417_v4 = vmul.f32 %v6434_v56, %v6434_v56 }
 0x47f   :  { %6965 = vst [vmem:[#allocation19_spill] sm:$0xff] %v6439_v0  ;;  %3511 = vadd.xlane.f32.xlu1 %v3420_v7  ;;  %v3418_v6 = vmul.f32 %v6439_v0, %v6439_v0 }
 0x481   :  { %3505 = vadd.xlane.f32.xlu0 %v3417_v4 }
 0x482   :  { %v3130_v52 = vpop.xlane.xlu0 %3129 }
 0x483   :  { %v3227_v42 = vmul.f32 0.03125, %v3130_v52  ;;  %3507 = vadd.xlane.f32.xlu1 %v3418_v6 }
 0x484   :  { %v3132_v23 = vpop.xlane.xlu1 %3131 }
 0x485   :  { %v3291_v17 = vsub.f32 %v6129_v46, %v3227_v42  ;;  %v3228_v16 = vmul.f32 0.03125, %v3132_v23 }
 0x486   :  { %v3126_v53 = vpop.xlane.xlu0 %3125 }
 0x487   :  { %v3292_v30 = vsub.f32 %v6132_v54, %v3228_v16  ;;  %v3225_v31 = vmul.f32 0.03125, %v3126_v53  ;;  %v6448_v49 = vmul.f32 %v6170_v61, %v3291_v17 }
 0x488   :  { %v3128_v7 = vpop.xlane.xlu1 %3127 }
 0x489   :  { %v3289_v56 = vsub.f32 %v6136_v24, %v3225_v31  ;;  %v3226_v4 = vmul.f32 0.03125, %v3128_v7  ;;  %v3423_v52 = vmul.f32 %v6448_v49, %v6448_v49  ;;  %v6454_v0 = vmul.f32 %v6170_v61, %v3292_v30 }
 0x48b   :  { %v3290_v46 = vsub.f32 %v6140_v1, %v3226_v4  ;;  %3517 = vadd.xlane.f32.xlu0 %v3423_v52  ;;  %v3424_v54 = vmul.f32 %v6454_v0, %v6454_v0  ;;  %v6460_v42 = vmul.f32 %v6170_v61, %v3289_v56 }
 0x48d   :  { %3519 = vadd.xlane.f32.xlu1 %v3424_v54  ;;  %v3421_v24 = vmul.f32 %v6460_v42, %v6460_v42  ;;  %v6465_v6 = vmul.f32 %v6170_v61, %v3290_v46 }
 0x48f   :  { %3513 = vadd.xlane.f32.xlu0 %v3421_v24  ;;  %v3422_v23 = vmul.f32 %v6465_v6, %v6465_v6 }
 0x491   :  { %3515 = vadd.xlane.f32.xlu1 %v3422_v23 }
 0x492   :  { %v3138_v1 = vpop.xlane.xlu0 %3137 }
 0x493   :  { %v3231_v17 = vmul.f32 0.03125, %v3138_v1 }
 0x494   :  { %v3140_v16 = vpop.xlane.xlu1 %3139 }
 0x495   :  { %v3295_v53 = vsub.f32 %v6145_v11, %v3231_v17  ;;  %v3232_v30 = vmul.f32 0.03125, %v3140_v16 }
 0x496   :  { %v3134_v56 = vpop.xlane.xlu0 %3133 }
 0x497   :  { %v3296_v31 = vsub.f32 %v6148_v57, %v3232_v30  ;;  %v3229_v7 = vmul.f32 0.03125, %v3134_v56  ;;  %v6472_v4 = vmul.f32 %v6170_v61, %v3295_v53 }
 0x498   :  { %v3136_v52 = vpop.xlane.xlu1 %3135 }
 0x499   :  { %v3293_v46 = vsub.f32 %v6152_v50, %v3229_v7  ;;  %v3230_v54 = vmul.f32 0.03125, %v3136_v52  ;;  %v3427_v24 = vmul.f32 %v6472_v4, %v6472_v4  ;;  %v6478_v23 = vmul.f32 %v6170_v61, %v3296_v31 }
 0x49b   :  { %v6481_v11 = vmul.f32 %v6170_v61, %v3293_v46  ;;  %v3294_v1 = vsub.f32 %v6156_v15, %v3230_v54  ;;  %3525 = vadd.xlane.f32.xlu0 %v3427_v24  ;;  %v3428_v57 = vmul.f32 %v6478_v23, %v6478_v23 }
 0x49d   :  { %v6487_v17 = vmul.f32 %v6170_v61, %v3294_v1  ;;  %3527 = vadd.xlane.f32.xlu1 %v3428_v57  ;;  %v3425_v50 = vmul.f32 %v6481_v11, %v6481_v11 }
 0x49f   :  { %3521 = vadd.xlane.f32.xlu0 %v3425_v50  ;;  %v3426_v16 = vmul.f32 %v6487_v17, %v6487_v17 }
 0x4a1   :  { %3523 = vadd.xlane.f32.xlu1 %v3426_v16 }
 0x4a2   :  { %v3146_v53 = vpop.xlane.xlu0 %3145 }
 0x4a3   :  { %v3235_v30 = vmul.f32 0.03125, %v3146_v53 }
 0x4a4   :  { %v3148_v56 = vpop.xlane.xlu1 %3147 }
 0x4a5   :  { %v3299_v15 = vsub.f32 %v6161_v3, %v3235_v30  ;;  %v3236_v31 = vmul.f32 0.03125, %v3148_v56 }
 0x4a6   :  { %v3142_v7 = vpop.xlane.xlu0 %3141 }
 0x4a7   :  { %v6495_v52 = vmul.f32 %v6170_v61, %v3299_v15  ;;  %v3300_v46 = vsub.f32 %v6164_v62, %v3236_v31  ;;  %v3233_v54 = vmul.f32 0.03125, %v3142_v7 }
 0x4a8   :  { %v3144_v24 = vpop.xlane.xlu1 %3143 }
 0x4a9   :  { %v6499_v1 = vmul.f32 %v6170_v61, %v3300_v46  ;;  %v3297_v57 = vsub.f32 %v6174_v63, %v3233_v54  ;;  %v3234_v50 = vmul.f32 0.03125, %v3144_v24  ;;  %v3431_v16 = vmul.f32 %v6495_v52, %v6495_v52 }
 0x4aa   :  { %v3462_v53 = vpop.xlane.xlu0 %3461 }
 0x4ab   :  { %v6505_v3 = vmul.f32 %v6170_v61, %v3297_v57  ;;  %v3298_v30 = vsub.f32 %v6182_v41, %v3234_v50  ;;  %v3587_v56 = vmul.f32 0.03125, %v3462_v53  ;;  %3533 = vadd.xlane.f32.xlu0 %v3431_v16  ;;  %v3432_v62 = vmul.f32 %v6499_v1, %v6499_v1 }
 0x4ac   :  { %v3464_v63 = vpop.xlane.xlu1 %3463 }
 0x4ad   :  { %6966 = vst [vmem:[#allocation20_spill] sm:$0xff] %v6505_v3  ;;  %v6511_v15 = vmul.f32 %v6170_v61, %v3298_v30  ;;  %v3651_v31 = vadd.f32 1e-05, %v3587_v56  ;;  %3535 = vadd.xlane.f32.xlu1 %v3432_v62  ;;  %v3429_v7 = vmul.f32 %v6505_v3, %v6505_v3  ;;  %v3588_v46 = vmul.f32 0.03125, %v3464_v63 }
 0x4ae   :  { %v3458_v54 = vpop.xlane.xlu0 %3457 }
 0x4af   :  { %6967 = vst [vmem:[#allocation21_spill] sm:$0xff] %v6511_v15  ;;  %4425 = vrsqrt.f32 %v3651_v31  ;;  %v3585_v24 = vmul.f32 0.03125, %v3458_v54  ;;  %3529 = vadd.xlane.f32.xlu0 %v3429_v7  ;;  %v3430_v41 = vmul.f32 %v6511_v15, %v6511_v15  ;;  %v3652_v57 = vadd.f32 1e-05, %v3588_v46 }
 0x4b0   :  { %v3460_v16 = vpop.xlane.xlu1 %3459 }
 0x4b1   :  { %v3649_v50 = vadd.f32 1e-05, %v3585_v24  ;;  %3531 = vadd.xlane.f32.xlu1 %v3430_v41  ;;  %4427 = vrsqrt.f32 %v3652_v57  ;;  %v3586_v53 = vmul.f32 0.03125, %v3460_v16  ;;  %v6525_v41 = vld [vmem:[%s6895_s5 + $0x2] ss:$0 sm:$0xff] }
 0x4b2   :  { %v3154_v30 = vpop.xlane.xlu0 %3153 }
 0x4b3   :  { %4429 = vrsqrt.f32 %v3649_v50  ;;  %v3239_v56 = vmul.f32 0.03125, %v3154_v30  ;;  %v3650_v62 = vadd.f32 1e-05, %v3586_v53 }
 0x4b4   :  { %v3156_v63 = vpop.xlane.xlu1 %3155 }
 0x4b5   :  { %v3303_v3 = vsub.f32 %v6206_v5, %v3239_v56  ;;  %4431 = vrsqrt.f32 %v3650_v62  ;;  %v3240_v31 = vmul.f32 0.03125, %v3156_v63 }
 0x4b6   :  { %v3150_v54 = vpop.xlane.xlu0 %3149 }
 0x4b7   :  { %v6519_v7 = vmul.f32 %v6170_v61, %v3303_v3  ;;  %v3237_v15 = vmul.f32 0.03125, %v3150_v54  ;;  %v3304_v46 = vsub.f32 %v6210_v9, %v3240_v31  ;;  %v6537_v9 = vld [vmem:[%s6895_s5 + $0x3] ss:$0 sm:$0xff] }
 0x4b8   :  { %v3152_v50 = vpop.xlane.xlu1 %3151 }
 0x4b9   :  { %v4426_v24 = vpop.eup %4425  ;;  %v3301_v57 = vsub.f32 %v6214_v26, %v3237_v15  ;;  %v3435_v5 = vmul.f32 %v6519_v7, %v6519_v7  ;;  %v6532_v3 = vmul.f32 %v6170_v61, %v3304_v46  ;;  %v3238_v53 = vmul.f32 0.03125, %v3152_v50 }
 0x4ba   :  { %v3779_v16 = vmul.f32 %v4426_v24, %v6179_v60  ;;  %v3470_v30 = vpop.xlane.xlu0 %3469 }
 0x4bb   :  { %6968 = vst [vmem:[#allocation22_spill] sm:$0xff] %v6532_v3  ;;  %v6540_v56 = vmul.f32 %v6170_v61, %v3301_v57  ;;  %v3591_v26 = vmul.f32 0.03125, %v3470_v30  ;;  %3541 = vadd.xlane.f32.xlu0 %v3435_v5  ;;  %v4428_v15 = vpop.eup %4427  ;;  %v3302_v60 = vsub.f32 %v6224_v13, %v3238_v53  ;;  %v3436_v63 = vmul.f32 %v6532_v3, %v6532_v3 }
 0x4bc   :  { %v3847_v62 = vmul.f32 %v6525_v41, %v3779_v16  ;;  %v3780_v54 = vmul.f32 %v4428_v15, %v6194_v35  ;;  %v3472_v24 = vpop.xlane.xlu1 %3471 }
 0x4bd   :  { %v4430_v31 = vpop.eup %4429  ;;  %v3655_v46 = vadd.f32 1e-05, %v3591_v26  ;;  %v3433_v50 = vmul.f32 %v6540_v56, %v6540_v56  ;;  %v6552_v30 = vmul.f32 %v6170_v61, %v3302_v60  ;;  %v3592_v16 = vmul.f32 0.03125, %v3472_v24  ;;  %3543 = vadd.xlane.f32.xlu1 %v3436_v63 }
 0x4be   :  { %v3915_v57 = vadd.f32 %v6537_v9, %v3847_v62  ;;  %v3777_v5 = vmul.f32 %v4430_v31, %v6191_v40  ;;  %v3466_v13 = vpop.xlane.xlu0 %3465  ;;  %v3848_v53 = vmul.f32 %v6525_v41, %v3780_v54 }
 0x4bf   :  { %4433 = vrsqrt.f32 %v3655_v46  ;;  %v3589_v3 = vmul.f32 0.03125, %v3466_v13  ;;  %3537 = vadd.xlane.f32.xlu0 %v3433_v50  ;;  %v4432_v35 = vpop.eup %4431  ;;  %v3656_v15 = vadd.f32 1e-05, %v3592_v16  ;;  %v3434_v62 = vmul.f32 %v6552_v30, %v6552_v30 }
 0x4c0   :  { %4435 = vtanh.f32 %v3915_v57  ;;  %v3845_v26 = vmul.f32 %v6525_v41, %v3777_v5  ;;  %v3916_v40 = vadd.f32 %v6537_v9, %v3848_v53  ;;  %v3778_v60 = vmul.f32 %v4432_v35, %v6199_v21  ;;  %v3468_v63 = vpop.xlane.xlu1 %3467 }
 0x4c1   :  { %v3653_v31 = vadd.f32 1e-05, %v3589_v3  ;;  %4437 = vrsqrt.f32 %v3656_v15  ;;  %v3590_v54 = vmul.f32 0.03125, %v3468_v63  ;;  %3539 = vadd.xlane.f32.xlu1 %v3434_v62 }
 0x4c2   :  { %v3913_v24 = vadd.f32 %v6537_v9, %v3845_v26  ;;  %v3162_v46 = vpop.xlane.xlu0 %3161  ;;  %4439 = vtanh.f32 %v3916_v40  ;;  %v3846_v50 = vmul.f32 %v6525_v41, %v3778_v60 }
 0x4c3   :  { %v3243_v57 = vmul.f32 0.03125, %v3162_v46  ;;  %v3654_v5 = vadd.f32 1e-05, %v3590_v54 }
 0x4c4   :  { %4441 = vtanh.f32 %v3913_v24  ;;  %v3914_v16 = vadd.f32 %v6537_v9, %v3846_v50  ;;  %v3164_v21 = vpop.xlane.xlu1 %3163 }
 0x4c5   :  { %4443 = vrsqrt.f32 %v3653_v31  ;;  %v3307_v13 = vsub.f32 %v6246_v28, %v3243_v57  ;;  %v3244_v3 = vmul.f32 0.03125, %v3164_v21 }
 0x4c6   :  { %4445 = vrsqrt.f32 %v3654_v5  ;;  %v3158_v53 = vpop.xlane.xlu0 %3157 }
 0x4c7   :  { %4447 = vtanh.f32 %v3914_v16  ;;  %v6565_v35 = vmul.f32 %v6170_v61, %v3307_v13  ;;  %v3241_v26 = vmul.f32 0.03125, %v3158_v53  ;;  %v3308_v15 = vsub.f32 %v6250_v37, %v3244_v3 }
 0x4c8   :  { %v3160_v60 = vpop.xlane.xlu1 %3159 }
 0x4c9   :  { %v4434_v62 = vpop.eup %4433  ;;  %v3305_v40 = vsub.f32 %v6254_v27, %v3241_v26  ;;  %v3439_v31 = vmul.f32 %v6565_v35, %v6565_v35  ;;  %v6573_v24 = vmul.f32 %v6170_v61, %v3308_v15  ;;  %v3242_v54 = vmul.f32 0.03125, %v3160_v60 }
 0x4ca   :  { %v4436_v63 = vpop.eup %4435  ;;  %v3783_v28 = vmul.f32 %v4434_v62, %v6218_v20  ;;  %v3478_v46 = vpop.xlane.xlu0 %3477 }
 0x4cb   :  { %4043 = vst [vmem:[#allocation2 + $0x10] sm:$0xff] %v4436_v63  ;;  %v6576_v50 = vmul.f32 %v6170_v61, %v3305_v40  ;;  %v3595_v37 = vmul.f32 0.03125, %v3478_v46  ;;  %3549 = vadd.xlane.f32.xlu0 %v3439_v31  ;;  %v4438_v57 = vpop.eup %4437  ;;  %v3306_v5 = vsub.f32 %v6264_v18, %v3242_v54  ;;  %v3440_v16 = vmul.f32 %v6573_v24, %v6573_v24 }
 0x4cc   :  { %v3851_v27 = vmul.f32 %v6525_v41, %v3783_v28  ;;  %v4440_v20 = vpop.eup %4439  ;;  %v3784_v13 = vmul.f32 %v4438_v57, %v6227_v45  ;;  %v3480_v3 = vpop.xlane.xlu1 %3479 }
 0x4cd   :  { %v3659_v21 = vadd.f32 1e-05, %v3595_v37  ;;  %v3437_v53 = vmul.f32 %v6576_v50, %v6576_v50  ;;  %4044 = vst [vmem:[#allocation2 + $0x18] sm:$0xff] %v4440_v20  ;;  %v6587_v62 = vmul.f32 %v6170_v61, %v3306_v5  ;;  %v3596_v40 = vmul.f32 0.03125, %v3480_v3  ;;  %3551 = vadd.xlane.f32.xlu1 %v3440_v16 }
 0x4ce   :  { %v4442_v26 = vpop.eup %4441  ;;  %v3919_v15 = vadd.f32 %v6537_v9, %v3851_v27  ;;  %v3474_v18 = vpop.xlane.xlu0 %3473  ;;  %v3852_v31 = vmul.f32 %v6525_v41, %v3784_v13 }
 0x4cf   :  { %v4444_v60 = vpop.eup %4443  ;;  %4041 = vst [vmem:[#allocation2] sm:$0xff] %v4442_v26  ;;  %4449 = vrsqrt.f32 %v3659_v21  ;;  %v3593_v45 = vmul.f32 0.03125, %v3474_v18  ;;  %3545 = vadd.xlane.f32.xlu0 %v3437_v53  ;;  %v3660_v54 = vadd.f32 1e-05, %v3596_v40  ;;  %v3438_v46 = vmul.f32 %v6587_v62, %v6587_v62 }
 0x4d0   :  { %v4446_v63 = vpop.eup %4445  ;;  %4451 = vtanh.f32 %v3919_v15  ;;  %v3781_v28 = vmul.f32 %v4444_v60, %v6233_v25  ;;  %v3920_v57 = vadd.f32 %v6537_v9, %v3852_v31  ;;  %v3476_v16 = vpop.xlane.xlu1 %3475 }
 0x4d1   :  { %v4448_v37 = vpop.eup %4447  ;;  %v3782_v27 = vmul.f32 %v4446_v63, %v6239_v22  ;;  %v3657_v5 = vadd.f32 1e-05, %v3593_v45  ;;  %4453 = vrsqrt.f32 %v3660_v54  ;;  %v3594_v13 = vmul.f32 0.03125, %v3476_v16  ;;  %3547 = vadd.xlane.f32.xlu1 %v3438_v46 }
 0x4d2   :  { %4042 = vst [vmem:[#allocation2 + $0x8] sm:$0xff] %v4448_v37  ;;  %v3849_v20 = vmul.f32 %v6525_v41, %v3781_v28  ;;  %v3170_v21 = vpop.xlane.xlu0 %3169  ;;  %4455 = vtanh.f32 %v3920_v57 }
 0x4d3   :  { %v3850_v25 = vmul.f32 %v6525_v41, %v3782_v27  ;;  %v3247_v3 = vmul.f32 0.03125, %v3170_v21  ;;  %4457 = vrsqrt.f32 %v3657_v5  ;;  %v3658_v26 = vadd.f32 1e-05, %v3594_v13 }
 0x4d4   :  { %v3917_v53 = vadd.f32 %v6537_v9, %v3849_v20  ;;  %v3172_v40 = vpop.xlane.xlu1 %3171 }
 0x4d5   :  { %v3918_v15 = vadd.f32 %v6537_v9, %v3850_v25  ;;  %v3311_v22 = vsub.f32 %v6286_v58, %v3247_v3  ;;  %v3248_v18 = vmul.f32 0.03125, %v3172_v40 }
 0x4d6   :  { %4459 = vtanh.f32 %v3917_v53  ;;  %v3166_v60 = vpop.xlane.xlu0 %3165 }
 0x4d7   :  { %4461 = vtanh.f32 %v3918_v15  ;;  %v6601_v31 = vmul.f32 %v6170_v61, %v3311_v22  ;;  %v3245_v45 = vmul.f32 0.03125, %v3166_v60  ;;  %v3312_v63 = vsub.f32 %v6290_v29, %v3248_v18 }
 0x4d8   :  { %4463 = vrsqrt.f32 %v3658_v26  ;;  %v3168_v46 = vpop.xlane.xlu1 %3167 }
 0x4d9   :  { %v4450_v28 = vpop.eup %4449  ;;  %v3309_v54 = vsub.f32 %v6294_v10, %v3245_v45  ;;  %v3443_v37 = vmul.f32 %v6601_v31, %v6601_v31  ;;  %v6609_v27 = vmul.f32 %v6170_v61, %v3312_v63  ;;  %v3246_v5 = vmul.f32 0.03125, %v3168_v46 }
 0x4da   :  { %v4452_v58 = vpop.eup %4451  ;;  %v3787_v57 = vmul.f32 %v4450_v28, %v6258_v19  ;;  %v3486_v16 = vpop.xlane.xlu0 %3485 }
 0x4db   :  { %4047 = vst [vmem:[#allocation2 + $0x30] sm:$0xff] %v4452_v58  ;;  %v6612_v20 = vmul.f32 %v6170_v61, %v3309_v54  ;;  %v3599_v29 = vmul.f32 0.03125, %v3486_v16  ;;  %3557 = vadd.xlane.f32.xlu0 %v3443_v37  ;;  %v4454_v13 = vpop.eup %4453  ;;  %v3310_v21 = vsub.f32 %v6304_v44, %v3246_v5  ;;  %v3444_v25 = vmul.f32 %v6609_v27, %v6609_v27 }
 0x4dc   :  { %v3855_v10 = vmul.f32 %v6525_v41, %v3787_v57  ;;  %v4456_v19 = vpop.eup %4455  ;;  %v3788_v3 = vmul.f32 %v4454_v13, %v6267_v59  ;;  %v3488_v26 = vpop.xlane.xlu1 %3487 }
 0x4dd   :  { %v3663_v53 = vadd.f32 1e-05, %v3599_v29  ;;  %v3441_v15 = vmul.f32 %v6612_v20, %v6612_v20  ;;  %v4458_v22 = vpop.eup %4457  ;;  %4048 = vst [vmem:[#allocation2 + $0x38] sm:$0xff] %v4456_v19  ;;  %v6623_v18 = vmul.f32 %v6170_v61, %v3310_v21  ;;  %v3600_v60 = vmul.f32 0.03125, %v3488_v26  ;;  %3559 = vadd.xlane.f32.xlu1 %v3444_v25 }
 0x4de   :  { %v3923_v40 = vadd.f32 %v6537_v9, %v3855_v10  ;;  %v3482_v44 = vpop.xlane.xlu0 %3481  ;;  %v3856_v45 = vmul.f32 %v6525_v41, %v3788_v3  ;;  %v3785_v63 = vmul.f32 %v4458_v22, %v6273_v43 }
 0x4df   :  { %4465 = vrsqrt.f32 %v3663_v53  ;;  %v3597_v59 = vmul.f32 0.03125, %v3482_v44  ;;  %3553 = vadd.xlane.f32.xlu0 %v3441_v15  ;;  %v3664_v54 = vadd.f32 1e-05, %v3600_v60  ;;  %v3442_v46 = vmul.f32 %v6623_v18, %v6623_v18 }
 0x4e0   :  { %v4460_v28 = vpop.eup %4459  ;;  %4467 = vtanh.f32 %v3923_v40  ;;  %v3924_v61 = vadd.f32 %v6537_v9, %v3856_v45  ;;  %v3853_v58 = vmul.f32 %v6525_v41, %v3785_v63  ;;  %v3484_v5 = vpop.xlane.xlu1 %3483  ;;  %v6639_v40 = vld [vmem:[%s6895_s5 + $0x4] ss:$0 sm:$0xff] }
 0x4e1   :  { %v4462_v37 = vpop.eup %4461  ;;  %4045 = vst [vmem:[#allocation2 + $0x20] sm:$0xff] %v4460_v28  ;;  %v3661_v57 = vadd.f32 1e-05, %v3597_v59  ;;  %4469 = vrsqrt.f32 %v3664_v54  ;;  %v3598_v43 = vmul.f32 0.03125, %v3484_v5  ;;  %3555 = vadd.xlane.f32.xlu1 %v3442_v46  ;;  %v6969_v54 = vld [vmem:[#allocation6_spill] sm:$0xff] }
 0x4e2   :  { %v4464_v16 = vpop.eup %4463  ;;  %4046 = vst [vmem:[#allocation2 + $0x28] sm:$0xff] %v4462_v37  ;;  %v3178_v29 = vpop.xlane.xlu0 %3177  ;;  %4471 = vtanh.f32 %v3924_v61  ;;  %v3921_v13 = vadd.f32 %v6537_v9, %v3853_v58 }
 0x4e3   :  { %v3786_v10 = vmul.f32 %v4464_v16, %v6279_v39  ;;  %v3251_v21 = vmul.f32 0.03125, %v3178_v29  ;;  %4473 = vrsqrt.f32 %v3661_v57  ;;  %v3662_v25 = vadd.f32 1e-05, %v3598_v43  ;;  %v6970_v16 = vld [vmem:[#allocation11_spill] sm:$0xff] }
 0x4e4   :  { %4475 = vtanh.f32 %v3921_v13  ;;  %v3180_v53 = vpop.xlane.xlu1 %3179 }
 0x4e5   :  { %v3854_v19 = vmul.f32 %v6525_v41, %v3786_v10  ;;  %v3315_v3 = vsub.f32 %v6326_v14, %v3251_v21  ;;  %4477 = vrsqrt.f32 %v3662_v25  ;;  %v3252_v26 = vmul.f32 0.03125, %v3180_v53  ;;  %v6971_v10 = vld [vmem:[#allocation8_spill] sm:$0xff] }
 0x4e6   :  { %v3174_v15 = vpop.xlane.xlu0 %3173 }
 0x4e7   :  { %v3922_v22 = vadd.f32 %v6537_v9, %v3854_v19  ;;  %v6642_v39 = vmul.f32 %v6639_v40, %v3315_v3  ;;  %v3249_v60 = vmul.f32 0.03125, %v3174_v15  ;;  %v3316_v44 = vsub.f32 %v6330_v32, %v3252_v26 }
 0x4e8   :  { %v3176_v63 = vpop.xlane.xlu1 %3175 }
 0x4e9   :  { %v4466_v45 = vpop.eup %4465  ;;  %4479 = vtanh.f32 %v3922_v22  ;;  %v3313_v14 = vsub.f32 %v6334_v51, %v3249_v60  ;;  %v3447_v59 = vmul.f32 %v6642_v39, %v6642_v39  ;;  %v6650_v37 = vmul.f32 %v6639_v40, %v3316_v44 }
 0x4ea   :  { %v4468_v28 = vpop.eup %4467  ;;  %v3791_v46 = vmul.f32 %v4466_v45, %v6969_v54  ;;  %v3250_v61 = vmul.f32 0.03125, %v3176_v63  ;;  %v3494_v58 = vpop.xlane.xlu0 %3493 }
 0x4eb   :  { %4051 = vst [vmem:[#allocation2 + $0x50] sm:$0xff] %v4468_v28  ;;  %v6653_v57 = vmul.f32 %v6639_v40, %v3313_v14  ;;  %v3603_v32 = vmul.f32 0.03125, %v3494_v58  ;;  %3565 = vadd.xlane.f32.xlu0 %v3447_v59  ;;  %v4470_v5 = vpop.eup %4469  ;;  %v3448_v29 = vmul.f32 %v6650_v37, %v6650_v37  ;;  %v6972_v14 = vld [vmem:[#allocation7_spill] sm:$0xff] }
 0x4ec   :  { %v3859_v51 = vmul.f32 %v6525_v41, %v3791_v46  ;;  %v3314_v43 = vsub.f32 %v6970_v16, %v3250_v61  ;;  %v4472_v13 = vpop.eup %4471  ;;  %v3792_v21 = vmul.f32 %v4470_v5, %v6971_v10  ;;  %v3496_v19 = vpop.xlane.xlu1 %3495 }
 0x4ed   :  { %v3667_v25 = vadd.f32 1e-05, %v3603_v32  ;;  %v3445_v3 = vmul.f32 %v6653_v57, %v6653_v57  ;;  %v4474_v53 = vpop.eup %4473  ;;  %4052 = vst [vmem:[#allocation2 + $0x58] sm:$0xff] %v4472_v13  ;;  %v3604_v22 = vmul.f32 0.03125, %v3496_v19  ;;  %3567 = vadd.xlane.f32.xlu1 %v3448_v29  ;;  %v6973_v32 = vld [vmem:[#allocation10_spill] sm:$0xff] }
 0x4ee   :  { %v3927_v26 = vadd.f32 %v6537_v9, %v3859_v51  ;;  %v6664_v15 = vmul.f32 %v6639_v40, %v3314_v43  ;;  %v3490_v60 = vpop.xlane.xlu0 %3489  ;;  %v4476_v44 = vpop.eup %4475  ;;  %v3860_v45 = vmul.f32 %v6525_v41, %v3792_v21  ;;  %v3789_v63 = vmul.f32 %v4474_v53, %v6972_v14 }
 0x4ef   :  { %4481 = vrsqrt.f32 %v3667_v25  ;;  %v3601_v59 = vmul.f32 0.03125, %v3490_v60  ;;  %3561 = vadd.xlane.f32.xlu0 %v3445_v3  ;;  %v4478_v28 = vpop.eup %4477  ;;  %4049 = vst [vmem:[#allocation2 + $0x40] sm:$0xff] %v4476_v44  ;;  %v3668_v54 = vadd.f32 1e-05, %v3604_v22 }
 0x4f0   :  { %4483 = vtanh.f32 %v3927_v26  ;;  %v3446_v46 = vmul.f32 %v6664_v15, %v6664_v15  ;;  %v3928_v61 = vadd.f32 %v6537_v9, %v3860_v45  ;;  %v3857_v58 = vmul.f32 %v6525_v41, %v3789_v63  ;;  %v3492_v16 = vpop.xlane.xlu1 %3491 }
 0x4f1   :  { %v3790_v5 = vmul.f32 %v4478_v28, %v6973_v32  ;;  %v3665_v51 = vadd.f32 1e-05, %v3601_v59  ;;  %4485 = vrsqrt.f32 %v3668_v54  ;;  %v3602_v43 = vmul.f32 0.03125, %v3492_v16  ;;  %v6974_v28 = vld [vmem:[#allocation9_spill] sm:$0xff] }
 0x4f2   :  { %3563 = vadd.xlane.f32.xlu1 %v3446_v46  ;;  %4487 = vtanh.f32 %v3928_v61  ;;  %v3925_v13 = vadd.f32 %v6537_v9, %v3857_v58  ;;  %v3186_v25 = vpop.xlane.xlu0 %3185 }
 0x4f3   :  { %v4480_v29 = vpop.eup %4479  ;;  %v3858_v10 = vmul.f32 %v6525_v41, %v3790_v5  ;;  %4489 = vrsqrt.f32 %v3665_v51  ;;  %v3666_v21 = vadd.f32 1e-05, %v3602_v43  ;;  %v3255_v3 = vmul.f32 0.03125, %v3186_v25  ;;  %v6975_v43 = vld [vmem:[#allocation5_spill] sm:$0xff] }
 0x4f4   :  { %4050 = vst [vmem:[#allocation2 + $0x48] sm:$0xff] %v4480_v29  ;;  %4491 = vtanh.f32 %v3925_v13  ;;  %v3188_v53 = vpop.xlane.xlu1 %3187 }
 0x4f5   :  { %v3926_v19 = vadd.f32 %v6537_v9, %v3858_v10  ;;  %4493 = vrsqrt.f32 %v3666_v21  ;;  %v3319_v26 = vsub.f32 %v6366_v48, %v3255_v3  ;;  %v3256_v22 = vmul.f32 0.03125, %v3188_v53 }
 0x4f6   :  { %v3182_v60 = vpop.xlane.xlu0 %3181 }
 0x4f7   :  { %4495 = vtanh.f32 %v3926_v19  ;;  %v6678_v45 = vmul.f32 %v6639_v40, %v3319_v26  ;;  %v3320_v14 = vsub.f32 %v6370_v2, %v3256_v22  ;;  %v3253_v63 = vmul.f32 0.03125, %v3182_v60  ;;  %v6976_v22 = vld [vmem:[#allocation12_spill] sm:$0xff] }
 0x4f8   :  { %v3184_v46 = vpop.xlane.xlu1 %3183 }
 0x4f9   :  { %v4482_v44 = vpop.eup %4481  ;;  %v6683_v61 = vmul.f32 %v6639_v40, %v3320_v14  ;;  %v3317_v58 = vsub.f32 %v6375_v34, %v3253_v63  ;;  %v3254_v48 = vmul.f32 0.03125, %v3184_v46  ;;  %v3451_v32 = vmul.f32 %v6678_v45, %v6678_v45 }
 0x4fa   :  { %v4484_v59 = vpop.eup %4483  ;;  %v3795_v54 = vmul.f32 %v4482_v44, %v6974_v28  ;;  %v3502_v16 = vpop.xlane.xlu0 %3501 }
 0x4fb   :  { %4055 = vst [vmem:[#allocation2 + $0x70] sm:$0xff] %v4484_v59  ;;  %v4486_v5 = vpop.eup %4485  ;;  %v6691_v13 = vmul.f32 %v6639_v40, %v3317_v58  ;;  %v3318_v10 = vsub.f32 %v6383_v33, %v3254_v48  ;;  %v3607_v21 = vmul.f32 0.03125, %v3502_v16  ;;  %3573 = vadd.xlane.f32.xlu0 %v3451_v32  ;;  %v3452_v3 = vmul.f32 %v6683_v61, %v6683_v61  ;;  %v6977_v48 = vld [vmem:[#allocation13_spill] sm:$0xff] }
 0x4fc   :  { %v3863_v51 = vmul.f32 %v6525_v41, %v3795_v54  ;;  %v4488_v2 = vpop.eup %4487  ;;  %v3796_v29 = vmul.f32 %v4486_v5, %v6975_v43  ;;  %v3504_v19 = vpop.xlane.xlu1 %3503 }
 0x4fd   :  { %v4490_v25 = vpop.eup %4489  ;;  %4056 = vst [vmem:[#allocation2 + $0x78] sm:$0xff] %v4488_v2  ;;  %v6700_v44 = vmul.f32 %v6639_v40, %v3318_v10  ;;  %v3671_v14 = vadd.f32 1e-05, %v3607_v21  ;;  %v3608_v63 = vmul.f32 0.03125, %v3504_v19  ;;  %3575 = vadd.xlane.f32.xlu1 %v3452_v3  ;;  %v3449_v28 = vmul.f32 %v6691_v13, %v6691_v13 }
 0x4fe   :  { %v3931_v34 = vadd.f32 %v6537_v9, %v3863_v51  ;;  %v4492_v53 = vpop.eup %4491  ;;  %v3864_v26 = vmul.f32 %v6525_v41, %v3796_v29  ;;  %v3793_v60 = vmul.f32 %v4490_v25, %v6976_v22  ;;  %v3498_v59 = vpop.xlane.xlu0 %3497 }
 0x4ff   :  { %v4494_v33 = vpop.eup %4493  ;;  %4053 = vst [vmem:[#allocation2 + $0x60] sm:$0xff] %v4492_v53  ;;  %v3672_v5 = vadd.f32 1e-05, %v3608_v63  ;;  %v3605_v51 = vmul.f32 0.03125, %v3498_v59  ;;  %3569 = vadd.xlane.f32.xlu0 %v3449_v28  ;;  %v3450_v2 = vmul.f32 %v6700_v44, %v6700_v44 }
 0x500   :  { %4497 = vtanh.f32 %v3931_v34  ;;  %v3932_v46 = vadd.f32 %v6537_v9, %v3864_v26  ;;  %v3861_v58 = vmul.f32 %v6525_v41, %v3793_v60  ;;  %v3794_v32 = vmul.f32 %v4494_v33, %v6977_v48  ;;  %v3500_v16 = vpop.xlane.xlu1 %3499 }
 0x501   :  { %v4496_v54 = vpop.eup %4495  ;;  %4499 = vrsqrt.f32 %v3671_v14  ;;  %v3606_v10 = vmul.f32 0.03125, %v3500_v16  ;;  %v3669_v21 = vadd.f32 1e-05, %v3605_v51  ;;  %3571 = vadd.xlane.f32.xlu1 %v3450_v2 }
 0x502   :  { %4054 = vst [vmem:[#allocation2 + $0x68] sm:$0xff] %v4496_v54  ;;  %4501 = vtanh.f32 %v3932_v46  ;;  %v3929_v43 = vadd.f32 %v6537_v9, %v3861_v58  ;;  %v3862_v29 = vmul.f32 %v6525_v41, %v3794_v32  ;;  %v3194_v25 = vpop.xlane.xlu0 %3193  ;;  %v6978_v54 = vld [vmem:[#allocation14_spill] sm:$0xff] }
 0x503   :  { %4503 = vrsqrt.f32 %v3672_v5  ;;  %v3670_v19 = vadd.f32 1e-05, %v3606_v10  ;;  %v3259_v53 = vmul.f32 0.03125, %v3194_v25 }
 0x504   :  { %4505 = vtanh.f32 %v3929_v43  ;;  %v3930_v34 = vadd.f32 %v6537_v9, %v3862_v29  ;;  %v3196_v3 = vpop.xlane.xlu1 %3195 }
 0x505   :  { %4507 = vrsqrt.f32 %v3669_v21  ;;  %v3260_v14 = vmul.f32 0.03125, %v3196_v3  ;;  %v3323_v58 = vsub.f32 %v6406_v55, %v3259_v53  ;;  %v6979_v21 = vld [vmem:[#allocation15_spill] sm:$0xff] }
 0x506   :  { %4509 = vtanh.f32 %v3930_v34  ;;  %v3190_v26 = vpop.xlane.xlu0 %3189 }
 0x507   :  { %4511 = vrsqrt.f32 %v3670_v19  ;;  %v3257_v22 = vmul.f32 0.03125, %v3190_v26  ;;  %v3324_v29 = vsub.f32 %v6410_v12, %v3260_v14  ;;  %v6727_v53 = vmul.f32 %v6639_v40, %v3323_v58  ;;  %v6980_v14 = vld [vmem:[#allocation16_spill] sm:$0xff] }
 0x508   :  { %v3192_v33 = vpop.xlane.xlu1 %3191 }
 0x509   :  { %v3321_v59 = vsub.f32 %v6415_v36, %v3257_v22  ;;  %v3258_v28 = vmul.f32 0.03125, %v3192_v33 }
 0x50a   :  { %v4498_v60 = vpop.eup %4497  ;;  %v3510_v48 = vpop.xlane.xlu0 %3509 }
 0x50b   :  { %v4500_v63 = vpop.eup %4499  ;;  %4059 = vst [vmem:[#allocation2 + $0x90] sm:$0xff] %v4498_v60  ;;  %v6716_v5 = vmul.f32 %v6639_v40, %v3321_v59  ;;  %v3322_v51 = vsub.f32 %v6423_v38, %v3258_v28  ;;  %v3611_v16 = vmul.f32 0.03125, %v3510_v48  ;;  %v6734_v28 = vmul.f32 %v6639_v40, %v3324_v29 }
 0x50c   :  { %v3799_v46 = vmul.f32 %v4500_v63, %v6978_v54  ;;  %v4502_v32 = vpop.eup %4501  ;;  %v3512_v36 = vpop.xlane.xlu1 %3511 }
 0x50d   :  { %v4504_v2 = vpop.eup %4503  ;;  %4060 = vst [vmem:[#allocation2 + $0x98] sm:$0xff] %v4502_v32  ;;  %v6723_v55 = vmul.f32 %v6639_v40, %v3322_v51  ;;  %v3675_v34 = vadd.f32 1e-05, %v3611_v16  ;;  %v3612_v19 = vmul.f32 0.03125, %v3512_v36  ;;  %v3453_v12 = vmul.f32 %v6716_v5, %v6716_v5  ;;  %v6981_v51 = vld [vmem:[#allocation17_spill] sm:$0xff] }
 0x50e   :  { %v3867_v43 = vmul.f32 %v6525_v41, %v3799_v46  ;;  %v4506_v10 = vpop.eup %4505  ;;  %v3800_v25 = vmul.f32 %v4504_v2, %v6979_v21  ;;  %v3506_v26 = vpop.xlane.xlu0 %3505  ;;  %v3455_v40 = vmul.f32 %v6727_v53, %v6727_v53  ;;  %v3456_v21 = vmul.f32 %v6734_v28, %v6734_v28 }
 0x50f   :  { %v4508_v3 = vpop.eup %4507  ;;  %4057 = vst [vmem:[#allocation2 + $0x80] sm:$0xff] %v4506_v10  ;;  %4513 = vrsqrt.f32 %v3675_v34  ;;  %v3676_v63 = vadd.f32 1e-05, %v3612_v19  ;;  %v3609_v54 = vmul.f32 0.03125, %v3506_v26  ;;  %3577 = vadd.xlane.f32.xlu0 %v3453_v12  ;;  %v3454_v58 = vmul.f32 %v6723_v55, %v6723_v55 }
 0x510   :  { %v3935_v38 = vadd.f32 %v6537_v9, %v3867_v43  ;;  %v4510_v22 = vpop.eup %4509  ;;  %v3868_v60 = vmul.f32 %v6525_v41, %v3800_v25  ;;  %v3797_v33 = vmul.f32 %v4508_v3, %v6980_v14  ;;  %v3508_v46 = vpop.xlane.xlu1 %3507 }
 0x511   :  { %v4512_v59 = vpop.eup %4511  ;;  %4058 = vst [vmem:[#allocation2 + $0x88] sm:$0xff] %v4510_v22  ;;  %v3673_v2 = vadd.f32 1e-05, %v3609_v54  ;;  %v3610_v43 = vmul.f32 0.03125, %v3508_v46  ;;  %3579 = vadd.xlane.f32.xlu1 %v3454_v58 }
 0x512   :  { %4515 = vtanh.f32 %v3935_v38  ;;  %v3936_v48 = vadd.f32 %v6537_v9, %v3868_v60  ;;  %v3865_v32 = vmul.f32 %v6525_v41, %v3797_v33  ;;  %v3798_v16 = vmul.f32 %v4512_v59, %v6981_v51 }
 0x513   :  { %4517 = vrsqrt.f32 %v3676_v63  ;;  %v3674_v10 = vadd.f32 1e-05, %v3610_v43  ;;  %3581 = vadd.xlane.f32.xlu0 %v3455_v40  ;;  %v6982_v40 = vld [vmem:[#allocation18_spill] sm:$0xff] }
 0x514   :  { %4519 = vtanh.f32 %v3936_v48  ;;  %v3933_v29 = vadd.f32 %v6537_v9, %v3865_v32  ;;  %v3866_v36 = vmul.f32 %v6525_v41, %v3798_v16 }
 0x515   :  { %4521 = vrsqrt.f32 %v3673_v2  ;;  %3583 = vadd.xlane.f32.xlu1 %v3456_v21 }
 0x516   :  { %4523 = vtanh.f32 %v3933_v29  ;;  %v3934_v25 = vadd.f32 %v6537_v9, %v3866_v36 }
 0x517   :  { %4525 = vrsqrt.f32 %v3674_v10 }
 0x518   :  { %v3518_v34 = vpop.xlane.xlu0 %3517  ;;  %4527 = vtanh.f32 %v3934_v25 }
 0x519   :  { %v3615_v19 = vmul.f32 0.03125, %v3518_v34  ;;  %v4514_v38 = vpop.eup %4513  ;;  %v6983_v34 = vld [vmem:[#allocation19_spill] sm:$0xff] }
 0x51a   :  { %v3520_v3 = vpop.xlane.xlu1 %3519  ;;  %v3803_v60 = vmul.f32 %v4514_v38, %v6420_v8 }
 0x51b   :  { %v3679_v26 = vadd.f32 1e-05, %v3615_v19  ;;  %v3616_v12 = vmul.f32 0.03125, %v3520_v3 }
 0x51c   :  { %v4516_v22 = vpop.eup %4515  ;;  %v3514_v14 = vpop.xlane.xlu0 %3513  ;;  %v3871_v54 = vmul.f32 %v6525_v41, %v3803_v60 }
 0x51d   :  { %v4518_v33 = vpop.eup %4517  ;;  %4063 = vst [vmem:[#allocation2 + $0xb0] sm:$0xff] %v4516_v22  ;;  %4529 = vrsqrt.f32 %v3679_v26  ;;  %v3680_v63 = vadd.f32 1e-05, %v3616_v12  ;;  %v3613_v59 = vmul.f32 0.03125, %v3514_v14 }
 0x51e   :  { %v3804_v46 = vmul.f32 %v4518_v33, %v6428_v47  ;;  %v3516_v58 = vpop.xlane.xlu1 %3515  ;;  %v4520_v48 = vpop.eup %4519  ;;  %v3939_v2 = vadd.f32 %v6537_v9, %v3871_v54 }
 0x51f   :  { %4531 = vrsqrt.f32 %v3680_v63  ;;  %v3677_v32 = vadd.f32 1e-05, %v3613_v59  ;;  %v3614_v51 = vmul.f32 0.03125, %v3516_v58  ;;  %v4522_v16 = vpop.eup %4521  ;;  %4064 = vst [vmem:[#allocation2 + $0xb8] sm:$0xff] %v4520_v48 }
 0x520   :  { %v3872_v8 = vmul.f32 %v6525_v41, %v3804_v46  ;;  %v4524_v43 = vpop.eup %4523  ;;  %v3801_v29 = vmul.f32 %v4522_v16, %v6982_v40 }
 0x521   :  { %4533 = vrsqrt.f32 %v3677_v32  ;;  %v3678_v36 = vadd.f32 1e-05, %v3614_v51  ;;  %v4526_v10 = vpop.eup %4525  ;;  %4061 = vst [vmem:[#allocation2 + $0xa0] sm:$0xff] %v4524_v43 }
 0x522   :  { %4535 = vtanh.f32 %v3939_v2  ;;  %v3940_v47 = vadd.f32 %v6537_v9, %v3872_v8  ;;  %v4528_v21 = vpop.eup %4527  ;;  %v3869_v25 = vmul.f32 %v6525_v41, %v3801_v29  ;;  %v3802_v19 = vmul.f32 %v4526_v10, %v6983_v34 }
 0x523   :  { %4537 = vrsqrt.f32 %v3678_v36  ;;  %4062 = vst [vmem:[#allocation2 + $0xa8] sm:$0xff] %v4528_v21 }
 0x524   :  { %4539 = vtanh.f32 %v3940_v47  ;;  %v3937_v3 = vadd.f32 %v6537_v9, %v3869_v25  ;;  %v3870_v38 = vmul.f32 %v6525_v41, %v3802_v19 }
 0x526   :  { %4541 = vtanh.f32 %v3937_v3  ;;  %v3938_v12 = vadd.f32 %v6537_v9, %v3870_v38 }
 0x527   :  { %v4530_v26 = vpop.eup %4529 }
 0x528   :  { %v3807_v22 = vmul.f32 %v4530_v26, %v6448_v49  ;;  %v3526_v60 = vpop.xlane.xlu0 %3525  ;;  %4543 = vtanh.f32 %v3938_v12 }
 0x529   :  { %v4532_v14 = vpop.eup %4531  ;;  %v3619_v33 = vmul.f32 0.03125, %v3526_v60 }
 0x52a   :  { %v3875_v63 = vmul.f32 %v6525_v41, %v3807_v22  ;;  %v3808_v59 = vmul.f32 %v4532_v14, %v6454_v0  ;;  %v3528_v54 = vpop.xlane.xlu1 %3527 }
 0x52b   :  { %v4534_v46 = vpop.eup %4533  ;;  %v3683_v58 = vadd.f32 1e-05, %v3619_v33  ;;  %v3620_v48 = vmul.f32 0.03125, %v3528_v54 }
 0x52c   :  { %v4536_v32 = vpop.eup %4535  ;;  %v3943_v51 = vadd.f32 %v6537_v9, %v3875_v63  ;;  %v3876_v16 = vmul.f32 %v6525_v41, %v3808_v59  ;;  %v3805_v2 = vmul.f32 %v4534_v46, %v6460_v42  ;;  %v3522_v49 = vpop.xlane.xlu0 %3521 }
 0x52d   :  { %v4538_v8 = vpop.eup %4537  ;;  %4067 = vst [vmem:[#allocation2 + $0xd0] sm:$0xff] %v4536_v32  ;;  %4545 = vrsqrt.f32 %v3683_v58  ;;  %v3684_v43 = vadd.f32 1e-05, %v3620_v48  ;;  %v3617_v40 = vmul.f32 0.03125, %v3522_v49 }
 0x52e   :  { %v4540_v29 = vpop.eup %4539  ;;  %4547 = vtanh.f32 %v3943_v51  ;;  %v3944_v0 = vadd.f32 %v6537_v9, %v3876_v16  ;;  %v3873_v36 = vmul.f32 %v6525_v41, %v3805_v2  ;;  %v3806_v10 = vmul.f32 %v4538_v8, %v6465_v6  ;;  %v3524_v47 = vpop.xlane.xlu1 %3523 }
 0x52f   :  { %4068 = vst [vmem:[#allocation2 + $0xd8] sm:$0xff] %v4540_v29  ;;  %4549 = vrsqrt.f32 %v3684_v43  ;;  %v3681_v21 = vadd.f32 1e-05, %v3617_v40  ;;  %v3618_v25 = vmul.f32 0.03125, %v3524_v47 }
 0x530   :  { %4551 = vtanh.f32 %v3944_v0  ;;  %v3941_v42 = vadd.f32 %v6537_v9, %v3873_v36  ;;  %v3874_v34 = vmul.f32 %v6525_v41, %v3806_v10  ;;  %v4542_v19 = vpop.eup %4541 }
 0x531   :  { %4553 = vrsqrt.f32 %v3681_v21  ;;  %v3682_v3 = vadd.f32 1e-05, %v3618_v25  ;;  %4065 = vst [vmem:[#allocation2 + $0xc0] sm:$0xff] %v4542_v19  ;;  %v6785_v25 = vld [vmem:[%s6895_s5 + $0x2] ss:$0 sm:$0xff] }
 0x532   :  { %4555 = vtanh.f32 %v3941_v42  ;;  %v3942_v38 = vadd.f32 %v6537_v9, %v3874_v34  ;;  %v4544_v26 = vpop.eup %4543 }
 0x533   :  { %4557 = vrsqrt.f32 %v3682_v3  ;;  %4066 = vst [vmem:[#allocation2 + $0xc8] sm:$0xff] %v4544_v26 }
 0x534   :  { %4559 = vtanh.f32 %v3942_v38 }
 0x537   :  { %v4546_v6 = vpop.eup %4545 }
 0x538   :  { %v4548_v12 = vpop.eup %4547  ;;  %v3811_v22 = vmul.f32 %v4546_v6, %v6472_v4  ;;  %v3534_v60 = vpop.xlane.xlu0 %3533 }
 0x539   :  { %v4550_v14 = vpop.eup %4549  ;;  %4071 = vst [vmem:[#allocation2 + $0xf0] sm:$0xff] %v4548_v12  ;;  %v3623_v33 = vmul.f32 0.03125, %v3534_v60 }
 0x53a   :  { %v4552_v63 = vpop.eup %4551  ;;  %v3879_v59 = vmul.f32 %v6525_v41, %v3811_v22  ;;  %v3812_v54 = vmul.f32 %v4550_v14, %v6478_v23  ;;  %v3536_v46 = vpop.xlane.xlu1 %3535 }
 0x53b   :  { %v4554_v58 = vpop.eup %4553  ;;  %4072 = vst [vmem:[#allocation2 + $0xf8] sm:$0xff] %v4552_v63  ;;  %v3687_v48 = vadd.f32 1e-05, %v3623_v33  ;;  %v3624_v32 = vmul.f32 0.03125, %v3536_v46 }
 0x53c   :  { %v4556_v51 = vpop.eup %4555  ;;  %v3947_v16 = vadd.f32 %v6537_v9, %v3879_v59  ;;  %v3880_v2 = vmul.f32 %v6525_v41, %v3812_v54  ;;  %v3809_v4 = vmul.f32 %v4554_v58, %v6481_v11  ;;  %v3530_v49 = vpop.xlane.xlu0 %3529  ;;  %v6984_v58 = vld [vmem:[#allocation20_spill] sm:$0xff] }
 0x53d   :  { %v4558_v8 = vpop.eup %4557  ;;  %4069 = vst [vmem:[#allocation2 + $0xe0] sm:$0xff] %v4556_v51  ;;  %4561 = vrsqrt.f32 %v3687_v48  ;;  %v3688_v43 = vadd.f32 1e-05, %v3624_v32  ;;  %v3621_v40 = vmul.f32 0.03125, %v3530_v49  ;;  %v6985_v49 = vld [vmem:[#allocation21_spill] sm:$0xff] }
 0x53e   :  { %v4560_v29 = vpop.eup %4559  ;;  %4563 = vtanh.f32 %v3947_v16  ;;  %v3948_v23 = vadd.f32 %v6537_v9, %v3880_v2  ;;  %v3877_v0 = vmul.f32 %v6525_v41, %v3809_v4  ;;  %v3810_v36 = vmul.f32 %v4558_v8, %v6487_v17  ;;  %v3532_v10 = vpop.xlane.xlu1 %3531  ;;  %v6791_v17 = vld [vmem:[%s6895_s5 + $0x3] ss:$0 sm:$0xff]  ;;  %s4710_s5 = smov [#allocation2]  }
 0x53f   :  { %4070 = vst [vmem:[#allocation2 + $0xe8] sm:$0xff] %v4560_v29  ;;  %4565 = vrsqrt.f32 %v3688_v43  ;;  %v3685_v47 = vadd.f32 1e-05, %v3621_v40  ;;  %v3622_v21 = vmul.f32 0.03125, %v3532_v10  ;;  %s4110_s29 = sshll.u32 %s4710_s5, 4  ;;  %s4111_s29 = int_to_ptr.vmem [resolvable:$true] %s4110_s29 }
 0x540   :  { %4567 = vtanh.f32 %v3948_v23  ;;  %v3945_v11 = vadd.f32 %v6537_v9, %v3877_v0  ;;  %v3878_v42 = vmul.f32 %v6785_v25, %v3810_v36  ;;  %s4685_s30 = scalar_lea.vmem %s4111_s29, 8192  ;;  %p4690_p1 = scmp.lt.s32.totalorder %s4111_s29, %s4111_s29 }
 0x541   :  { %4569 = vrsqrt.f32 %v3685_v47  ;;  %v3686_v34 = vadd.f32 1e-05, %v3622_v21  ;;  %p4686_p0 = scmp.ne.s32.totalorder %s4111_s29, %s4685_s30  ;;  %p4691_p2 = scmp.lt.s32.totalorder %s4685_s30, %s4685_s30 }
 0x542   :  { %4571 = vtanh.f32 %v3945_v11  ;;  %v3946_v41 = vadd.f32 %v6791_v17, %v3878_v42 }
 0x543   :  { %4573 = vrsqrt.f32 %v3686_v34  ;;  %p4692_p3 = por %p4691_p2, %p4690_p1 }
 0x544   :  { %4575 = vtanh.f32 %v3946_v41 }
 0x545   :  { %p4693_p4 = pnand %p4692_p3, %p4686_p0 }
 0x547   :  { %v4562_v9 = vpop.eup %4561 }
 0x548   :  { %v4564_v19 = vpop.eup %4563  ;;  %v3815_v3 = vmul.f32 %v4562_v9, %v6495_v52  ;;  %v3542_v38 = vpop.xlane.xlu0 %3541 }
 0x549   :  { %v4566_v26 = vpop.eup %4565  ;;  %4075 = vst [vmem:[#allocation2 + $0x110] sm:$0xff] %v4564_v19  ;;  %v3627_v6 = vmul.f32 0.03125, %v3542_v38 }
 0x54a   :  { %v4568_v12 = vpop.eup %4567  ;;  %v3883_v22 = vmul.f32 %v6785_v25, %v3815_v3  ;;  %v3816_v60 = vmul.f32 %v4566_v26, %v6499_v1  ;;  %v3544_v63 = vpop.xlane.xlu1 %3543 }
 0x54b   :  { %v4570_v14 = vpop.eup %4569  ;;  %4076 = vst [vmem:[#allocation2 + $0x118] sm:$0xff] %v4568_v12  ;;  %v3691_v33 = vadd.f32 1e-05, %v3627_v6  ;;  %v3628_v48 = vmul.f32 0.03125, %v3544_v63 }
 0x54c   :  { %v4572_v59 = vpop.eup %4571  ;;  %v3951_v54 = vadd.f32 %v6791_v17, %v3883_v22  ;;  %v3884_v46 = vmul.f32 %v6785_v25, %v3816_v60  ;;  %v3813_v52 = vmul.f32 %v4570_v14, %v6984_v58  ;;  %v3538_v32 = vpop.xlane.xlu0 %3537  ;;  %v6986_v22 = vld [vmem:[#allocation22_spill] sm:$0xff] }
 0x54d   :  { %v4574_v51 = vpop.eup %4573  ;;  %4073 = vst [vmem:[#allocation2 + $0x100] sm:$0xff] %v4572_v59  ;;  %4577 = vrsqrt.f32 %v3691_v33  ;;  %v3625_v16 = vmul.f32 0.03125, %v3538_v32  ;;  %v3692_v43 = vadd.f32 1e-05, %v3628_v48 }
 0x54e   :  { %v4576_v2 = vpop.eup %4575  ;;  %4579 = vtanh.f32 %v3951_v54  ;;  %v3952_v1 = vadd.f32 %v6791_v17, %v3884_v46  ;;  %v3881_v4 = vmul.f32 %v6785_v25, %v3813_v52  ;;  %v3814_v8 = vmul.f32 %v4574_v51, %v6985_v49  ;;  %v3540_v29 = vpop.xlane.xlu1 %3539 }
 0x54f   :  { %4074 = vst [vmem:[#allocation2 + $0x108] sm:$0xff] %v4576_v2  ;;  %v3689_v40 = vadd.f32 1e-05, %v3625_v16  ;;  %v3626_v36 = vmul.f32 0.03125, %v3540_v29 }
 0x550   :  { %4581 = vtanh.f32 %v3952_v1  ;;  %v3949_v23 = vadd.f32 %v6791_v17, %v3881_v4  ;;  %v3882_v0 = vmul.f32 %v6785_v25, %v3814_v8 }
 0x551   :  { %4583 = vrsqrt.f32 %v3692_v43  ;;  %v3690_v47 = vadd.f32 1e-05, %v3626_v36 }
 0x552   :  { %4585 = vtanh.f32 %v3949_v23  ;;  %v3950_v10 = vadd.f32 %v6791_v17, %v3882_v0 }
 0x553   :  { %4587 = vrsqrt.f32 %v3689_v40 }
 0x554   :  { %4589 = vtanh.f32 %v3950_v10 }
 0x555   :  { %4591 = vrsqrt.f32 %v3690_v47 }
 0x557   :  { %v4578_v21 = vpop.eup %4577 }
 0x558   :  { %v4580_v11 = vpop.eup %4579  ;;  %v3819_v42 = vmul.f32 %v4578_v21, %v6519_v7  ;;  %v3550_v34 = vpop.xlane.xlu0 %3549 }
 0x559   :  { %4079 = vst [vmem:[#allocation2 + $0x130] sm:$0xff] %v4580_v11  ;;  %v3631_v41 = vmul.f32 0.03125, %v3550_v34 }
 0x55a   :  { %v4582_v9 = vpop.eup %4581  ;;  %v3887_v19 = vmul.f32 %v6785_v25, %v3819_v42  ;;  %v3552_v26 = vpop.xlane.xlu1 %3551 }
 0x55b   :  { %v4584_v3 = vpop.eup %4583  ;;  %4080 = vst [vmem:[#allocation2 + $0x138] sm:$0xff] %v4582_v9  ;;  %v3695_v38 = vadd.f32 1e-05, %v3631_v41  ;;  %v3632_v14 = vmul.f32 0.03125, %v3552_v26 }
 0x55c   :  { %v4586_v6 = vpop.eup %4585  ;;  %v3955_v12 = vadd.f32 %v6791_v17, %v3887_v19  ;;  %v3820_v60 = vmul.f32 %v4584_v3, %v6986_v22  ;;  %v3546_v33 = vpop.xlane.xlu0 %3545 }
 0x55d   :  { %v4588_v63 = vpop.eup %4587  ;;  %4077 = vst [vmem:[#allocation2 + $0x120] sm:$0xff] %v4586_v6  ;;  %4593 = vrsqrt.f32 %v3695_v38  ;;  %v3629_v7 = vmul.f32 0.03125, %v3546_v33  ;;  %v3696_v58 = vadd.f32 1e-05, %v3632_v14 }
 0x55e   :  { %v4590_v59 = vpop.eup %4589  ;;  %4595 = vtanh.f32 %v3955_v12  ;;  %v3888_v54 = vmul.f32 %v6785_v25, %v3820_v60  ;;  %v3817_v46 = vmul.f32 %v4588_v63, %v6540_v56  ;;  %v3548_v32 = vpop.xlane.xlu1 %3547 }
 0x55f   :  { %v4592_v52 = vpop.eup %4591  ;;  %4078 = vst [vmem:[#allocation2 + $0x128] sm:$0xff] %v4590_v59  ;;  %v3693_v48 = vadd.f32 1e-05, %v3629_v7  ;;  %4597 = vrsqrt.f32 %v3696_v58  ;;  %v3630_v1 = vmul.f32 0.03125, %v3548_v32 }
 0x560   :  { %v3956_v51 = vadd.f32 %v6791_v17, %v3888_v54  ;;  %v3885_v16 = vmul.f32 %v6785_v25, %v3817_v46  ;;  %v3818_v2 = vmul.f32 %v4592_v52, %v6552_v30 }
 0x561   :  { %4599 = vrsqrt.f32 %v3693_v48  ;;  %v3694_v56 = vadd.f32 1e-05, %v3630_v1 }
 0x562   :  { %4601 = vtanh.f32 %v3956_v51  ;;  %v3953_v4 = vadd.f32 %v6791_v17, %v3885_v16  ;;  %v3886_v49 = vmul.f32 %v6785_v25, %v3818_v2 }
 0x564   :  { %4603 = vtanh.f32 %v3953_v4  ;;  %v3954_v8 = vadd.f32 %v6791_v17, %v3886_v49 }
 0x565   :  { %4605 = vrsqrt.f32 %v3694_v56 }
 0x566   :  { %4607 = vtanh.f32 %v3954_v8 }
 0x567   :  { %v4594_v43 = vpop.eup %4593 }
 0x568   :  { %v4596_v40 = vpop.eup %4595  ;;  %v3823_v29 = vmul.f32 %v4594_v43, %v6565_v35  ;;  %v3558_v23 = vpop.xlane.xlu0 %3557 }
 0x569   :  { %4083 = vst [vmem:[#allocation2 + $0x150] sm:$0xff] %v4596_v40  ;;  %v3635_v30 = vmul.f32 0.03125, %v3558_v23  ;;  %v4598_v0 = vpop.eup %4597 }
 0x56a   :  { %v3891_v36 = vmul.f32 %v6785_v25, %v3823_v29  ;;  %v3824_v47 = vmul.f32 %v4598_v0, %v6573_v24  ;;  %v3560_v11 = vpop.xlane.xlu1 %3559 }
 0x56b   :  { %v4600_v10 = vpop.eup %4599  ;;  %v3699_v21 = vadd.f32 1e-05, %v3635_v30  ;;  %v3636_v9 = vmul.f32 0.03125, %v3560_v11 }
 0x56c   :  { %v4602_v42 = vpop.eup %4601  ;;  %v3959_v34 = vadd.f32 %v6791_v17, %v3891_v36  ;;  %v3821_v41 = vmul.f32 %v4600_v10, %v6576_v50  ;;  %v3554_v19 = vpop.xlane.xlu0 %3553  ;;  %v3892_v35 = vmul.f32 %v6785_v25, %v3824_v47 }
 0x56d   :  { %4084 = vst [vmem:[#allocation2 + $0x158] sm:$0xff] %v4602_v42  ;;  %4609 = vrsqrt.f32 %v3699_v21  ;;  %v3633_v3 = vmul.f32 0.03125, %v3554_v19  ;;  %v3700_v6 = vadd.f32 1e-05, %v3636_v9 }
 0x56e   :  { %v4604_v38 = vpop.eup %4603  ;;  %4611 = vtanh.f32 %v3959_v34  ;;  %v3889_v26 = vmul.f32 %v6785_v25, %v3821_v41  ;;  %v3960_v12 = vadd.f32 %v6791_v17, %v3892_v35  ;;  %v3556_v60 = vpop.xlane.xlu1 %3555 }
 0x56f   :  { %v4606_v24 = vpop.eup %4605  ;;  %4081 = vst [vmem:[#allocation2 + $0x140] sm:$0xff] %v4604_v38  ;;  %v3697_v22 = vadd.f32 1e-05, %v3633_v3  ;;  %4613 = vrsqrt.f32 %v3700_v6  ;;  %v3634_v63 = vmul.f32 0.03125, %v3556_v60 }
 0x570   :  { %v4608_v14 = vpop.eup %4607  ;;  %v3957_v50 = vadd.f32 %v6791_v17, %v3889_v26  ;;  %v3822_v33 = vmul.f32 %v4606_v24, %v6587_v62  ;;  %4615 = vtanh.f32 %v3960_v12 }
 0x571   :  { %4082 = vst [vmem:[#allocation2 + $0x148] sm:$0xff] %v4608_v14  ;;  %v3698_v59 = vadd.f32 1e-05, %v3634_v63 }
 0x572   :  { %4617 = vtanh.f32 %v3957_v50  ;;  %v3890_v7 = vmul.f32 %v6785_v25, %v3822_v33 }
 0x573   :  { %4619 = vrsqrt.f32 %v3697_v22 }
 0x574   :  { %v3958_v54 = vadd.f32 %v6791_v17, %v3890_v7  ;;  %4621 = vrsqrt.f32 %v3698_v59 }
 0x576   :  { %4623 = vtanh.f32 %v3958_v54 }
 0x577   :  { %v4610_v46 = vpop.eup %4609 }
 0x578   :  { %v4612_v58 = vpop.eup %4611  ;;  %v3827_v52 = vmul.f32 %v4610_v46, %v6601_v31  ;;  %v3566_v48 = vpop.xlane.xlu0 %3565 }
 0x579   :  { %4087 = vst [vmem:[#allocation2 + $0x170] sm:$0xff] %v4612_v58  ;;  %v3639_v62 = vmul.f32 0.03125, %v3566_v48  ;;  %v4614_v32 = vpop.eup %4613 }
 0x57a   :  { %v3895_v51 = vmul.f32 %v6785_v25, %v3827_v52  ;;  %v4616_v16 = vpop.eup %4615  ;;  %v3828_v2 = vmul.f32 %v4614_v32, %v6609_v27  ;;  %v3568_v4 = vpop.xlane.xlu1 %3567 }
 0x57b   :  { %v3703_v1 = vadd.f32 1e-05, %v3639_v62  ;;  %4088 = vst [vmem:[#allocation2 + $0x178] sm:$0xff] %v4616_v16  ;;  %v3640_v8 = vmul.f32 0.03125, %v3568_v4 }
 0x57c   :  { %v4618_v49 = vpop.eup %4617  ;;  %v3963_v56 = vadd.f32 %v6791_v17, %v3895_v51  ;;  %v3562_v43 = vpop.xlane.xlu0 %3561  ;;  %v3896_v31 = vmul.f32 %v6785_v25, %v3828_v2 }
 0x57d   :  { %v4620_v40 = vpop.eup %4619  ;;  %4085 = vst [vmem:[#allocation2 + $0x160] sm:$0xff] %v4618_v49  ;;  %4625 = vrsqrt.f32 %v3703_v1  ;;  %v3637_v29 = vmul.f32 0.03125, %v3562_v43  ;;  %v3704_v0 = vadd.f32 1e-05, %v3640_v8 }
 0x57e   :  { %v4622_v23 = vpop.eup %4621  ;;  %4627 = vtanh.f32 %v3963_v56  ;;  %v3825_v30 = vmul.f32 %v4620_v40, %v6612_v20  ;;  %v3964_v27 = vadd.f32 %v6791_v17, %v3896_v31 }
 0x57f   :  { %v3826_v36 = vmul.f32 %v4622_v23, %v6623_v18  ;;  %v3701_v10 = vadd.f32 1e-05, %v3637_v29  ;;  %v3564_v47 = vpop.xlane.xlu1 %3563  ;;  %4629 = vrsqrt.f32 %v3704_v0 }
 0x580   :  { %v4624_v21 = vpop.eup %4623  ;;  %v3893_v11 = vmul.f32 %v6785_v25, %v3825_v30  ;;  %v3638_v42 = vmul.f32 0.03125, %v3564_v47  ;;  %4631 = vtanh.f32 %v3964_v27 }
 0x581   :  { %4086 = vst [vmem:[#allocation2 + $0x168] sm:$0xff] %v4624_v21  ;;  %v3894_v34 = vmul.f32 %v6785_v25, %v3826_v36  ;;  %4633 = vrsqrt.f32 %v3701_v10 }
 0x582   :  { %v3961_v41 = vadd.f32 %v6791_v17, %v3893_v11  ;;  %v3702_v20 = vadd.f32 1e-05, %v3638_v42 }
 0x583   :  { %v3962_v9 = vadd.f32 %v6791_v17, %v3894_v34 }
 0x584   :  { %4635 = vtanh.f32 %v3961_v41 }
 0x585   :  { %4637 = vtanh.f32 %v3962_v9 }
 0x586   :  { %4639 = vrsqrt.f32 %v3702_v20 }
 0x587   :  { %v4626_v18 = vpop.eup %4625 }
 0x588   :  { %v4628_v19 = vpop.eup %4627  ;;  %v3831_v35 = vmul.f32 %v4626_v18, %v6642_v39  ;;  %v3574_v26 = vpop.xlane.xlu0 %3573 }
 0x589   :  { %4091 = vst [vmem:[#allocation2 + $0x190] sm:$0xff] %v4628_v19  ;;  %v4630_v3 = vpop.eup %4629  ;;  %v3643_v12 = vmul.f32 0.03125, %v3574_v26 }
 0x58a   :  { %v3899_v38 = vmul.f32 %v6785_v25, %v3831_v35  ;;  %v4632_v6 = vpop.eup %4631  ;;  %v3832_v24 = vmul.f32 %v4630_v3, %v6650_v37  ;;  %v3576_v63 = vpop.xlane.xlu1 %3575 }
 0x58b   :  { %v4634_v22 = vpop.eup %4633  ;;  %4092 = vst [vmem:[#allocation2 + $0x198] sm:$0xff] %v4632_v6  ;;  %v3707_v33 = vadd.f32 1e-05, %v3643_v12  ;;  %v3644_v7 = vmul.f32 0.03125, %v3576_v63 }
 0x58c   :  { %v3967_v60 = vadd.f32 %v6791_v17, %v3899_v38  ;;  %v3900_v14 = vmul.f32 %v6785_v25, %v3832_v24  ;;  %v3829_v50 = vmul.f32 %v4634_v22, %v6653_v57  ;;  %v3570_v46 = vpop.xlane.xlu0 %3569 }
 0x58d   :  { %v3708_v52 = vadd.f32 1e-05, %v3644_v7  ;;  %v3641_v48 = vmul.f32 0.03125, %v3570_v46 }
 0x58e   :  { %v4636_v39 = vpop.eup %4635  ;;  %4641 = vtanh.f32 %v3967_v60  ;;  %v3968_v54 = vadd.f32 %v6791_v17, %v3900_v14  ;;  %v3897_v37 = vmul.f32 %v6785_v25, %v3829_v50  ;;  %v3572_v32 = vpop.xlane.xlu1 %3571 }
 0x58f   :  { %v4638_v59 = vpop.eup %4637  ;;  %4089 = vst [vmem:[#allocation2 + $0x180] sm:$0xff] %v4636_v39  ;;  %4643 = vrsqrt.f32 %v3707_v33  ;;  %v3705_v51 = vadd.f32 1e-05, %v3641_v48  ;;  %v3642_v16 = vmul.f32 0.03125, %v3572_v32 }
 0x590   :  { %v4640_v58 = vpop.eup %4639  ;;  %4090 = vst [vmem:[#allocation2 + $0x188] sm:$0xff] %v4638_v59  ;;  %4645 = vtanh.f32 %v3968_v54  ;;  %v3965_v57 = vadd.f32 %v6791_v17, %v3897_v37 }
 0x591   :  { %v3830_v62 = vmul.f32 %v4640_v58, %v6664_v15  ;;  %4647 = vrsqrt.f32 %v3708_v52  ;;  %v3706_v1 = vadd.f32 1e-05, %v3642_v16 }
 0x592   :  { %4649 = vtanh.f32 %v3965_v57 }
 0x593   :  { %v3898_v2 = vmul.f32 %v6785_v25, %v3830_v62  ;;  %4651 = vrsqrt.f32 %v3705_v51 }
 0x594   :  { %4653 = vrsqrt.f32 %v3706_v1 }
 0x595   :  { %v3966_v4 = vadd.f32 %v6791_v17, %v3898_v2 }
 0x597   :  { %4655 = vtanh.f32 %v3966_v4 }
 0x598   :  { %v4642_v49 = vpop.eup %4641 }
 0x599   :  { %v4644_v56 = vpop.eup %4643  ;;  %4095 = vst [vmem:[#allocation2 + $0x1b0] sm:$0xff] %v4642_v49 }
 0x59a   :  { %v3835_v8 = vmul.f32 %v4644_v56, %v6678_v45  ;;  %v4646_v43 = vpop.eup %4645 }
 0x59b   :  { %v4648_v15 = vpop.eup %4647  ;;  %4096 = vst [vmem:[#allocation2 + $0x1b8] sm:$0xff] %v4646_v43 }
 0x59c   :  { %v3903_v40 = vmul.f32 %v6785_v25, %v3835_v8  ;;  %v4650_v31 = vpop.eup %4649  ;;  %v3836_v29 = vmul.f32 %v4648_v15, %v6683_v61  ;;  %v3578_v36 = vpop.xlane.xlu0 %3577 }
 0x59d   :  { %v4652_v23 = vpop.eup %4651  ;;  %4093 = vst [vmem:[#allocation2 + $0x1a0] sm:$0xff] %v4650_v31  ;;  %v3645_v45 = vmul.f32 0.03125, %v3578_v36 }
 0x59e   :  { %v3971_v30 = vadd.f32 %v6791_v17, %v3903_v40  ;;  %v3904_v0 = vmul.f32 %v6785_v25, %v3836_v29  ;;  %v3833_v27 = vmul.f32 %v4652_v23, %v6691_v13  ;;  %v4654_v10 = vpop.eup %4653  ;;  %v3580_v61 = vpop.xlane.xlu1 %3579 }
 0x59f   :  { %v3834_v42 = vmul.f32 %v4654_v10, %v6700_v44  ;;  %v3709_v34 = vadd.f32 1e-05, %v3645_v45  ;;  %v3646_v41 = vmul.f32 0.03125, %v3580_v61 }
 0x5a0   :  { %4657 = vtanh.f32 %v3971_v30  ;;  %v3972_v21 = vadd.f32 %v6791_v17, %v3904_v0  ;;  %v3901_v11 = vmul.f32 %v6785_v25, %v3833_v27  ;;  %v3582_v9 = vpop.xlane.xlu0 %3581 }
 0x5a1   :  { %v4656_v47 = vpop.eup %4655  ;;  %v3902_v13 = vmul.f32 %v6785_v25, %v3834_v42  ;;  %v3710_v18 = vadd.f32 1e-05, %v3646_v41  ;;  %v3647_v19 = vmul.f32 0.03125, %v3582_v9 }
 0x5a2   :  { %4094 = vst [vmem:[#allocation2 + $0x1a8] sm:$0xff] %v4656_v47  ;;  %4659 = vtanh.f32 %v3972_v21  ;;  %v3969_v20 = vadd.f32 %v6791_v17, %v3901_v11  ;;  %v3584_v3 = vpop.xlane.xlu1 %3583 }
 0x5a3   :  { %4661 = vrsqrt.f32 %v3709_v34  ;;  %v3970_v35 = vadd.f32 %v6791_v17, %v3902_v13  ;;  %v3711_v38 = vadd.f32 1e-05, %v3647_v19  ;;  %v3648_v44 = vmul.f32 0.03125, %v3584_v3 }
 0x5a4   :  { %4663 = vtanh.f32 %v3969_v20 }
 0x5a5   :  { %4665 = vrsqrt.f32 %v3710_v18  ;;  %v3712_v26 = vadd.f32 1e-05, %v3648_v44 }
 0x5a6   :  { %4667 = vtanh.f32 %v3970_v35 }
 0x5a7   :  { %4669 = vrsqrt.f32 %v3711_v38 }
 0x5a8   :  { %4671 = vrsqrt.f32 %v3712_v26 }
 0x5aa   :  { %v4658_v6 = vpop.eup %4657 }
 0x5ab   :  { %4099 = vst [vmem:[#allocation2 + $0x1d0] sm:$0xff] %v4658_v6 }
 0x5ac   :  { %v4660_v24 = vpop.eup %4659 }
 0x5ad   :  { %v4662_v12 = vpop.eup %4661  ;;  %4100 = vst [vmem:[#allocation2 + $0x1d8] sm:$0xff] %v4660_v24 }
 0x5ae   :  { %v4664_v22 = vpop.eup %4663  ;;  %v3837_v60 = vmul.f32 %v4662_v12, %v6716_v5 }
 0x5af   :  { %v4666_v14 = vpop.eup %4665  ;;  %4097 = vst [vmem:[#allocation2 + $0x1c0] sm:$0xff] %v4664_v22 }
 0x5b0   :  { %v4668_v50 = vpop.eup %4667  ;;  %v3905_v33 = vmul.f32 %v6785_v25, %v3837_v60  ;;  %v3838_v63 = vmul.f32 %v4666_v14, %v6723_v55 }
 0x5b1   :  { %v4670_v39 = vpop.eup %4669  ;;  %4098 = vst [vmem:[#allocation2 + $0x1c8] sm:$0xff] %v4668_v50 }
 0x5b2   :  { %v3973_v7 = vadd.f32 %v6791_v17, %v3905_v33  ;;  %v3906_v59 = vmul.f32 %v6785_v25, %v3838_v63  ;;  %v3839_v54 = vmul.f32 %v4670_v39, %v6727_v53  ;;  %v4672_v37 = vpop.eup %4671 }
 0x5b3   :  { %v3840_v58 = vmul.f32 %v4672_v37, %v6734_v28 }
 0x5b4   :  { %4673 = vtanh.f32 %v3973_v7  ;;  %v3974_v46 = vadd.f32 %v6791_v17, %v3906_v59  ;;  %v3907_v5 = vmul.f32 %v6785_v25, %v3839_v54 }
 0x5b5   :  { %v3908_v55 = vmul.f32 %v6785_v25, %v3840_v58 }
 0x5b6   :  { %4675 = vtanh.f32 %v3974_v46  ;;  %v3975_v52 = vadd.f32 %v6791_v17, %v3907_v5 }
 0x5b7   :  { %v3976_v48 = vadd.f32 %v6791_v17, %v3908_v55 }
 0x5b8   :  { %4677 = vtanh.f32 %v3975_v52 }
 0x5b9   :  { %4679 = vtanh.f32 %v3976_v48 }
 0x5be   :  { %v4674_v57 = vpop.eup %4673 }
 0x5bf   :  { %4101 = vst [vmem:[#allocation2 + $0x1e0] sm:$0xff] %v4674_v57 }
 0x5c0   :  { %v4676_v53 = vpop.eup %4675 }
 0x5c1   :  { %4102 = vst [vmem:[#allocation2 + $0x1e8] sm:$0xff] %v4676_v53 }
 0x5c2   :  { %v4678_v62 = vpop.eup %4677 }
 0x5c3   :  { %4103 = vst [vmem:[#allocation2 + $0x1f0] sm:$0xff] %v4678_v62  ;;  %v4680_v32 = vpop.eup %4679 }
 0x5c4   :  { %4104 = vst [vmem:[#allocation2 + $0x1f8] sm:$0xff] %v4680_v32 }
 0x5c5   :  { %4696 = shalt.err (!%p4693_p4)
}
 0x5c6   :  { %s4697_s8 = scalar_lea.hbm %s6896_s6, 8192 }
 0x5c7   :  { %p4698_p5 = scmp.ne.s32.totalorder %s6896_s6, %s4697_s8  ;;  %p4701_p6 = scmp.lt.u32.totalorder %s4697_s8, %s6896_s6 }
 0x5c9   :  { %p4703_p7 = pnand %p4701_p6, %p4698_p5 }
 0x5cb   :  { %4706 = shalt.err (!%p4703_p7)
}
 0x5cc   :  { %s4711_s12 = smov 128   ;;  %s4712_s13 = smov 8  }
 0x5cd   :  { %4116 = dma.vmem_to_hbm [thread:$0]  %s4111_s29, 8192, %s6896_s6, [#allocation3], %s4711_s12, %s4711_s12, %s4712_s13  }
 0x5ce   :  { %4707 = dma.done.wait [#allocation3], 8192  }
 0x5cf   :  { %4708 = vsyncadd [#allocation3], 4294959104 }
 0x5d0   :  { %4120 = vsyncpa [#allocation3], 1 }

</bundles_post_ra>
